<compile_context>
chip_gen: v7x
topology: tpu7x:2x2x1
jax: 0.10.0
libtpu: 0.0.40
codegen_flags: <defaults>
</compile_context>

<pallas_src>
import functools

import jax
import jax.numpy as jnp
from jax.experimental import pallas as pl
from jax.experimental.pallas import tpu as pltpu


# ---------------------------------------------------------------------------
# Generation-aware VMEM budget
# ---------------------------------------------------------------------------
def _vmem_capacity_bytes():
    try:
        info = pltpu.get_tpu_info()
        cap = int(getattr(info, "vmem_capacity_bytes", 0) or 0)
        if cap > 0:
            return cap
    except Exception:
        pass
    return 64 << 20  # conservative fallback (v7x per-core VMEM)


_VMEM_BUDGET = _vmem_capacity_bytes() * 3 // 4  # ~96 MiB v5e/v6e, ~48 MiB v7x

_AHAT_RB = 256  # row-chunk size for in-kernel A_hat construction (fused path)


# ---------------------------------------------------------------------------
# Kernels
# ---------------------------------------------------------------------------
def _sgc_hop_kernel(a_ref, nsrc_ref, ndst_ref, feat_ref, out_ref, acc_ref,
                    *, tk, feat_full):
    """One hop: out = norm_dst * (A @ (norm_src * feat)), tiled over (i, j, kk).

    a_ref    : (tm, tk)  int8 raw 0/1 adjacency tile (dst rows, src cols)
    nsrc_ref : (tk, 1)   f32  source-side degree norm
    ndst_ref : (tm, 1)   f32  destination-side degree norm
    feat_ref : (Np, tn)  bf16 full-height features (sliced per kk)  OR (tk, tn)
    acc_ref  : (tm, tn)  f32  accumulator over the kk (contraction) axis
    """
    kk = pl.program_id(2)

    @pl.when(kk == 0)
    def _():
        acc_ref[...] = jnp.zeros_like(acc_ref)

    if feat_full:
        src0 = pl.multiple_of(kk * tk, tk)
        f = feat_ref[pl.ds(src0, tk), :]
    else:
        f = feat_ref[...]

    # Source-side degree scaling on the VPU (f32), bf16 into the MXU.
    f_scaled = (f.astype(jnp.float32) * nsrc_ref[...]).astype(jnp.bfloat16)
    # int8 0/1 -> bf16 is exact; the cast rides otherwise-idle VPU slots.
    a_bf = a_ref[...].astype(jnp.float32).astype(jnp.bfloat16)

    acc_ref[...] += jnp.dot(a_bf, f_scaled, preferred_element_type=jnp.float32)

    @pl.when(kk == pl.num_programs(2) - 1)
    def _():
        out_ref[...] = (acc_ref[...] * ndst_ref[...]).astype(out_ref.dtype)


def _sgc_fused_kernel(a_ref, ncol_ref, nrow_ref, feat_ref, out_ref, ahat_ref):
    """All k hops fused; grid = (D-column blocks ["parallel"], k ["arbitrary"]).

    a_ref    : (Np, Np)  int8 raw adjacency, resident (constant block index ->
                          DMA'd from HBM once per core)
    ncol_ref : (Np, 1)   f32  degree norm (column form)
    nrow_ref : (1, Np)   f32  degree norm (row form)
    feat_ref : (Np, tnf) bf16 input features for this column block
    out_ref  : (Np, tnf) f32  carry / output block, resident across the k axis
    ahat_ref : (Np, Np)  bf16 scratch holding D^-1/2 A D^-1/2
    """
    step = pl.program_id(1)
    n = ahat_ref.shape[0]

    @pl.when(step == 0)
    def _():
        # Build the symmetric-normalized adjacency in row chunks once per
        # column sweep (avoids an (N, N) f32 temporary blowing VMEM).
        nrow = nrow_ref[...]

        def build(r, carry):
            r0 = pl.multiple_of(r * _AHAT_RB, _AHAT_RB)
            blk = a_ref[pl.ds(r0, _AHAT_RB), :].astype(jnp.float32)
            blk = blk * ncol_ref[pl.ds(r0, _AHAT_RB), :] * nrow
            ahat_ref[pl.ds(r0, _AHAT_RB), :] = blk.astype(jnp.bfloat16)
            return carry

        jax.lax.fori_loop(0, n // _AHAT_RB, build, 0)
        # f32 carry initialised from the bf16 input features.
        out_ref[...] = feat_ref[...].astype(out_ref.dtype)

    # One propagation hop; the f32 carry limits per-hop rounding to the
    # bf16 MXU operands.
    out_ref[...] = jnp.dot(ahat_ref[...], out_ref[...].astype(jnp.bfloat16),
                           preferred_element_type=jnp.float32)


# ---------------------------------------------------------------------------
# Static planning helpers
# ---------------------------------------------------------------------------
def _round_up(x, m):
    return ((x + m - 1) // m) * m


def _col_vec_vmem(rows):
    # An (rows, 1) f32 array in VMEM pads the lane dim to 128 -> 512 B / 8 rows.
    return _round_up(rows, 8) * 512


def _tiled_vmem_bytes(Np, tn, tm, tk, feat_full):
    a_in = 2 * tm * tk + tm * tk * (4 + 2)             # int8 dbl-buf + cast temps
    feat = (2 * Np * tn * 2) if feat_full else (2 * tk * tn * 2)
    f_tmp = tk * tn * (4 + 2)                          # f32 scale + bf16 cast temps
    out_b = 2 * tm * tn * 2
    acc_b = tm * tn * 4 * 2                            # accumulator + dot result
    norm_b = 2 * _col_vec_vmem(tm) + 2 * _col_vec_vmem(tk)
    return a_in + feat + f_tmp + out_b + acc_b + norm_b


def _fused_vmem_bytes(Np, tnf):
    a_in = 2 * Np * Np                                 # int8 input (double-buffered)
    a_hat = Np * Np * 2                                # bf16 scratch (single copy)
    build_tmp = _AHAT_RB * Np * (4 + 2)                # row-chunk f32 + bf16 temps
    feat = 2 * Np * tnf * 2
    carry = 2 * Np * tnf * 4
    step_tmp = Np * tnf * (2 + 4)                      # bf16 carry cast + dot result
    norm_b = 2 * _col_vec_vmem(Np) + 2 * _round_up(Np, 128) * 32
    return a_in + a_hat + build_tmp + feat + carry + step_tmp + norm_b


def _tiled_plan(Np, Dp, budget):
    """Pick (tm, tk, tn, feat_full) for the streaming path."""
    tn = Dp                                            # j axis collapses when D fits
    if Dp > 2048:
        for t in (2048, 1024, 512, 256, 128):
            if Dp % t == 0:
                tn = t
                break
    cand = [t for t in (1024, 512, 256, 128) if Np % t == 0]
    cand_m = [t for t in cand if Np // t >= 2] or cand  # >=2 i-blocks -> megacore
    for feat_full in (True, False):                     # prefer feat resident in VMEM
        for tm in cand_m:
            for tk in cand:
                est = _tiled_vmem_bytes(Np, tn, tm, tk, feat_full)
                if est * 5 // 4 + (8 << 20) <= budget:
                    return tm, tk, tn, feat_full, est
    tm = tk = cand[-1]
    return tm, tk, tn, False, _tiled_vmem_bytes(Np, tn, tm, tk, False)


# ---------------------------------------------------------------------------
# Wrapper
# ---------------------------------------------------------------------------
@functools.partial(jax.jit, static_argnames=("k", "fuse_hops"))
def sgc_agg(adj, feat, *, k=1, fuse_hops=None):
    """SGC_Agg.forward on a dense adjacency matrix.

    adj : (N, N) float adjacency, adj[dst, src] = 1.0 iff edge src -> dst
    feat: (N, D) float node features
    k   : number of propagation hops (static; module default 1)
    """
    N, D = feat.shape
    assert adj.shape == (N, N)
    out_dtype = feat.dtype

    if k == 0:
        return feat

    # Pad to (8,128)-friendly, lane-dense shapes.  Padded rows/cols are zero in
    # A and feat, contribute nothing, and are sliced off at the end.
    Np = _round_up(max(N, 256), 256)
    Dp = _round_up(max(D, 128), 128)

    adj_p = jnp.pad(adj.astype(jnp.float32), ((0, Np - N), (0, Np - N)))
    feat_p = jnp.pad(feat.astype(jnp.float32), ((0, Np - N), (0, Dp - D)))

    # in_degrees().float().clamp(min=1) ** -0.5 (padded rows get degree 1).
    degs = jnp.maximum(jnp.sum(adj_p, axis=1), 1.0)
    norm = jnp.power(degs, -0.5).astype(jnp.float32)
    norm_col = norm.reshape(Np, 1)
    norm_row = norm.reshape(1, Np)

    # Raw 0/1 adjacency in int8: 1 B/elem of HBM traffic; normalization is
    # applied inside the kernels (no host-side N^2 A_hat pass).
    a_i8 = adj_p.astype(jnp.int8)
    feat_b = feat_p.astype(jnp.bfloat16)

    budget = int(_VMEM_BUDGET)

    # ---------------- fused path: A resident in VMEM for all k hops ---------
    jb = 2 if Dp % 256 == 0 else 1          # >=2 column blocks -> v7x megacore
    tnf = Dp // jb
    fused_est = _fused_vmem_bytes(Np, tnf)
    if fuse_hops is None:
        fuse_hops = (k > 1) and (fused_est * 5 // 4 + (8 << 20) <= budget)

    if fuse_hops:
        out = pl.pallas_call(
            _sgc_fused_kernel,
            out_shape=jax.ShapeDtypeStruct((Np, Dp), jnp.float32),
            grid_spec=pltpu.PrefetchScalarGridSpec(
                num_scalar_prefetch=0,
                grid=(jb, k),
                in_specs=[
                    pl.BlockSpec((Np, Np), lambda j, s: (0, 0)),   # A (int8, resident)
                    pl.BlockSpec((Np, 1), lambda j, s: (0, 0)),    # norm column
                    pl.BlockSpec((1, Np), lambda j, s: (0, 0)),    # norm row
                    pl.BlockSpec((Np, tnf), lambda j, s: (0, j)),  # feat columns
                ],
                out_specs=pl.BlockSpec((Np, tnf), lambda j, s: (0, j)),
                scratch_shapes=[pltpu.VMEM((Np, Np), jnp.bfloat16)],
            ),
            compiler_params=pltpu.CompilerParams(
                dimension_semantics=("parallel", "arbitrary"),
                vmem_limit_bytes=budget),
            cost_estimate=pl.CostEstimate(
                flops=2 * Np * Np * Dp * k,
                transcendentals=0,
                bytes_accessed=Np * Np + Np * Dp * (2 + 4)),
        )(a_i8, norm_col, norm_row, feat_b)
        return out[:N, :D].astype(out_dtype)

    # ---------------- tiled streaming path (one pallas_call per hop) --------
    tm, tk, tn, feat_full, _ = _tiled_plan(Np, Dp, budget)

    feat_spec = (pl.BlockSpec((Np, tn), lambda i, j, kk: (0, j)) if feat_full
                 else pl.BlockSpec((tk, tn), lambda i, j, kk: (kk, j)))

    hop = pl.pallas_call(
        functools.partial(_sgc_hop_kernel, tk=tk, feat_full=feat_full),
        out_shape=jax.ShapeDtypeStruct((Np, Dp), jnp.bfloat16),
        grid_spec=pltpu.PrefetchScalarGridSpec(
            num_scalar_prefetch=0,
            grid=(Np // tm, Dp // tn, Np // tk),
            in_specs=[
                pl.BlockSpec((tm, tk), lambda i, j, kk: (i, kk)),  # A tile (int8)
                pl.BlockSpec((tk, 1), lambda i, j, kk: (kk, 0)),   # norm (src side)
                pl.BlockSpec((tm, 1), lambda i, j, kk: (i, 0)),    # norm (dst side)
                feat_spec,
            ],
            out_specs=pl.BlockSpec((tm, tn), lambda i, j, kk: (i, j)),
            scratch_shapes=[pltpu.VMEM((tm, tn), jnp.float32)],
        ),
        compiler_params=pltpu.CompilerParams(
            dimension_semantics=("parallel", "parallel", "arbitrary"),
            vmem_limit_bytes=budget),
        cost_estimate=pl.CostEstimate(
            flops=2 * Np * Np * Dp,
            transcendentals=0,
            bytes_accessed=(Dp // tn) * Np * Np
                           + (Np * Dp * 2 if feat_full
                              else (Np // tm) * Np * Dp * 2)
                           + Np * Dp * 2),
    )

    out = feat_b
    for _ in range(k):   # k is a small static int (module default k=1)
        out = hop(a_i8, norm_col, norm_col, out)
    return out[:N, :D].astype(out_dtype)


# ---------------------------------------------------------------------------
# Pure-JAX reference (f32)
# ---------------------------------------------------------------------------
def _reference_sgc(adj, feat, k):
    degs = jnp.maximum(jnp.sum(adj, axis=1), 1.0)
    norm = jnp.power(degs, -0.5).reshape(-1, 1)
    for _ in range(k):
        feat = feat * norm
        feat = adj @ feat
        feat = feat * norm
    return feat


if __name__ == "__main__":
    N, D, K = 1024, 256, 2

    key = jax.random.PRNGKey(0)
    k_adj, k_feat, k_adj2, k_feat2 = jax.random.split(key, 4)

    # Deterministic random directed graph (~5% density) + self-loops so that
    # no node has in-degree 0 (mirrors the DGLError / add_self_loop guidance).
    adj = (jax.random.uniform(k_adj, (N, N)) < 0.05).astype(jnp.float32)
    adj = jnp.maximum(adj, jnp.eye(N, dtype=jnp.float32))
    feat = jax.random.normal(k_feat, (N, D), dtype=jnp.float32)

    ref = _reference_sgc(adj, feat, K)

    # Tiled streaming path (blocked matmul, in-kernel normalization, f32 acc).
    out_tiled = jax.block_until_ready(sgc_agg(adj, feat, k=K, fuse_hops=False))
    # Fused path (int8 A resident in VMEM, all K hops in one kernel, f32 carry).
    out_fused = jax.block_until_ready(sgc_agg(adj, feat, k=K, fuse_hops=True))

    assert out_tiled.shape == (N, D) and out_tiled.dtype == feat.dtype
    assert out_fused.shape == (N, D) and out_fused.dtype == feat.dtype
    # bf16 MXU operands with f32 accumulation -> loose tolerance vs f32 ref.
    assert jnp.allclose(out_tiled, ref, atol=3e-2, rtol=3e-2)
    assert jnp.allclose(out_fused, ref, atol=3e-2, rtol=3e-2)

    # Non-128-aligned shapes exercise the zero-padding path (k = 1 default).
    N2, D2 = 500, 200
    adj2 = (jax.random.uniform(k_adj2, (N2, N2)) < 0.1).astype(jnp.float32)
    adj2 = jnp.maximum(adj2, jnp.eye(N2, dtype=jnp.float32))
    feat2 = jax.random.normal(k_feat2, (N2, D2), dtype=jnp.float32)
    ref2 = _reference_sgc(adj2, feat2, 1)
    out2 = jax.block_until_ready(sgc_agg(adj2, feat2, k=1))
    assert out2.shape == (N2, D2) and out2.dtype == feat2.dtype
    assert jnp.allclose(out2, ref2, atol=3e-2, rtol=3e-2)

    print("KERNEL_OK")
</pallas_src>

<mosaic_0001>
module attributes {stable_mosaic.version = 11 : i64} {
  func.func @_sgc_hop_kernel(%arg0: i32, %arg1: i32, %arg2: i32, %arg3: memref<512x1024xi8, #tpu.memory_space<vmem>>, %arg4: memref<1024x1xf32, #tpu.memory_space<vmem>>, %arg5: memref<512x1xf32, #tpu.memory_space<vmem>>, %arg6: memref<1024x256xbf16, #tpu.memory_space<vmem>>, %arg7: memref<512x256xbf16, #tpu.memory_space<vmem>>, %arg8: memref<512x256xf32, #tpu.memory_space<vmem>>) attributes {dimension_semantics = [#tpu.dimension_semantics<parallel>, #tpu.dimension_semantics<parallel>, #tpu.dimension_semantics<arbitrary>], iteration_bounds = array<i64: 2, 1, 1>, scalar_prefetch = 0 : i64, scratch_operands = 1 : i64, tpu.core_type = #tpu.core_type<tc>, window_params = [{transform_indices = @transform_0, window_bounds = array<i64: 512, 1024>}, {transform_indices = @transform_1, window_bounds = array<i64: 1024, 1>}, {transform_indices = @transform_2, window_bounds = array<i64: 512, 1>}, {transform_indices = @transform_3, window_bounds = array<i64: 1024, 256>}, {transform_indices = @transform_4, window_bounds = array<i64: 512, 256>}]} {
    %c0_i32 = arith.constant 0 : i32
    %0 = arith.cmpi eq, %arg2, %c0_i32 : i32
    %1 = arith.extui %0 : i1 to i32
    %c0_i32_0 = arith.constant 0 : i32
    %2 = arith.cmpi ne, %1, %c0_i32_0 : i32
    scf.if %2 {
      %cst_11 = arith.constant 0.000000e+00 : f32
      %22 = vector.broadcast %cst_11 : f32 to vector<512x256xf32>
      %c0_12 = arith.constant 0 : index
      %c0_13 = arith.constant 0 : index
      %23 = vector.load %arg8[%c0_12, %c0_13] : memref<512x256xf32, #tpu.memory_space<vmem>>, vector<512x256xf32>
      tpu.vector_store %arg8[%c0_12, %c0_13], %22 {strides = array<i32>} : memref<512x256xf32, #tpu.memory_space<vmem>>, vector<512x256xf32>,
    } else {
    }
    %c1024_i32 = arith.constant 1024 : i32
    %3 = arith.muli %arg2, %c1024_i32 : i32
    %4 = tpu.assume_multiple %3, 1024 : i32
    %5 = arith.index_cast %4 : i32 to index
    %c0 = arith.constant 0 : index
    %6 = vector.load %arg6[%5, %c0] : memref<1024x256xbf16, #tpu.memory_space<vmem>>, vector<1024x256xbf16>
    %7 = arith.extf %6 : vector<1024x256xbf16> to vector<1024x256xf32>
    %c0_1 = arith.constant 0 : index
    %c0_2 = arith.constant 0 : index
    %8 = vector.load %arg4[%c0_1, %c0_2] : memref<1024x1xf32, #tpu.memory_space<vmem>>, vector<1024x1xf32>
    %9 = vector.broadcast %8 : vector<1024x1xf32> to vector<1024x256xf32>
    %10 = arith.mulf %7, %9 : vector<1024x256xf32>
    %11 = arith.truncf %10 : vector<1024x256xf32> to vector<1024x256xbf16>
    %c0_3 = arith.constant 0 : index
    %c0_4 = arith.constant 0 : index
    %12 = vector.load %arg3[%c0_3, %c0_4] : memref<512x1024xi8, #tpu.memory_space<vmem>>, vector<512x1024xi8>
    %13 = arith.sitofp %12 : vector<512x1024xi8> to vector<512x1024xf32>
    %14 = arith.truncf %13 : vector<512x1024xf32> to vector<512x1024xbf16>
    %c0_5 = arith.constant 0 : index
    %c0_6 = arith.constant 0 : index
    %15 = vector.load %arg8[%c0_5, %c0_6] : memref<512x256xf32, #tpu.memory_space<vmem>>, vector<512x256xf32>
    %cst = arith.constant dense<0.000000e+00> : vector<512x256xf32>
    %16 = tpu.matmul %14, %11, %cst {dimension_numbers = #tpu.dot_dimension_numbers<[1], [0], [0], [1], [0, 0, 1, 1], [], []>} : vector<512x1024xbf16>, vector<1024x256xbf16>, vector<512x256xf32> -> vector<512x256xf32>
    %17 = arith.addf %15, %16 : vector<512x256xf32>
    %c0_7 = arith.constant 0 : index
    %c0_8 = arith.constant 0 : index
    %18 = vector.load %arg8[%c0_7, %c0_8] : memref<512x256xf32, #tpu.memory_space<vmem>>, vector<512x256xf32>
    tpu.vector_store %arg8[%c0_7, %c0_8], %17 {strides = array<i32>} : memref<512x256xf32, #tpu.memory_space<vmem>>, vector<512x256xf32>,
    %c0_i32_9 = arith.constant 0 : i32
    %19 = arith.cmpi eq, %arg2, %c0_i32_9 : i32
    %20 = arith.extui %19 : i1 to i32
    %c0_i32_10 = arith.constant 0 : i32
    %21 = arith.cmpi ne, %20, %c0_i32_10 : i32
    scf.if %21 {
      %c0_11 = arith.constant 0 : index
      %c0_12 = arith.constant 0 : index
      %22 = vector.load %arg8[%c0_11, %c0_12] : memref<512x256xf32, #tpu.memory_space<vmem>>, vector<512x256xf32>
      %c0_13 = arith.constant 0 : index
      %c0_14 = arith.constant 0 : index
      %23 = vector.load %arg5[%c0_13, %c0_14] : memref<512x1xf32, #tpu.memory_space<vmem>>, vector<512x1xf32>
      %24 = vector.broadcast %23 : vector<512x1xf32> to vector<512x256xf32>
      %25 = arith.mulf %22, %24 : vector<512x256xf32>
      %26 = arith.truncf %25 : vector<512x256xf32> to vector<512x256xbf16>
      %c0_15 = arith.constant 0 : index
      %c0_16 = arith.constant 0 : index
      %27 = vector.load %arg7[%c0_15, %c0_16] : memref<512x256xbf16, #tpu.memory_space<vmem>>, vector<512x256xbf16>
      tpu.vector_store %arg7[%c0_15, %c0_16], %26 {strides = array<i32>} : memref<512x256xbf16, #tpu.memory_space<vmem>>, vector<512x256xbf16>,
    } else {
    }
    return
  }
  func.func @transform_0(%arg0: i32, %arg1: i32, %arg2: i32) -> (i32, i32) {
    %c0_i32 = arith.constant 0 : i32
    return %arg0, %arg2 : i32, i32
  }
  func.func @transform_1(%arg0: i32, %arg1: i32, %arg2: i32) -> (i32, i32) {
    %c0_i32 = arith.constant 0 : i32
    %c0_i32_0 = arith.constant 0 : i32
    return %arg2, %c0_i32 : i32, i32
  }
  func.func @transform_2(%arg0: i32, %arg1: i32, %arg2: i32) -> (i32, i32) {
    %c0_i32 = arith.constant 0 : i32
    %c0_i32_0 = arith.constant 0 : i32
    return %arg0, %c0_i32 : i32, i32
  }
  func.func @transform_3(%arg0: i32, %arg1: i32, %arg2: i32) -> (i32, i32) {
    %c0_i32 = arith.constant 0 : i32
    %c0_i32_0 = arith.constant 0 : i32
    return %c0_i32, %arg1 : i32, i32
  }
  func.func @transform_4(%arg0: i32, %arg1: i32, %arg2: i32) -> (i32, i32) {
    %c0_i32 = arith.constant 0 : i32
    return %arg0, %arg1 : i32, i32
  }
}

</mosaic_0001>

<bundles_post_ra>
// kernel: sgc_agg.2
= control target key start
LH: loop header
LB: loop body
LE: loop exit
PB: predicated region body
PF: predicated region fallthrough
CT: control target
= control target key end

     0   :  { %s6010_s15 = smov 0   ;;  %s6012_s16 = smov 0   ;;  %s7223_s0 = inlined_call_operand.vmem [shape: s8[1024,1024], index: 0, kind: input, shape index: {}]   ;;  %s7224_s1 = inlined_call_operand.vmem [shape: f32[1024,1], index: 1, kind: input, shape index: {}, may-alias: {1,2}]   ;;  %s7225_s2 = inlined_call_operand.vmem [shape: f32[1024,1], index: 2, kind: input, shape index: {}, may-alias: {1,2}]   ;;  %s7226_s3 = inlined_call_operand.vmem [shape: bf16[1024,256], index: 3, kind: input, shape index: {}]   ;;  %s7227_s4 = inlined_call_operand.vmem [shape: bf16[1024,256], index: 4, kind: output, shape index: {}]  }
   0x1   :  { %s6014_s17 = smov 0  }
   0x2 LB: > { %s33_s18 = sadd.s32 1, %s5978_s16  ;;  %p5406_p0 = scmp.ge.s32.totalorder %s5982_s17, 1  ;;  %s5982_s17 = sphi %s6014_s17, %s14_s17   ;;  %s5978_s16 = sphi %s6012_s16, %s7230_s16   ;;  %s5974_s15 = sphi %s6010_s15, %s7229_s15  }
   0x3   : > { %p35_p1 = scmp.ge.s32.totalorder %s33_s18, 2  ;;  %p225_p2 = scmp.lt.s32.totalorder %s5982_s17, 3 }
   0x5   : > { %s7232_s18 = smov (%p35_p1, %s33_s18), 0  ;;  %p226_p3 = pnand %p5406_p0, %p225_p2 }
   0x6   : > { %v904_v0 = vld [vmem:[%s7224_s1 + $0x200] sm:$0xff] (!%p226_p3)  ;;  %v5984_v2 = vmov (!%p226_p3), 0   ;;  %v905_v3 = vld [vmem:[%s7224_s1 + $0x208] sm:$0xff] (!%p226_p3)  ;;  %v843_v5 = vld [vmem:[%s7224_s1 + $0x18] sm:$0xff] (!%p226_p3)  ;;  %s5407_s7 = sshll.u32 (!%p226_p3), %s5974_s15, 4 }
   0x7   : > { %229 = sbr.rel (%p226_p3) target bundleno = 996 (0x3e4), region = 36  ;;  %v840_v1 = vld [vmem:[%s7224_s1] sm:$0xff] (!%p226_p3)  ;;  %5957 = vset.pattern.permute.xlu1 (!%p226_p3), %v5984_v2  ;;  %5956 = vset.pattern.permute.xlu0 (!%p226_p3), %v5984_v2  ;;  %v841_v4 = vld [vmem:[%s7224_s1 + $0x8] sm:$0xff] (!%p226_p3)  ;;  %v842_v6 = vld [vmem:[%s7224_s1 + $0x10] sm:$0xff] (!%p226_p3)  ;;  %p278_p4 = scmp.lt.s32.totalorder (!%p226_p3), %s5407_s7, 31 }
   0x8   : > { %1290 = vperm.xlu1 (!%p226_p3), %5957, %v904_v0   ;;  %970 = vperm.xlu0 (!%p226_p3), %5956, %v840_v1   ;;  %v907_v7 = vld [vmem:[%s7224_s1 + $0x218] sm:$0xff] (!%p226_p3)  ;;  %v906_v8 = vld [vmem:[%s7224_s1 + $0x210] sm:$0xff] (!%p226_p3)  ;;  %v845_v9 = vld [vmem:[%s7224_s1 + $0x28] sm:$0xff] (!%p226_p3) }
   0x9   : > { %v844_v10 = vld [vmem:[%s7224_s1 + $0x20] sm:$0xff] (!%p226_p3)  ;;  %v909_v11 = vld [vmem:[%s7224_s1 + $0x228] sm:$0xff] (!%p226_p3)  ;;  %v847_v13 = vld [vmem:[%s7224_s1 + $0x38] sm:$0xff] (!%p226_p3) }
   0xa   : > { %v908_v12 = vld [vmem:[%s7224_s1 + $0x220] sm:$0xff] (!%p226_p3)  ;;  %v846_v14 = vld [vmem:[%s7224_s1 + $0x30] sm:$0xff] (!%p226_p3)  ;;  %v911_v15 = vld [vmem:[%s7224_s1 + $0x238] sm:$0xff] (!%p226_p3) }
   0xb   : > { %v910_v16 = vld [vmem:[%s7224_s1 + $0x230] sm:$0xff] (!%p226_p3)  ;;  %v849_v17 = vld [vmem:[%s7224_s1 + $0x48] sm:$0xff] (!%p226_p3)  ;;  %v848_v18 = vld [vmem:[%s7224_s1 + $0x40] sm:$0xff] (!%p226_p3) }
   0xc   : > { %1295 = vperm.xlu1 (!%p226_p3), %5957, %v905_v3   ;;  %975 = vperm.xlu0 (!%p226_p3), %5956, %v841_v4   ;;  %v913_v19 = vld [vmem:[%s7224_s1 + $0x248] sm:$0xff] (!%p226_p3)  ;;  %v912_v20 = vld [vmem:[%s7224_s1 + $0x240] sm:$0xff] (!%p226_p3)  ;;  %v851_v21 = vld [vmem:[%s7224_s1 + $0x58] sm:$0xff] (!%p226_p3) }
   0xd   : > { %v850_v22 = vld [vmem:[%s7224_s1 + $0x50] sm:$0xff] (!%p226_p3)  ;;  %v915_v23 = vld [vmem:[%s7224_s1 + $0x258] sm:$0xff] (!%p226_p3)  ;;  %v853_v25 = vld [vmem:[%s7224_s1 + $0x68] sm:$0xff] (!%p226_p3) }
   0xe   : > { %v914_v24 = vld [vmem:[%s7224_s1 + $0x250] sm:$0xff]  ;;  %v852_v26 = vld [vmem:[%s7224_s1 + $0x60] sm:$0xff]  ;;  %v917_v27 = vld [vmem:[%s7224_s1 + $0x268] sm:$0xff]  ;;  %s7234_s7 = smov (!%p278_p4, %s5407_s7), 31 }
   0xf   : > { %v916_v28 = vld [vmem:[%s7224_s1 + $0x260] sm:$0xff]  ;;  %v855_v29 = vld [vmem:[%s7224_s1 + $0x78] sm:$0xff]  ;;  %v854_v30 = vld [vmem:[%s7224_s1 + $0x70] sm:$0xff]  ;;  %s5481_s22 = sshll.u32 %s7234_s7, 6 }
  0x10   : > { %985 = vperm.xlu1 %5957, %v843_v5   ;;  %980 = vperm.xlu0 %5956, %v842_v6   ;;  %v919_v31 = vld [vmem:[%s7224_s1 + $0x278] sm:$0xff]  ;;  %v918_v32 = vld [vmem:[%s7224_s1 + $0x270] sm:$0xff]  ;;  %v857_v33 = vld [vmem:[%s7224_s1 + $0x88] sm:$0xff]  ;;  %s6244_s5 = scalar_lea.vmem %s7223_s0, %s5481_s22  ;;  %s5410_s22 = sshll.u32 %s5974_s15, 6 }
  0x11   : > { %v856_v34 = vld [vmem:[%s7224_s1 + $0x80] sm:$0xff]  ;;  %v921_v35 = vld [vmem:[%s7224_s1 + $0x288] sm:$0xff]  ;;  %v859_v37 = vld [vmem:[%s7224_s1 + $0x98] sm:$0xff]  ;;  %p6593_p5 = scmp.lt.s32.totalorder %s5410_s22, 127 }
  0x12   : > { %v920_v36 = vld [vmem:[%s7224_s1 + $0x280] sm:$0xff]  ;;  %v858_v38 = vld [vmem:[%s7224_s1 + $0x90] sm:$0xff]  ;;  %v923_v39 = vld [vmem:[%s7224_s1 + $0x298] sm:$0xff] }
  0x13   : > { %v922_v40 = vld [vmem:[%s7224_s1 + $0x290] sm:$0xff]  ;;  %v861_v41 = vld [vmem:[%s7224_s1 + $0xa8] sm:$0xff]  ;;  %v860_v42 = vld [vmem:[%s7224_s1 + $0xa0] sm:$0xff]  ;;  %s7236_s22 = smov (!%p6593_p5, %s5410_s22), 127 }
  0x14   : > { %1305 = vperm.xlu1 %5957, %v907_v7   ;;  %1300 = vperm.xlu0 %5956, %v906_v8   ;;  %v925_v43 = vld [vmem:[%s7224_s1 + $0x2a8] sm:$0xff]  ;;  %v924_v44 = vld [vmem:[%s7224_s1 + $0x2a0] sm:$0xff]  ;;  %v863_v45 = vld [vmem:[%s7224_s1 + $0xb8] sm:$0xff]  ;;  %s5411_s25 = sshll.u32 %s7236_s22, 3 }
  0x15   : > { %v862_v46 = vld [vmem:[%s7224_s1 + $0xb0] sm:$0xff]  ;;  %v927_v47 = vld [vmem:[%s7224_s1 + $0x2b8] sm:$0xff]  ;;  %v865_v49 = vld [vmem:[%s7224_s1 + $0xc8] sm:$0xff]  ;;  %s6639_s7 = scalar_lea.vmem %s7225_s2, %s5411_s25  ;;  %s7143_s23 = scalar_lea.vmem %s7227_s4, %s5411_s25 }
  0x16   : > { %v926_v48 = vld [vmem:[%s7224_s1 + $0x2b0] sm:$0xff]  ;;  %v864_v50 = vld [vmem:[%s7224_s1 + $0xc0] sm:$0xff]  ;;  %v929_v51 = vld [vmem:[%s7224_s1 + $0x2c8] sm:$0xff] }
  0x17   : > { %v928_v52 = vld [vmem:[%s7224_s1 + $0x2c0] sm:$0xff]  ;;  %v867_v53 = vld [vmem:[%s7224_s1 + $0xd8] sm:$0xff]  ;;  %v866_v54 = vld [vmem:[%s7224_s1 + $0xd0] sm:$0xff] }
  0x18   : > { %995 = vperm.xlu1 %5957, %v845_v9   ;;  %990 = vperm.xlu0 %5956, %v844_v10   ;;  %v931_v55 = vld [vmem:[%s7224_s1 + $0x2d8] sm:$0xff]  ;;  %v930_v56 = vld [vmem:[%s7224_s1 + $0x2d0] sm:$0xff]  ;;  %v869_v57 = vld [vmem:[%s7224_s1 + $0xe8] sm:$0xff] }
  0x19   : > { %v868_v58 = vld [vmem:[%s7224_s1 + $0xe0] sm:$0xff]  ;;  %v933_v59 = vld [vmem:[%s7224_s1 + $0x2e8] sm:$0xff]  ;;  %v871_v61 = vld [vmem:[%s7224_s1 + $0xf8] sm:$0xff] }
  0x1a   : > { %v932_v60 = vld [vmem:[%s7224_s1 + $0x2e0] sm:$0xff]  ;;  %v870_v62 = vld [vmem:[%s7224_s1 + $0xf0] sm:$0xff]  ;;  %v935_v63 = vld [vmem:[%s7224_s1 + $0x2f8] sm:$0xff] }
  0x1b   : > { %v934_v0 = vld [vmem:[%s7224_s1 + $0x2f0] sm:$0xff]  ;;  %v873_v1 = vld [vmem:[%s7224_s1 + $0x108] sm:$0xff]  ;;  %v456_v2 = vld [vmem:[%s7226_s3] sm:$0xff] }
  0x1c   : > { %1315 = vperm.xlu1 %5957, %v909_v11   ;;  %1310 = vperm.xlu0 %5956, %v908_v12   ;;  %v520_v3 = vld [vmem:[%s7226_s3 + $0x200] sm:$0xff]  ;;  %v457_v5 = vld [vmem:[%s7226_s3 + $0x8] sm:$0xff]  ;;  %v459_v10 = vld [vmem:[%s7226_s3 + $0x18] sm:$0xff]  ;;  %v585_v12 = vunpack.c.h.bf16 %v456_v2 }
  0x1d   : > { %v872_v4 = vld [vmem:[%s7224_s1 + $0x100] sm:$0xff]  ;;  %v521_v6 = vld [vmem:[%s7226_s3 + $0x208] sm:$0xff]  ;;  %v458_v11 = vld [vmem:[%s7226_s3 + $0x10] sm:$0xff] }
  0x1e   : > { %v1993_v7 = vld [vmem:[%s6244_s5 + $0x8] sm:$0xff] }
  0x20   : > { %1005 = vperm.xlu1 %5957, %v847_v13   ;;  %1000 = vperm.xlu0 %5956, %v846_v14   ;;  %v713_v13 = vunpack.c.h.bf16 %v520_v3  ;;  %v584_v14 = vunpack.c.l.bf16 %v456_v2 }
  0x24   : > { %1325 = vperm.xlu1 %5957, %v911_v15   ;;  %1320 = vperm.xlu0 %5956, %v910_v16   ;;  %v2121_v15 = vunpack.c.l.s8.bf16 %v1993_v7  ;;  %v587_v16 = vunpack.c.h.bf16 %v457_v5 }
  0x26   : > { %2536 = vmatprep.mubr.bf16.mxu1 %v2121_v15 }
  0x28   : > { %1015 = vperm.xlu1 %5957, %v849_v17   ;;  %1010 = vperm.xlu0 %5956, %v848_v18   ;;  %v715_v17 = vunpack.c.h.bf16 %v521_v6  ;;  %v586_v18 = vunpack.c.l.bf16 %v457_v5 }
  0x2c   : > { %1335 = vperm.xlu1 %5957, %v913_v19   ;;  %1330 = vperm.xlu0 %5956, %v912_v20   ;;  %v937_v19 = vld [vmem:[%s7224_s1 + $0x308] sm:$0xff]  ;;  %v936_v20 = vld [vmem:[%s7224_s1 + $0x300] sm:$0xff] }
  0x30   : > { %1025 = vperm.xlu1 %5957, %v851_v21   ;;  %1020 = vperm.xlu0 %5956, %v850_v22   ;;  %v712_v21 = vunpack.c.l.bf16 %v520_v3  ;;  %v714_v22 = vunpack.c.l.bf16 %v521_v6 }
  0x34   : > { %1345 = vperm.xlu1 %5957, %v915_v23   ;;  %1340 = vperm.xlu0 %5956, %v914_v24   ;;  %v590_v23 = vunpack.c.l.bf16 %v459_v10  ;;  %v591_v24 = vunpack.c.h.bf16 %v459_v10  ;;  %v524_v10 = vld [vmem:[%s7226_s3 + $0x220] sm:$0xff] }
  0x38   : > { %1035 = vperm.xlu1 %5957, %v853_v25   ;;  %1030 = vperm.xlu0 %5956, %v852_v26   ;;  %v588_v25 = vunpack.c.l.bf16 %v458_v11  ;;  %v1997_v26 = vld [vmem:[%s6244_s5 + $0x28] sm:$0xff] }
  0x3c   : > { %1355 = vperm.xlu1 %5957, %v917_v27   ;;  %1350 = vperm.xlu0 %5956, %v916_v28  }
  0x40   : > { %1045 = vperm.xlu1 %5957, %v855_v29   ;;  %1040 = vperm.xlu0 %5956, %v854_v30  }
  0x44   : > { %1365 = vperm.xlu1 %5957, %v919_v31   ;;  %1360 = vperm.xlu0 %5956, %v918_v32   ;;  %v523_v32 = vld [vmem:[%s7226_s3 + $0x218] sm:$0xff] }
  0x48   : > { %1055 = vperm.xlu1 %5957, %v857_v33   ;;  %1050 = vperm.xlu0 %5956, %v856_v34   ;;  %v2125_v33 = vunpack.c.l.s8.bf16 %v1997_v26  ;;  %v589_v34 = vunpack.c.h.bf16 %v458_v11  ;;  %v877_v11 = vld [vmem:[%s7224_s1 + $0x128] sm:$0xff]  ;;  %v462_v26 = vld [vmem:[%s7226_s3 + $0x30] sm:$0xff] }
  0x4a   : > { %3242 = vmatprep.mubr.bf16.mxu0 %v2125_v33 }
  0x4c   : > { %1375 = vperm.xlu1 %5957, %v921_v35   ;;  %1370 = vperm.xlu0 %5956, %v920_v36  }
  0x50   : > { %1065 = vperm.xlu1 %5957, %v859_v37   ;;  %1060 = vperm.xlu0 %5956, %v858_v38   ;;  %v522_v38 = vld [vmem:[%s7226_s3 + $0x210] sm:$0xff] }
  0x54   : > { %1385 = vperm.xlu1 %5957, %v923_v39   ;;  %1380 = vperm.xlu0 %5956, %v922_v40   ;;  %v875_v39 = vld [vmem:[%s7224_s1 + $0x118] sm:$0xff] }
  0x58   : > { %1075 = vperm.xlu1 %5957, %v861_v41   ;;  %1070 = vperm.xlu0 %5956, %v860_v42   ;;  %v874_v42 = vld [vmem:[%s7224_s1 + $0x110] sm:$0xff] }
  0x5c   : > { %1395 = vperm.xlu1 %5957, %v925_v43   ;;  %1390 = vperm.xlu0 %5956, %v924_v44  }
  0x60   : > { %1085 = vperm.xlu1 %5957, %v863_v45   ;;  %1080 = vperm.xlu0 %5956, %v862_v46   ;;  %v718_v46 = vunpack.c.l.bf16 %v523_v32 }
  0x64   : > { %1405 = vperm.xlu1 %5957, %v927_v47   ;;  %1400 = vperm.xlu0 %5956, %v926_v48  }
  0x68   : > { %1095 = vperm.xlu1 %5957, %v865_v49   ;;  %1090 = vperm.xlu0 %5956, %v864_v50   ;;  %v719_v50 = vunpack.c.h.bf16 %v523_v32 }
  0x6c   : > { %1415 = vperm.xlu1 %5957, %v929_v51   ;;  %1410 = vperm.xlu0 %5956, %v928_v52   ;;  %v716_v51 = vunpack.c.l.bf16 %v522_v38  ;;  %v717_v52 = vunpack.c.h.bf16 %v522_v38 }
  0x70   : > { %1105 = vperm.xlu1 %5957, %v867_v53   ;;  %1100 = vperm.xlu0 %5956, %v866_v54  }
  0x74   : > { %1425 = vperm.xlu1 %5957, %v931_v55   ;;  %1420 = vperm.xlu0 %5956, %v930_v56  }
  0x78   : > { %1115 = vperm.xlu1 %5957, %v869_v57   ;;  %1110 = vperm.xlu0 %5956, %v868_v58   ;;  %v461_v57 = vld [vmem:[%s7226_s3 + $0x28] sm:$0xff]  ;;  %v460_v58 = vld [vmem:[%s7226_s3 + $0x20] sm:$0xff] }
  0x79   : > { %v595_v2 = vunpack.c.h.bf16 %v461_v57  ;;  %v592_v3 = vunpack.c.l.bf16 %v460_v58 }
  0x7c   : > { %1435 = vperm.xlu1 %5957, %v933_v59   ;;  %1430 = vperm.xlu0 %5956, %v932_v60   ;;  %v939_v59 = vld [vmem:[%s7224_s1 + $0x318] sm:$0xff]  ;;  %v938_v60 = vld [vmem:[%s7224_s1 + $0x310] sm:$0xff] }
  0x80   : > { %1125 = vperm.xlu1 %5957, %v871_v61   ;;  %1120 = vperm.xlu0 %5956, %v870_v62  }
  0x84   : > { %1445 = vperm.xlu1 %5957, %v935_v63   ;;  %1440 = vperm.xlu0 %5956, %v934_v0  }
  0x87   : > { %v1291_v8 = vpop.permute.xlu1 %1290  ;;  %v971_v9 = vpop.permute.xlu0 %970 }
  0x88   : > { %1135 = vperm.xlu1 %5957, %v873_v1   ;;  %1130 = vperm.xlu0 %5956, %v872_v4   ;;  %v1609_v29 = vmul.f32 %v971_v9, %v585_v12  ;;  %v1737_v30 = vmul.f32 %v1291_v8, %v713_v13  ;;  %v1608_v31 = vmul.f32 %v971_v9, %v584_v14  ;;  %v594_v1 = vunpack.c.l.bf16 %v461_v57  ;;  %v525_v9 = vld [vmem:[%s7226_s3 + $0x228] sm:$0xff]  ;;  %v876_v12 = vld [vmem:[%s7224_s1 + $0x120] sm:$0xff] }
  0x89   : > { %v1736_v40 = vmul.f32 %v1291_v8, %v712_v21  ;;  %v593_v4 = vunpack.c.h.bf16 %v460_v58  ;;  %v465_v57 = vld [vmem:[%s7226_s3 + $0x48] sm:$0xff]  ;;  %v464_v58 = vld [vmem:[%s7226_s3 + $0x40] sm:$0xff] }
  0x8b   : > { %v1296_v27 = vpop.permute.xlu1 %1295  ;;  %v976_v28 = vpop.permute.xlu0 %975 }
  0x8c   : > { %1455 = vperm.xlu1 %5957, %v937_v19   ;;  %1450 = vperm.xlu0 %5956, %v936_v20   ;;  %v1611_v35 = vmul.f32 %v976_v28, %v587_v16  ;;  %v1739_v36 = vmul.f32 %v1296_v27, %v715_v17  ;;  %v1610_v37 = vmul.f32 %v976_v28, %v586_v18  ;;  %v722_v17 = vunpack.c.l.bf16 %v525_v9  ;;  %v940_v28 = vld [vmem:[%s7224_s1 + $0x320] sm:$0xff] }
  0x8d   : > { %v1738_v41 = vmul.f32 %v1296_v27, %v714_v22  ;;  %v723_v18 = vunpack.c.h.bf16 %v525_v9  ;;  %v720_v19 = vunpack.c.l.bf16 %v524_v10  ;;  %v721_v20 = vunpack.c.h.bf16 %v524_v10  ;;  %v941_v27 = vld [vmem:[%s7224_s1 + $0x328] sm:$0xff]  ;;  %v528_v10 = vld [vmem:[%s7226_s3 + $0x240] sm:$0xff] }
  0x8e   : > { %v1865_v43 = vpack.c.bf16 %v1611_v35, %v1609_v29  ;;  %v1929_v44 = vpack.c.bf16 %v1739_v36, %v1737_v30  ;;  %v1864_v45 = vpack.c.bf16 %v1610_v37, %v1608_v31  ;;  %v596_v35 = vunpack.c.l.bf16 %v462_v26  ;;  %v529_v9 = vld [vmem:[%s7226_s3 + $0x248] sm:$0xff] }
  0x8f   : > { %v986_v47 = vpop.permute.xlu1 %985  ;;  %v981_v48 = vpop.permute.xlu0 %980  ;;  %v1928_v49 = vpack.c.bf16 %v1738_v41, %v1736_v40  ;;  %v597_v36 = vunpack.c.h.bf16 %v462_v26  ;;  %v527_v41 = vld [vmem:[%s7226_s3 + $0x238] sm:$0xff]  ;;  %v466_v26 = vld [vmem:[%s7226_s3 + $0x50] sm:$0xff] }
  0x90   : > { %v1614_v53 = vmul.f32 %v986_v47, %v590_v23  ;;  %v1615_v54 = vmul.f32 %v986_v47, %v591_v24  ;;  %v1612_v55 = vmul.f32 %v981_v48, %v588_v25  ;;  %v1613_v56 = vmul.f32 %v981_v48, %v589_v34  ;;  %1145 = vperm.xlu1 %5957, %v875_v39   ;;  %v463_v25 = vld [vmem:[%s7226_s3 + $0x38] sm:$0xff] }
  0x91   : > { %1140 = vperm.xlu0 %5956, %v874_v42   ;;  %2504 = vmatprep.subr.bf16.mxu1 %v1865_v43  ;;  %v598_v33 = vunpack.c.l.bf16 %v463_v25  ;;  %v599_v34 = vunpack.c.h.bf16 %v463_v25  ;;  %v526_v42 = vld [vmem:[%s7226_s3 + $0x230] sm:$0xff]  ;;  %v879_v43 = vld [vmem:[%s7224_s1 + $0x138] sm:$0xff] }
  0x92   : > { %3210 = vmatprep.subr.bf16.mxu0 %v1929_v44  ;;  %2505 = vmatpush1.bf16.msra.mxu1 %v1864_v45  ;;  %v1867_v61 = vpack.c.bf16 %v1615_v54, %v1613_v56  ;;  %v1866_v62 = vpack.c.bf16 %v1614_v53, %v1612_v55  ;;  %v878_v44 = vld [vmem:[%s7224_s1 + $0x130] sm:$0xff]  ;;  %v467_v25 = vld [vmem:[%s7226_s3 + $0x58] sm:$0xff] }
  0x93   : > { %3211 = vmatpush1.bf16.msra.mxu0 %v1928_v49  ;;  %v1306_v63 = vpop.permute.xlu1 %1305  ;;  %v1301_v0 = vpop.permute.xlu0 %1300  ;;  %v726_v49 = vunpack.c.l.bf16 %v527_v41 }
  0x94   : > { %v1742_v5 = vmul.f32 %v1306_v63, %v718_v46  ;;  %v1743_v6 = vmul.f32 %v1306_v63, %v719_v50  ;;  %v1740_v7 = vmul.f32 %v1301_v0, %v716_v51  ;;  %v1741_v8 = vmul.f32 %v1301_v0, %v717_v52  ;;  %1465 = vperm.xlu1 %5957, %v939_v59   ;;  %v943_v59 = vld [vmem:[%s7224_s1 + $0x338] sm:$0xff] }
  0x95   : > { %1460 = vperm.xlu0 %5956, %v938_v60   ;;  %2506 = vmatprep.subr.bf16.mxu1 %v1867_v61  ;;  %v727_v50 = vunpack.c.h.bf16 %v527_v41  ;;  %v724_v51 = vunpack.c.l.bf16 %v526_v42  ;;  %v725_v52 = vunpack.c.h.bf16 %v526_v42  ;;  %v942_v60 = vld [vmem:[%s7224_s1 + $0x330] sm:$0xff]  ;;  %v531_v41 = vld [vmem:[%s7226_s3 + $0x258] sm:$0xff] }
  0x96   : > { %2507 = vmatpush1.bf16.msra.mxu1 %v1866_v62  ;;  %v1931_v13 = vpack.c.bf16 %v1743_v6, %v1741_v8  ;;  %v1930_v14 = vpack.c.bf16 %v1742_v5, %v1740_v7  ;;  %v530_v42 = vld [vmem:[%s7226_s3 + $0x250] sm:$0xff] }
  0x97   : > { %v996_v15 = vpop.permute.xlu1 %995  ;;  %v991_v16 = vpop.permute.xlu0 %990 }
  0x98   : > { %v1618_v21 = vmul.f32 %v996_v15, %v594_v1  ;;  %v1619_v22 = vmul.f32 %v996_v15, %v595_v2  ;;  %v1616_v23 = vmul.f32 %v991_v16, %v592_v3  ;;  %v1617_v24 = vmul.f32 %v991_v16, %v593_v4  ;;  %1155 = vperm.xlu1 %5957, %v877_v11   ;;  %v881_v11 = vld [vmem:[%s7224_s1 + $0x148] sm:$0xff] }
  0x99   : > { %1150 = vperm.xlu0 %5956, %v876_v12   ;;  %3212 = vmatprep.subr.bf16.mxu0 %v1931_v13  ;;  %v602_v1 = vunpack.c.l.bf16 %v465_v57  ;;  %v603_v2 = vunpack.c.h.bf16 %v465_v57  ;;  %v600_v3 = vunpack.c.l.bf16 %v464_v58  ;;  %v601_v4 = vunpack.c.h.bf16 %v464_v58  ;;  %v880_v12 = vld [vmem:[%s7224_s1 + $0x140] sm:$0xff]  ;;  %v469_v57 = vld [vmem:[%s7226_s3 + $0x68] sm:$0xff] }
  0x9a   : > { %3213 = vmatpush1.bf16.msra.mxu0 %v1930_v14  ;;  %v1869_v29 = vpack.c.bf16 %v1619_v22, %v1617_v24  ;;  %v1868_v30 = vpack.c.bf16 %v1618_v21, %v1616_v23  ;;  %v468_v58 = vld [vmem:[%s7226_s3 + $0x60] sm:$0xff] }
  0x9b   : > { %v1316_v31 = vpop.permute.xlu1 %1315  ;;  %v1311_v32 = vpop.permute.xlu0 %1310 }
  0x9c   : > { %v1746_v37 = vmul.f32 %v1316_v31, %v722_v17  ;;  %v1747_v38 = vmul.f32 %v1316_v31, %v723_v18  ;;  %v1744_v39 = vmul.f32 %v1311_v32, %v720_v19  ;;  %v1745_v40 = vmul.f32 %v1311_v32, %v721_v20  ;;  %1475 = vperm.xlu1 %5957, %v941_v27   ;;  %v945_v27 = vld [vmem:[%s7224_s1 + $0x348] sm:$0xff] }
  0x9d   : > { %1470 = vperm.xlu0 %5956, %v940_v28   ;;  %2508 = vmatprep.subr.bf16.mxu1 %v1869_v29  ;;  %v730_v17 = vunpack.c.l.bf16 %v529_v9  ;;  %v731_v18 = vunpack.c.h.bf16 %v529_v9  ;;  %v728_v19 = vunpack.c.l.bf16 %v528_v10  ;;  %v729_v20 = vunpack.c.h.bf16 %v528_v10  ;;  %v944_v28 = vld [vmem:[%s7224_s1 + $0x340] sm:$0xff]  ;;  %v533_v9 = vld [vmem:[%s7226_s3 + $0x268] sm:$0xff] }
  0x9e   : > { %2509 = vmatpush1.bf16.msra.mxu1 %v1868_v30  ;;  %v1933_v45 = vpack.c.bf16 %v1747_v38, %v1745_v40  ;;  %v1932_v46 = vpack.c.bf16 %v1746_v37, %v1744_v39  ;;  %v532_v10 = vld [vmem:[%s7226_s3 + $0x260] sm:$0xff] }
  0x9f   : > { %v1006_v47 = vpop.permute.xlu1 %1005  ;;  %v1001_v48 = vpop.permute.xlu0 %1000 }
  0xa0   : > { %v1622_v53 = vmul.f32 %v1006_v47, %v598_v33  ;;  %v1623_v54 = vmul.f32 %v1006_v47, %v599_v34  ;;  %v1620_v55 = vmul.f32 %v1001_v48, %v596_v35  ;;  %v1621_v56 = vmul.f32 %v1001_v48, %v597_v36  ;;  %1165 = vperm.xlu1 %5957, %v879_v43   ;;  %v883_v43 = vld [vmem:[%s7224_s1 + $0x158] sm:$0xff] }
  0xa1   : > { %1160 = vperm.xlu0 %5956, %v878_v44   ;;  %3214 = vmatprep.subr.bf16.mxu0 %v1933_v45  ;;  %v606_v33 = vunpack.c.l.bf16 %v467_v25  ;;  %v607_v34 = vunpack.c.h.bf16 %v467_v25  ;;  %v604_v35 = vunpack.c.l.bf16 %v466_v26  ;;  %v605_v36 = vunpack.c.h.bf16 %v466_v26  ;;  %v882_v44 = vld [vmem:[%s7224_s1 + $0x150] sm:$0xff]  ;;  %v471_v25 = vld [vmem:[%s7226_s3 + $0x78] sm:$0xff] }
  0xa2   : > { %3215 = vmatpush1.bf16.msra.mxu0 %v1932_v46  ;;  %v1871_v61 = vpack.c.bf16 %v1623_v54, %v1621_v56  ;;  %v1870_v62 = vpack.c.bf16 %v1622_v53, %v1620_v55  ;;  %v470_v26 = vld [vmem:[%s7226_s3 + $0x70] sm:$0xff] }
  0xa3   : > { %v1326_v63 = vpop.permute.xlu1 %1325  ;;  %v1321_v0 = vpop.permute.xlu0 %1320 }
  0xa4   : > { %v1750_v5 = vmul.f32 %v1326_v63, %v726_v49  ;;  %v1751_v6 = vmul.f32 %v1326_v63, %v727_v50  ;;  %v1748_v7 = vmul.f32 %v1321_v0, %v724_v51  ;;  %v1749_v8 = vmul.f32 %v1321_v0, %v725_v52  ;;  %1485 = vperm.xlu1 %5957, %v943_v59   ;;  %v947_v59 = vld [vmem:[%s7224_s1 + $0x358] sm:$0xff] }
  0xa5   : > { %1480 = vperm.xlu0 %5956, %v942_v60   ;;  %2510 = vmatprep.subr.bf16.mxu1 %v1871_v61  ;;  %v734_v49 = vunpack.c.l.bf16 %v531_v41  ;;  %v735_v50 = vunpack.c.h.bf16 %v531_v41  ;;  %v732_v51 = vunpack.c.l.bf16 %v530_v42  ;;  %v733_v52 = vunpack.c.h.bf16 %v530_v42  ;;  %v946_v60 = vld [vmem:[%s7224_s1 + $0x350] sm:$0xff]  ;;  %v535_v41 = vld [vmem:[%s7226_s3 + $0x278] sm:$0xff] }
  0xa6   : > { %2511 = vmatpush1.bf16.msra.mxu1 %v1870_v62  ;;  %v1935_v13 = vpack.c.bf16 %v1751_v6, %v1749_v8  ;;  %v1934_v14 = vpack.c.bf16 %v1750_v5, %v1748_v7  ;;  %v534_v42 = vld [vmem:[%s7226_s3 + $0x270] sm:$0xff] }
  0xa7   : > { %v1016_v15 = vpop.permute.xlu1 %1015  ;;  %v1011_v16 = vpop.permute.xlu0 %1010 }
  0xa8   : > { %v1626_v21 = vmul.f32 %v1016_v15, %v602_v1  ;;  %v1627_v22 = vmul.f32 %v1016_v15, %v603_v2  ;;  %v1624_v23 = vmul.f32 %v1011_v16, %v600_v3  ;;  %v1625_v24 = vmul.f32 %v1011_v16, %v601_v4  ;;  %1175 = vperm.xlu1 %5957, %v881_v11   ;;  %v885_v11 = vld [vmem:[%s7224_s1 + $0x168] sm:$0xff] }
  0xa9   : > { %1170 = vperm.xlu0 %5956, %v880_v12   ;;  %3216 = vmatprep.subr.bf16.mxu0 %v1935_v13  ;;  %v610_v1 = vunpack.c.l.bf16 %v469_v57  ;;  %v611_v2 = vunpack.c.h.bf16 %v469_v57  ;;  %v608_v3 = vunpack.c.l.bf16 %v468_v58  ;;  %v609_v4 = vunpack.c.h.bf16 %v468_v58  ;;  %v884_v12 = vld [vmem:[%s7224_s1 + $0x160] sm:$0xff]  ;;  %v473_v57 = vld [vmem:[%s7226_s3 + $0x88] sm:$0xff] }
  0xaa   : > { %3217 = vmatpush1.bf16.msra.mxu0 %v1934_v14  ;;  %v1873_v29 = vpack.c.bf16 %v1627_v22, %v1625_v24  ;;  %v1872_v30 = vpack.c.bf16 %v1626_v21, %v1624_v23  ;;  %v472_v58 = vld [vmem:[%s7226_s3 + $0x80] sm:$0xff] }
  0xab   : > { %v1336_v31 = vpop.permute.xlu1 %1335  ;;  %v1331_v32 = vpop.permute.xlu0 %1330 }
  0xac   : > { %v1754_v37 = vmul.f32 %v1336_v31, %v730_v17  ;;  %v1755_v38 = vmul.f32 %v1336_v31, %v731_v18  ;;  %v1752_v39 = vmul.f32 %v1331_v32, %v728_v19  ;;  %v1753_v40 = vmul.f32 %v1331_v32, %v729_v20  ;;  %1495 = vperm.xlu1 %5957, %v945_v27   ;;  %v949_v27 = vld [vmem:[%s7224_s1 + $0x368] sm:$0xff] }
  0xad   : > { %1490 = vperm.xlu0 %5956, %v944_v28   ;;  %2512 = vmatprep.subr.bf16.mxu1 %v1873_v29  ;;  %v738_v17 = vunpack.c.l.bf16 %v533_v9  ;;  %v739_v18 = vunpack.c.h.bf16 %v533_v9  ;;  %v736_v19 = vunpack.c.l.bf16 %v532_v10  ;;  %v737_v20 = vunpack.c.h.bf16 %v532_v10  ;;  %v948_v28 = vld [vmem:[%s7224_s1 + $0x360] sm:$0xff]  ;;  %v537_v9 = vld [vmem:[%s7226_s3 + $0x288] sm:$0xff] }
  0xae   : > { %2513 = vmatpush1.bf16.msra.mxu1 %v1872_v30  ;;  %v1937_v45 = vpack.c.bf16 %v1755_v38, %v1753_v40  ;;  %v1936_v46 = vpack.c.bf16 %v1754_v37, %v1752_v39  ;;  %v536_v10 = vld [vmem:[%s7226_s3 + $0x280] sm:$0xff] }
  0xaf   : > { %v1026_v47 = vpop.permute.xlu1 %1025  ;;  %v1021_v48 = vpop.permute.xlu0 %1020 }
  0xb0   : > { %v1630_v53 = vmul.f32 %v1026_v47, %v606_v33  ;;  %v1631_v54 = vmul.f32 %v1026_v47, %v607_v34  ;;  %v1628_v55 = vmul.f32 %v1021_v48, %v604_v35  ;;  %v1629_v56 = vmul.f32 %v1021_v48, %v605_v36  ;;  %1185 = vperm.xlu1 %5957, %v883_v43   ;;  %v887_v43 = vld [vmem:[%s7224_s1 + $0x178] sm:$0xff] }
  0xb1   : > { %1180 = vperm.xlu0 %5956, %v882_v44   ;;  %3218 = vmatprep.subr.bf16.mxu0 %v1937_v45  ;;  %v614_v33 = vunpack.c.l.bf16 %v471_v25  ;;  %v615_v34 = vunpack.c.h.bf16 %v471_v25  ;;  %v612_v35 = vunpack.c.l.bf16 %v470_v26  ;;  %v613_v36 = vunpack.c.h.bf16 %v470_v26  ;;  %v886_v44 = vld [vmem:[%s7224_s1 + $0x170] sm:$0xff]  ;;  %v475_v25 = vld [vmem:[%s7226_s3 + $0x98] sm:$0xff] }
  0xb2   : > { %3219 = vmatpush1.bf16.msra.mxu0 %v1936_v46  ;;  %v1875_v61 = vpack.c.bf16 %v1631_v54, %v1629_v56  ;;  %v1874_v62 = vpack.c.bf16 %v1630_v53, %v1628_v55  ;;  %v474_v26 = vld [vmem:[%s7226_s3 + $0x90] sm:$0xff] }
  0xb3   : > { %v1346_v63 = vpop.permute.xlu1 %1345  ;;  %v1341_v0 = vpop.permute.xlu0 %1340 }
  0xb4   : > { %v1758_v5 = vmul.f32 %v1346_v63, %v734_v49  ;;  %v1759_v6 = vmul.f32 %v1346_v63, %v735_v50  ;;  %v1756_v7 = vmul.f32 %v1341_v0, %v732_v51  ;;  %v1757_v8 = vmul.f32 %v1341_v0, %v733_v52  ;;  %1505 = vperm.xlu1 %5957, %v947_v59   ;;  %v951_v59 = vld [vmem:[%s7224_s1 + $0x378] sm:$0xff] }
  0xb5   : > { %1500 = vperm.xlu0 %5956, %v946_v60   ;;  %2514 = vmatprep.subr.bf16.mxu1 %v1875_v61  ;;  %v742_v49 = vunpack.c.l.bf16 %v535_v41  ;;  %v743_v50 = vunpack.c.h.bf16 %v535_v41  ;;  %v740_v51 = vunpack.c.l.bf16 %v534_v42  ;;  %v741_v52 = vunpack.c.h.bf16 %v534_v42  ;;  %v950_v60 = vld [vmem:[%s7224_s1 + $0x370] sm:$0xff]  ;;  %v539_v41 = vld [vmem:[%s7226_s3 + $0x298] sm:$0xff] }
  0xb6   : > { %2515 = vmatpush1.bf16.msra.mxu1 %v1874_v62  ;;  %v1939_v13 = vpack.c.bf16 %v1759_v6, %v1757_v8  ;;  %v1938_v14 = vpack.c.bf16 %v1758_v5, %v1756_v7  ;;  %v538_v42 = vld [vmem:[%s7226_s3 + $0x290] sm:$0xff] }
  0xb7   : > { %v1036_v15 = vpop.permute.xlu1 %1035  ;;  %v1031_v16 = vpop.permute.xlu0 %1030 }
  0xb8   : > { %v1634_v21 = vmul.f32 %v1036_v15, %v610_v1  ;;  %v1635_v22 = vmul.f32 %v1036_v15, %v611_v2  ;;  %v1632_v23 = vmul.f32 %v1031_v16, %v608_v3  ;;  %v1633_v24 = vmul.f32 %v1031_v16, %v609_v4  ;;  %1195 = vperm.xlu1 %5957, %v885_v11   ;;  %v889_v11 = vld [vmem:[%s7224_s1 + $0x188] sm:$0xff] }
  0xb9   : > { %1190 = vperm.xlu0 %5956, %v884_v12   ;;  %3220 = vmatprep.subr.bf16.mxu0 %v1939_v13  ;;  %v618_v1 = vunpack.c.l.bf16 %v473_v57  ;;  %v619_v2 = vunpack.c.h.bf16 %v473_v57  ;;  %v616_v3 = vunpack.c.l.bf16 %v472_v58  ;;  %v617_v4 = vunpack.c.h.bf16 %v472_v58  ;;  %v888_v12 = vld [vmem:[%s7224_s1 + $0x180] sm:$0xff]  ;;  %v477_v57 = vld [vmem:[%s7226_s3 + $0xa8] sm:$0xff] }
  0xba   : > { %3221 = vmatpush1.bf16.msra.mxu0 %v1938_v14  ;;  %v1877_v29 = vpack.c.bf16 %v1635_v22, %v1633_v24  ;;  %v1876_v30 = vpack.c.bf16 %v1634_v21, %v1632_v23  ;;  %v476_v58 = vld [vmem:[%s7226_s3 + $0xa0] sm:$0xff] }
  0xbb   : > { %v1356_v31 = vpop.permute.xlu1 %1355  ;;  %v1351_v32 = vpop.permute.xlu0 %1350 }
  0xbc   : > { %v1762_v37 = vmul.f32 %v1356_v31, %v738_v17  ;;  %v1763_v38 = vmul.f32 %v1356_v31, %v739_v18  ;;  %v1760_v39 = vmul.f32 %v1351_v32, %v736_v19  ;;  %v1761_v40 = vmul.f32 %v1351_v32, %v737_v20  ;;  %1515 = vperm.xlu1 %5957, %v949_v27   ;;  %v953_v27 = vld [vmem:[%s7224_s1 + $0x388] sm:$0xff] }
  0xbd   : > { %1510 = vperm.xlu0 %5956, %v948_v28   ;;  %2516 = vmatprep.subr.bf16.mxu1 %v1877_v29  ;;  %v746_v17 = vunpack.c.l.bf16 %v537_v9  ;;  %v747_v18 = vunpack.c.h.bf16 %v537_v9  ;;  %v744_v19 = vunpack.c.l.bf16 %v536_v10  ;;  %v745_v20 = vunpack.c.h.bf16 %v536_v10  ;;  %v952_v28 = vld [vmem:[%s7224_s1 + $0x380] sm:$0xff]  ;;  %v541_v9 = vld [vmem:[%s7226_s3 + $0x2a8] sm:$0xff] }
  0xbe   : > { %2517 = vmatpush1.bf16.msra.mxu1 %v1876_v30  ;;  %v1941_v45 = vpack.c.bf16 %v1763_v38, %v1761_v40  ;;  %v1940_v46 = vpack.c.bf16 %v1762_v37, %v1760_v39  ;;  %v540_v10 = vld [vmem:[%s7226_s3 + $0x2a0] sm:$0xff] }
  0xbf   : > { %v1046_v47 = vpop.permute.xlu1 %1045  ;;  %v1041_v48 = vpop.permute.xlu0 %1040 }
  0xc0   : > { %v1638_v53 = vmul.f32 %v1046_v47, %v614_v33  ;;  %v1639_v54 = vmul.f32 %v1046_v47, %v615_v34  ;;  %v1636_v55 = vmul.f32 %v1041_v48, %v612_v35  ;;  %v1637_v56 = vmul.f32 %v1041_v48, %v613_v36  ;;  %1205 = vperm.xlu1 %5957, %v887_v43   ;;  %v891_v43 = vld [vmem:[%s7224_s1 + $0x198] sm:$0xff] }
  0xc1   : > { %1200 = vperm.xlu0 %5956, %v886_v44   ;;  %3222 = vmatprep.subr.bf16.mxu0 %v1941_v45  ;;  %v622_v33 = vunpack.c.l.bf16 %v475_v25  ;;  %v623_v34 = vunpack.c.h.bf16 %v475_v25  ;;  %v620_v35 = vunpack.c.l.bf16 %v474_v26  ;;  %v621_v36 = vunpack.c.h.bf16 %v474_v26  ;;  %v890_v44 = vld [vmem:[%s7224_s1 + $0x190] sm:$0xff]  ;;  %v479_v25 = vld [vmem:[%s7226_s3 + $0xb8] sm:$0xff] }
  0xc2   : > { %3223 = vmatpush1.bf16.msra.mxu0 %v1940_v46  ;;  %v1879_v61 = vpack.c.bf16 %v1639_v54, %v1637_v56  ;;  %v1878_v62 = vpack.c.bf16 %v1638_v53, %v1636_v55  ;;  %v478_v26 = vld [vmem:[%s7226_s3 + $0xb0] sm:$0xff] }
  0xc3   : > { %v1366_v63 = vpop.permute.xlu1 %1365  ;;  %v1361_v0 = vpop.permute.xlu0 %1360 }
  0xc4   : > { %v1766_v5 = vmul.f32 %v1366_v63, %v742_v49  ;;  %v1767_v6 = vmul.f32 %v1366_v63, %v743_v50  ;;  %v1764_v7 = vmul.f32 %v1361_v0, %v740_v51  ;;  %v1765_v8 = vmul.f32 %v1361_v0, %v741_v52  ;;  %1525 = vperm.xlu1 %5957, %v951_v59   ;;  %v955_v59 = vld [vmem:[%s7224_s1 + $0x398] sm:$0xff] }
  0xc5   : > { %1520 = vperm.xlu0 %5956, %v950_v60   ;;  %2518 = vmatprep.subr.bf16.mxu1 %v1879_v61  ;;  %v750_v49 = vunpack.c.l.bf16 %v539_v41  ;;  %v751_v50 = vunpack.c.h.bf16 %v539_v41  ;;  %v748_v51 = vunpack.c.l.bf16 %v538_v42  ;;  %v749_v52 = vunpack.c.h.bf16 %v538_v42  ;;  %v954_v60 = vld [vmem:[%s7224_s1 + $0x390] sm:$0xff]  ;;  %v543_v41 = vld [vmem:[%s7226_s3 + $0x2b8] sm:$0xff] }
  0xc6   : > { %2519 = vmatpush1.bf16.msra.mxu1 %v1878_v62  ;;  %v1943_v13 = vpack.c.bf16 %v1767_v6, %v1765_v8  ;;  %v1942_v14 = vpack.c.bf16 %v1766_v5, %v1764_v7  ;;  %v542_v42 = vld [vmem:[%s7226_s3 + $0x2b0] sm:$0xff] }
  0xc7   : > { %v1056_v15 = vpop.permute.xlu1 %1055  ;;  %v1051_v16 = vpop.permute.xlu0 %1050 }
  0xc8   : > { %v1642_v21 = vmul.f32 %v1056_v15, %v618_v1  ;;  %v1643_v22 = vmul.f32 %v1056_v15, %v619_v2  ;;  %v1640_v23 = vmul.f32 %v1051_v16, %v616_v3  ;;  %v1641_v24 = vmul.f32 %v1051_v16, %v617_v4  ;;  %1215 = vperm.xlu1 %5957, %v889_v11   ;;  %v893_v11 = vld [vmem:[%s7224_s1 + $0x1a8] sm:$0xff] }
  0xc9   : > { %1210 = vperm.xlu0 %5956, %v888_v12   ;;  %3224 = vmatprep.subr.bf16.mxu0 %v1943_v13  ;;  %v626_v1 = vunpack.c.l.bf16 %v477_v57  ;;  %v627_v2 = vunpack.c.h.bf16 %v477_v57  ;;  %v624_v3 = vunpack.c.l.bf16 %v476_v58  ;;  %v625_v4 = vunpack.c.h.bf16 %v476_v58  ;;  %v892_v12 = vld [vmem:[%s7224_s1 + $0x1a0] sm:$0xff]  ;;  %v481_v57 = vld [vmem:[%s7226_s3 + $0xc8] sm:$0xff] }
  0xca   : > { %3225 = vmatpush1.bf16.msra.mxu0 %v1942_v14  ;;  %v1881_v29 = vpack.c.bf16 %v1643_v22, %v1641_v24  ;;  %v1880_v30 = vpack.c.bf16 %v1642_v21, %v1640_v23  ;;  %v480_v58 = vld [vmem:[%s7226_s3 + $0xc0] sm:$0xff] }
  0xcb   : > { %v1376_v31 = vpop.permute.xlu1 %1375  ;;  %v1371_v32 = vpop.permute.xlu0 %1370 }
  0xcc   : > { %v1770_v37 = vmul.f32 %v1376_v31, %v746_v17  ;;  %v1771_v38 = vmul.f32 %v1376_v31, %v747_v18  ;;  %v1768_v39 = vmul.f32 %v1371_v32, %v744_v19  ;;  %v1769_v40 = vmul.f32 %v1371_v32, %v745_v20  ;;  %1535 = vperm.xlu1 %5957, %v953_v27   ;;  %v957_v27 = vld [vmem:[%s7224_s1 + $0x3a8] sm:$0xff] }
  0xcd   : > { %1530 = vperm.xlu0 %5956, %v952_v28   ;;  %2520 = vmatprep.subr.bf16.mxu1 %v1881_v29  ;;  %v754_v17 = vunpack.c.l.bf16 %v541_v9  ;;  %v755_v18 = vunpack.c.h.bf16 %v541_v9  ;;  %v752_v19 = vunpack.c.l.bf16 %v540_v10  ;;  %v753_v20 = vunpack.c.h.bf16 %v540_v10  ;;  %v956_v28 = vld [vmem:[%s7224_s1 + $0x3a0] sm:$0xff]  ;;  %v545_v9 = vld [vmem:[%s7226_s3 + $0x2c8] sm:$0xff] }
  0xce   : > { %2521 = vmatpush1.bf16.msra.mxu1 %v1880_v30  ;;  %v1945_v45 = vpack.c.bf16 %v1771_v38, %v1769_v40  ;;  %v1944_v46 = vpack.c.bf16 %v1770_v37, %v1768_v39  ;;  %v544_v10 = vld [vmem:[%s7226_s3 + $0x2c0] sm:$0xff] }
  0xcf   : > { %v1066_v47 = vpop.permute.xlu1 %1065  ;;  %v1061_v48 = vpop.permute.xlu0 %1060 }
  0xd0   : > { %v1646_v53 = vmul.f32 %v1066_v47, %v622_v33  ;;  %v1647_v54 = vmul.f32 %v1066_v47, %v623_v34  ;;  %v1644_v55 = vmul.f32 %v1061_v48, %v620_v35  ;;  %v1645_v56 = vmul.f32 %v1061_v48, %v621_v36  ;;  %1225 = vperm.xlu1 %5957, %v891_v43   ;;  %v895_v43 = vld [vmem:[%s7224_s1 + $0x1b8] sm:$0xff] }
  0xd1   : > { %1220 = vperm.xlu0 %5956, %v890_v44   ;;  %3226 = vmatprep.subr.bf16.mxu0 %v1945_v45  ;;  %v630_v33 = vunpack.c.l.bf16 %v479_v25  ;;  %v631_v34 = vunpack.c.h.bf16 %v479_v25  ;;  %v628_v35 = vunpack.c.l.bf16 %v478_v26  ;;  %v629_v36 = vunpack.c.h.bf16 %v478_v26  ;;  %v894_v44 = vld [vmem:[%s7224_s1 + $0x1b0] sm:$0xff]  ;;  %v483_v25 = vld [vmem:[%s7226_s3 + $0xd8] sm:$0xff] }
  0xd2   : > { %3227 = vmatpush1.bf16.msra.mxu0 %v1944_v46  ;;  %v1883_v61 = vpack.c.bf16 %v1647_v54, %v1645_v56  ;;  %v1882_v62 = vpack.c.bf16 %v1646_v53, %v1644_v55  ;;  %v482_v26 = vld [vmem:[%s7226_s3 + $0xd0] sm:$0xff] }
  0xd3   : > { %v1386_v63 = vpop.permute.xlu1 %1385  ;;  %v1381_v0 = vpop.permute.xlu0 %1380 }
  0xd4   : > { %v1774_v5 = vmul.f32 %v1386_v63, %v750_v49  ;;  %v1775_v6 = vmul.f32 %v1386_v63, %v751_v50  ;;  %v1772_v7 = vmul.f32 %v1381_v0, %v748_v51  ;;  %v1773_v8 = vmul.f32 %v1381_v0, %v749_v52  ;;  %1545 = vperm.xlu1 %5957, %v955_v59   ;;  %v959_v59 = vld [vmem:[%s7224_s1 + $0x3b8] sm:$0xff] }
  0xd5   : > { %1540 = vperm.xlu0 %5956, %v954_v60   ;;  %2522 = vmatprep.subr.bf16.mxu1 %v1883_v61  ;;  %v758_v49 = vunpack.c.l.bf16 %v543_v41  ;;  %v759_v50 = vunpack.c.h.bf16 %v543_v41  ;;  %v756_v51 = vunpack.c.l.bf16 %v542_v42  ;;  %v757_v52 = vunpack.c.h.bf16 %v542_v42  ;;  %v958_v60 = vld [vmem:[%s7224_s1 + $0x3b0] sm:$0xff]  ;;  %v547_v41 = vld [vmem:[%s7226_s3 + $0x2d8] sm:$0xff] }
  0xd6   : > { %2523 = vmatpush1.bf16.msra.mxu1 %v1882_v62  ;;  %v1947_v13 = vpack.c.bf16 %v1775_v6, %v1773_v8  ;;  %v1946_v14 = vpack.c.bf16 %v1774_v5, %v1772_v7  ;;  %v546_v42 = vld [vmem:[%s7226_s3 + $0x2d0] sm:$0xff] }
  0xd7   : > { %v1076_v15 = vpop.permute.xlu1 %1075  ;;  %v1071_v16 = vpop.permute.xlu0 %1070 }
  0xd8   : > { %v1650_v21 = vmul.f32 %v1076_v15, %v626_v1  ;;  %v1651_v22 = vmul.f32 %v1076_v15, %v627_v2  ;;  %v1648_v23 = vmul.f32 %v1071_v16, %v624_v3  ;;  %v1649_v24 = vmul.f32 %v1071_v16, %v625_v4  ;;  %1235 = vperm.xlu1 %5957, %v893_v11   ;;  %v897_v11 = vld [vmem:[%s7224_s1 + $0x1c8] sm:$0xff] }
  0xd9   : > { %1230 = vperm.xlu0 %5956, %v892_v12   ;;  %3228 = vmatprep.subr.bf16.mxu0 %v1947_v13  ;;  %v634_v1 = vunpack.c.l.bf16 %v481_v57  ;;  %v635_v2 = vunpack.c.h.bf16 %v481_v57  ;;  %v632_v3 = vunpack.c.l.bf16 %v480_v58  ;;  %v633_v4 = vunpack.c.h.bf16 %v480_v58  ;;  %v896_v12 = vld [vmem:[%s7224_s1 + $0x1c0] sm:$0xff]  ;;  %v485_v57 = vld [vmem:[%s7226_s3 + $0xe8] sm:$0xff] }
  0xda   : > { %3229 = vmatpush1.bf16.msra.mxu0 %v1946_v14  ;;  %v1885_v29 = vpack.c.bf16 %v1651_v22, %v1649_v24  ;;  %v1884_v30 = vpack.c.bf16 %v1650_v21, %v1648_v23  ;;  %v484_v58 = vld [vmem:[%s7226_s3 + $0xe0] sm:$0xff] }
  0xdb   : > { %v1396_v31 = vpop.permute.xlu1 %1395  ;;  %v1391_v32 = vpop.permute.xlu0 %1390 }
  0xdc   : > { %v1778_v37 = vmul.f32 %v1396_v31, %v754_v17  ;;  %v1779_v38 = vmul.f32 %v1396_v31, %v755_v18  ;;  %v1776_v39 = vmul.f32 %v1391_v32, %v752_v19  ;;  %v1777_v40 = vmul.f32 %v1391_v32, %v753_v20  ;;  %1555 = vperm.xlu1 %5957, %v957_v27   ;;  %v961_v27 = vld [vmem:[%s7224_s1 + $0x3c8] sm:$0xff] }
  0xdd   : > { %1550 = vperm.xlu0 %5956, %v956_v28   ;;  %2524 = vmatprep.subr.bf16.mxu1 %v1885_v29  ;;  %v762_v17 = vunpack.c.l.bf16 %v545_v9  ;;  %v763_v18 = vunpack.c.h.bf16 %v545_v9  ;;  %v760_v19 = vunpack.c.l.bf16 %v544_v10  ;;  %v761_v20 = vunpack.c.h.bf16 %v544_v10  ;;  %v960_v28 = vld [vmem:[%s7224_s1 + $0x3c0] sm:$0xff]  ;;  %v549_v9 = vld [vmem:[%s7226_s3 + $0x2e8] sm:$0xff] }
  0xde   : > { %2525 = vmatpush1.bf16.msra.mxu1 %v1884_v30  ;;  %v1949_v45 = vpack.c.bf16 %v1779_v38, %v1777_v40  ;;  %v1948_v46 = vpack.c.bf16 %v1778_v37, %v1776_v39  ;;  %v548_v10 = vld [vmem:[%s7226_s3 + $0x2e0] sm:$0xff] }
  0xdf   : > { %v1086_v47 = vpop.permute.xlu1 %1085  ;;  %v1081_v48 = vpop.permute.xlu0 %1080 }
  0xe0   : > { %v1654_v53 = vmul.f32 %v1086_v47, %v630_v33  ;;  %v1655_v54 = vmul.f32 %v1086_v47, %v631_v34  ;;  %v1652_v55 = vmul.f32 %v1081_v48, %v628_v35  ;;  %v1653_v56 = vmul.f32 %v1081_v48, %v629_v36  ;;  %1245 = vperm.xlu1 %5957, %v895_v43   ;;  %v899_v43 = vld [vmem:[%s7224_s1 + $0x1d8] sm:$0xff] }
  0xe1   : > { %1240 = vperm.xlu0 %5956, %v894_v44   ;;  %3230 = vmatprep.subr.bf16.mxu0 %v1949_v45  ;;  %v638_v33 = vunpack.c.l.bf16 %v483_v25  ;;  %v639_v34 = vunpack.c.h.bf16 %v483_v25  ;;  %v636_v35 = vunpack.c.l.bf16 %v482_v26  ;;  %v637_v36 = vunpack.c.h.bf16 %v482_v26  ;;  %v898_v44 = vld [vmem:[%s7224_s1 + $0x1d0] sm:$0xff]  ;;  %v487_v25 = vld [vmem:[%s7226_s3 + $0xf8] sm:$0xff] }
  0xe2   : > { %3231 = vmatpush1.bf16.msra.mxu0 %v1948_v46  ;;  %v1887_v61 = vpack.c.bf16 %v1655_v54, %v1653_v56  ;;  %v1886_v62 = vpack.c.bf16 %v1654_v53, %v1652_v55  ;;  %v486_v26 = vld [vmem:[%s7226_s3 + $0xf0] sm:$0xff] }
  0xe3   : > { %v1406_v63 = vpop.permute.xlu1 %1405  ;;  %v1401_v0 = vpop.permute.xlu0 %1400 }
  0xe4   : > { %v1782_v5 = vmul.f32 %v1406_v63, %v758_v49  ;;  %v1783_v6 = vmul.f32 %v1406_v63, %v759_v50  ;;  %v1780_v7 = vmul.f32 %v1401_v0, %v756_v51  ;;  %v1781_v8 = vmul.f32 %v1401_v0, %v757_v52  ;;  %1565 = vperm.xlu1 %5957, %v959_v59   ;;  %v963_v59 = vld [vmem:[%s7224_s1 + $0x3d8] sm:$0xff] }
  0xe5   : > { %1560 = vperm.xlu0 %5956, %v958_v60   ;;  %2526 = vmatprep.subr.bf16.mxu1 %v1887_v61  ;;  %v766_v49 = vunpack.c.l.bf16 %v547_v41  ;;  %v767_v50 = vunpack.c.h.bf16 %v547_v41  ;;  %v764_v51 = vunpack.c.l.bf16 %v546_v42  ;;  %v765_v52 = vunpack.c.h.bf16 %v546_v42  ;;  %v962_v60 = vld [vmem:[%s7224_s1 + $0x3d0] sm:$0xff]  ;;  %v551_v41 = vld [vmem:[%s7226_s3 + $0x2f8] sm:$0xff] }
  0xe6   : > { %2527 = vmatpush1.bf16.msra.mxu1 %v1886_v62  ;;  %v1951_v13 = vpack.c.bf16 %v1783_v6, %v1781_v8  ;;  %v1950_v14 = vpack.c.bf16 %v1782_v5, %v1780_v7  ;;  %v550_v42 = vld [vmem:[%s7226_s3 + $0x2f0] sm:$0xff] }
  0xe7   : > { %v1096_v15 = vpop.permute.xlu1 %1095  ;;  %v1091_v16 = vpop.permute.xlu0 %1090 }
  0xe8   : > { %v1658_v21 = vmul.f32 %v1096_v15, %v634_v1  ;;  %v1659_v22 = vmul.f32 %v1096_v15, %v635_v2  ;;  %v1656_v23 = vmul.f32 %v1091_v16, %v632_v3  ;;  %v1657_v24 = vmul.f32 %v1091_v16, %v633_v4  ;;  %1255 = vperm.xlu1 %5957, %v897_v11   ;;  %v901_v11 = vld [vmem:[%s7224_s1 + $0x1e8] sm:$0xff] }
  0xe9   : > { %1250 = vperm.xlu0 %5956, %v896_v12   ;;  %3232 = vmatprep.subr.bf16.mxu0 %v1951_v13  ;;  %v642_v1 = vunpack.c.l.bf16 %v485_v57  ;;  %v643_v2 = vunpack.c.h.bf16 %v485_v57  ;;  %v640_v3 = vunpack.c.l.bf16 %v484_v58  ;;  %v641_v4 = vunpack.c.h.bf16 %v484_v58  ;;  %v900_v12 = vld [vmem:[%s7224_s1 + $0x1e0] sm:$0xff]  ;;  %v489_v57 = vld [vmem:[%s7226_s3 + $0x108] sm:$0xff] }
  0xea   : > { %3233 = vmatpush1.bf16.msra.mxu0 %v1950_v14  ;;  %v1889_v29 = vpack.c.bf16 %v1659_v22, %v1657_v24  ;;  %v1888_v30 = vpack.c.bf16 %v1658_v21, %v1656_v23  ;;  %v488_v58 = vld [vmem:[%s7226_s3 + $0x100] sm:$0xff] }
  0xeb   : > { %v1416_v31 = vpop.permute.xlu1 %1415  ;;  %v1411_v32 = vpop.permute.xlu0 %1410 }
  0xec   : > { %v1786_v37 = vmul.f32 %v1416_v31, %v762_v17  ;;  %v1787_v38 = vmul.f32 %v1416_v31, %v763_v18  ;;  %v1784_v39 = vmul.f32 %v1411_v32, %v760_v19  ;;  %v1785_v40 = vmul.f32 %v1411_v32, %v761_v20  ;;  %1575 = vperm.xlu1 %5957, %v961_v27   ;;  %v965_v27 = vld [vmem:[%s7224_s1 + $0x3e8] sm:$0xff] }
  0xed   : > { %1570 = vperm.xlu0 %5956, %v960_v28   ;;  %2528 = vmatprep.subr.bf16.mxu1 %v1889_v29  ;;  %v770_v17 = vunpack.c.l.bf16 %v549_v9  ;;  %v771_v18 = vunpack.c.h.bf16 %v549_v9  ;;  %v768_v19 = vunpack.c.l.bf16 %v548_v10  ;;  %v769_v20 = vunpack.c.h.bf16 %v548_v10  ;;  %v964_v28 = vld [vmem:[%s7224_s1 + $0x3e0] sm:$0xff]  ;;  %v553_v10 = vld [vmem:[%s7226_s3 + $0x308] sm:$0xff] }
  0xee   : > { %2529 = vmatpush1.bf16.msra.mxu1 %v1888_v30  ;;  %v1953_v45 = vpack.c.bf16 %v1787_v38, %v1785_v40  ;;  %v1952_v46 = vpack.c.bf16 %v1786_v37, %v1784_v39 }
  0xef   : > { %v1106_v47 = vpop.permute.xlu1 %1105  ;;  %v1101_v48 = vpop.permute.xlu0 %1100 }
  0xf0   : > { %v1662_v53 = vmul.f32 %v1106_v47, %v638_v33  ;;  %v1663_v54 = vmul.f32 %v1106_v47, %v639_v34  ;;  %v1660_v55 = vmul.f32 %v1101_v48, %v636_v35  ;;  %v1661_v56 = vmul.f32 %v1101_v48, %v637_v36  ;;  %1265 = vperm.xlu1 %5957, %v899_v43   ;;  %v903_v43 = vld [vmem:[%s7224_s1 + $0x1f8] sm:$0xff] }
  0xf1   : > { %1260 = vperm.xlu0 %5956, %v898_v44   ;;  %3234 = vmatprep.subr.bf16.mxu0 %v1953_v45  ;;  %v646_v33 = vunpack.c.l.bf16 %v487_v25  ;;  %v647_v34 = vunpack.c.h.bf16 %v487_v25  ;;  %v644_v35 = vunpack.c.l.bf16 %v486_v26  ;;  %v645_v36 = vunpack.c.h.bf16 %v486_v26  ;;  %v902_v44 = vld [vmem:[%s7224_s1 + $0x1f0] sm:$0xff]  ;;  %v6655_v25 = vld [vmem:[%s6244_s5 + $0x20] sm:$0xff] }
  0xf2   : > { %3235 = vmatpush1.bf16.msra.mxu0 %v1952_v46  ;;  %v1891_v61 = vpack.c.bf16 %v1663_v54, %v1661_v56  ;;  %v1890_v62 = vpack.c.bf16 %v1662_v53, %v1660_v55 }
  0xf3   : > { %v1426_v63 = vpop.permute.xlu1 %1425  ;;  %v1421_v0 = vpop.permute.xlu0 %1420 }
  0xf4   : > { %v1790_v5 = vmul.f32 %v1426_v63, %v766_v49  ;;  %v1791_v6 = vmul.f32 %v1426_v63, %v767_v50  ;;  %v1788_v7 = vmul.f32 %v1421_v0, %v764_v51  ;;  %v1789_v8 = vmul.f32 %v1421_v0, %v765_v52  ;;  %1585 = vperm.xlu1 %5957, %v963_v59   ;;  %v967_v59 = vld [vmem:[%s7224_s1 + $0x3f8] sm:$0xff] }
  0xf5   : > { %1580 = vperm.xlu0 %5956, %v962_v60   ;;  %2530 = vmatprep.subr.bf16.mxu1 %v1891_v61  ;;  %v774_v49 = vunpack.c.l.bf16 %v551_v41  ;;  %v775_v50 = vunpack.c.h.bf16 %v551_v41  ;;  %v772_v51 = vunpack.c.l.bf16 %v550_v42  ;;  %v773_v52 = vunpack.c.h.bf16 %v550_v42  ;;  %v966_v60 = vld [vmem:[%s7224_s1 + $0x3f0] sm:$0xff] }
  0xf6   : > { %2531 = vmatpush1.bf16.msra.mxu1 %v1890_v62  ;;  %v1955_v13 = vpack.c.bf16 %v1791_v6, %v1789_v8  ;;  %v1954_v14 = vpack.c.bf16 %v1790_v5, %v1788_v7  ;;  %v6642_v5 = vld [vmem:[%s6244_s5] sm:$0xff] }
  0xf7   : > { %v1116_v15 = vpop.permute.xlu1 %1115  ;;  %v1111_v16 = vpop.permute.xlu0 %1110 }
  0xf8   : > { %v1666_v21 = vmul.f32 %v1116_v15, %v642_v1  ;;  %v1667_v22 = vmul.f32 %v1116_v15, %v643_v2  ;;  %v1664_v23 = vmul.f32 %v1111_v16, %v640_v3  ;;  %v1665_v24 = vmul.f32 %v1111_v16, %v641_v4  ;;  %1275 = vperm.xlu1 %5957, %v901_v11   ;;  %v552_v11 = vld [vmem:[%s7226_s3 + $0x300] sm:$0xff]  ;;  %v4304_v15 = vld [vmem:[%s6639_s7 + $0x8] sm:$0xff] }
  0xf9   : > { %1270 = vperm.xlu0 %5956, %v900_v12   ;;  %3236 = vmatprep.subr.bf16.mxu0 %v1955_v13  ;;  %v650_v1 = vunpack.c.l.bf16 %v489_v57  ;;  %v651_v2 = vunpack.c.h.bf16 %v489_v57  ;;  %v648_v3 = vunpack.c.l.bf16 %v488_v58  ;;  %v649_v4 = vunpack.c.h.bf16 %v488_v58  ;;  %v5958_v12 = vld [vmem:[%s6244_s5 + $0x8] sm:$0xff]  ;;  %v4303_v16 = vld [vmem:[%s6639_s7] sm:$0xff] }
  0xfa   : > { %3237 = vmatpush1.bf16.msra.mxu0 %v1954_v14  ;;  %v1893_v29 = vpack.c.bf16 %v1667_v22, %v1665_v24  ;;  %v1892_v30 = vpack.c.bf16 %v1666_v21, %v1664_v23  ;;  %v2129_v13 = vunpack.c.h.s8.bf16 %v5958_v12  ;;  %v778_v21 = vunpack.c.l.bf16 %v553_v10 }
  0xfb   : > { %v1436_v31 = vpop.permute.xlu1 %1435  ;;  %v1431_v32 = vpop.permute.xlu0 %1430  ;;  %v779_v22 = vunpack.c.h.bf16 %v553_v10  ;;  %v776_v23 = vunpack.c.l.bf16 %v552_v11  ;;  %v777_v24 = vunpack.c.h.bf16 %v552_v11 }
  0xfc   : > { %v1794_v37 = vmul.f32 %v1436_v31, %v770_v17  ;;  %v1795_v38 = vmul.f32 %v1436_v31, %v771_v18  ;;  %v1792_v39 = vmul.f32 %v1431_v32, %v768_v19  ;;  %v1793_v40 = vmul.f32 %v1431_v32, %v769_v20  ;;  %1595 = vperm.xlu1 %5957, %v965_v27  }
  0xfd   : > { %1590 = vperm.xlu0 %5956, %v964_v28   ;;  %2532 = vmatprep.subr.bf16.mxu1 %v1893_v29  ;;  %v2120_v17 = vunpack.c.l.s8.bf16 %v6642_v5 }
  0xfe   : > { %2533 = vmatpush1.bf16.msra.mxu1 %v1892_v30  ;;  %v1957_v45 = vpack.c.bf16 %v1795_v38, %v1793_v40  ;;  %v1956_v46 = vpack.c.bf16 %v1794_v37, %v1792_v39  ;;  %v491_v30 = vld [vmem:[%s7226_s3 + $0x118] sm:$0xff]  ;;  %v5959_v39 = vld [vmem:[%s6244_s5 + $0x28] sm:$0xff] }
  0xff   : > { %v1126_v47 = vpop.permute.xlu1 %1125  ;;  %v1121_v48 = vpop.permute.xlu0 %1120  ;;  %v2133_v40 = vunpack.c.h.s8.bf16 %v5959_v39  ;;  %v654_v41 = vunpack.c.l.bf16 %v491_v30  ;;  %v655_v42 = vunpack.c.h.bf16 %v491_v30 }
 0x100   : > { %v1670_v53 = vmul.f32 %v1126_v47, %v646_v33  ;;  %v1671_v54 = vmul.f32 %v1126_v47, %v647_v34  ;;  %v1668_v55 = vmul.f32 %v1121_v48, %v644_v35  ;;  %v1669_v56 = vmul.f32 %v1121_v48, %v645_v36  ;;  %1285 = vperm.xlu1 %5957, %v903_v43   ;;  %v4306_v33 = vld [vmem:[%s6639_s7 + $0x18] sm:$0xff]  ;;  %v4305_v34 = vld [vmem:[%s6639_s7 + $0x10] sm:$0xff]  ;;  %v6668_v47 = vld [vmem:[%s6244_s5 + $0x48] sm:$0xff] }
 0x101   : > { %1280 = vperm.xlu0 %5956, %v902_v44   ;;  %3238 = vmatprep.subr.bf16.mxu0 %v1957_v45  ;;  %v2124_v35 = vunpack.c.l.s8.bf16 %v6655_v25  ;;  %v490_v36 = vld [vmem:[%s7226_s3 + $0x110] sm:$0xff]  ;;  %v2137_v58 = vunpack.c.l.s8.bf16 %v6668_v47 }
 0x102   : > { %3239 = vmatpush1.bf16.msra.mxu0 %v1956_v46  ;;  %v1895_v61 = vpack.c.bf16 %v1671_v54, %v1669_v56  ;;  %v1894_v62 = vpack.c.bf16 %v1670_v53, %v1668_v55  ;;  %v652_v48 = vunpack.c.l.bf16 %v490_v36  ;;  %v4308_v53 = vld [vmem:[%s6639_s7 + $0x28] sm:$0xff]  ;;  %v4307_v54 = vld [vmem:[%s6639_s7 + $0x20] sm:$0xff]  ;;  %v2128_v55 = vunpack.c.h.s8.bf16 %v6642_v5  ;;  %v554_v56 = vld [vmem:[%s7226_s3 + $0x310] sm:$0xff] }
 0x103   : > { %v1446_v63 = vpop.permute.xlu1 %1445  ;;  %v1441_v0 = vpop.permute.xlu0 %1440  ;;  %v493_v5 = vld [vmem:[%s7226_s3 + $0x128] sm:$0xff] }
 0x104   : > { %v1798_v6 = vmul.f32 %v1446_v63, %v774_v49  ;;  %v1799_v7 = vmul.f32 %v1446_v63, %v775_v50  ;;  %v1796_v8 = vmul.f32 %v1441_v0, %v772_v51  ;;  %v1797_v9 = vmul.f32 %v1441_v0, %v773_v52  ;;  %1605 = vperm.xlu1 %5957, %v967_v59   ;;  %v555_v50 = vld [vmem:[%s7226_s3 + $0x318] sm:$0xff]  ;;  %v6681_v0 = vld [vmem:[%s6244_s5 + $0x68] sm:$0xff] }
 0x105   : > { %1600 = vperm.xlu0 %5956, %v966_v60   ;;  %2534 = vmatprep.subr.bf16.mxu1 %v1895_v61  ;;  %v653_v49 = vunpack.c.h.bf16 %v490_v36  ;;  %v783_v63 = vunpack.c.h.bf16 %v555_v50 }
 0x106   : > { %2535 = vmatpush1.bf16.msra.mxu1 %v1894_v62  ;;  %v1959_v14 = vpack.c.bf16 %v1799_v7, %v1797_v9  ;;  %v1958_v18 = vpack.c.bf16 %v1798_v6, %v1796_v8  ;;  %v782_v62 = vunpack.c.l.bf16 %v555_v50  ;;  %v4310_v6 = vld [vmem:[%s6639_s7 + $0x38] sm:$0xff]  ;;  %v4309_v7 = vld [vmem:[%s6639_s7 + $0x30] sm:$0xff]  ;;  %v2132_v8 = vunpack.c.h.s8.bf16 %v6655_v25  ;;  %v492_v9 = vld [vmem:[%s7226_s3 + $0x120] sm:$0xff] }
 0x107   : > { %v1136_v19 = vpop.permute.xlu1 %1135  ;;  %v1131_v20 = vpop.permute.xlu0 %1130  ;;  %v4312_v25 = vld [vmem:[%s6639_s7 + $0x48] sm:$0xff] }
 0x108   : > { %v1674_v26 = vmul.f32 %v1136_v19, %v650_v1  ;;  %v1675_v27 = vmul.f32 %v1136_v19, %v651_v2  ;;  %v1672_v28 = vmul.f32 %v1131_v20, %v648_v3  ;;  %v1673_v29 = vmul.f32 %v1131_v20, %v649_v4  ;;  %3240 = vmatprep.subr.bf16.mxu0 %v1959_v14 }
 0x109   : > { %4374 = vperm.xlu1 %5957, %v4304_v15   ;;  %4369 = vperm.xlu0 %5956, %v4303_v16   ;;  %v780_v3 = vunpack.c.l.bf16 %v554_v56  ;;  %v781_v4 = vunpack.c.h.bf16 %v554_v56  ;;  %v2141_v14 = vunpack.c.l.s8.bf16 %v6681_v0  ;;  %v659_v19 = vunpack.c.h.bf16 %v493_v5 }
 0x10a   : > { %v1896_v31 = vpack.c.bf16 %v1674_v26, %v1672_v28  ;;  %2537 = vmatmul.mubr.bf16.vlgmr.msra.gmra.mrb[0].mxu1 %v2120_v17  ;;  %3241 = vmatpush1.bf16.msra.mxu0 %v1958_v18  ;;  %v1897_v32 = vpack.c.bf16 %v1675_v27, %v1673_v29  ;;  %v658_v18 = vunpack.c.l.bf16 %v493_v5  ;;  %v4311_v26 = vld [vmem:[%s6639_s7 + $0x40] sm:$0xff] }
 0x10b   : > { %v1456_v37 = vpop.permute.xlu1 %1455  ;;  %v1451_v38 = vpop.permute.xlu0 %1450  ;;  %2546 = vmatprep.mubr.bf16.mxu1 %v2129_v13  ;;  %v6693_v13 = vld [vmem:[%s6244_s5 + $0x40] sm:$0xff] }
 0x10c   : > { %v1802_v43 = vmul.f32 %v1456_v37, %v778_v21  ;;  %v1803_v44 = vmul.f32 %v1456_v37, %v779_v22  ;;  %v1800_v45 = vmul.f32 %v1451_v38, %v776_v23  ;;  %v1801_v46 = vmul.f32 %v1451_v38, %v777_v24  ;;  %2857 = vmatprep.subr.bf16.mxu1 %v1897_v32  ;;  %v557_v24 = vld [vmem:[%s7226_s3 + $0x328] sm:$0xff]  ;;  %v556_v28 = vld [vmem:[%s7226_s3 + $0x320] sm:$0xff] }
 0x10d   : > { %4384 = vperm.xlu1 %5957, %v4306_v33   ;;  %4379 = vperm.xlu0 %5956, %v4305_v34   ;;  %v656_v22 = vunpack.c.l.bf16 %v492_v9  ;;  %v657_v23 = vunpack.c.h.bf16 %v492_v9  ;;  %v2136_v27 = vunpack.c.l.s8.bf16 %v6693_v13  ;;  %v6706_v32 = vld [vmem:[%s6244_s5 + $0x60] sm:$0xff]  ;;  %v2145_v33 = vunpack.c.h.s8.bf16 %v6668_v47  ;;  %v494_v47 = vld [vmem:[%s7226_s3 + $0x130] sm:$0xff] }
 0x10e   : > { %v1960_v51 = vpack.c.bf16 %v1802_v43, %v1800_v45  ;;  %3243 = vmatmul.mubr.bf16.vlgmr.msra.gmra.mrb[0].mxu0 %v2124_v35  ;;  %2858 = vmatpush1.bf16.msra.mxu1 %v1896_v31  ;;  %v1961_v52 = vpack.c.bf16 %v1803_v44, %v1801_v46  ;;  %v786_v37 = vunpack.c.l.bf16 %v557_v24  ;;  %v787_v38 = vunpack.c.h.bf16 %v557_v24  ;;  %v495_v43 = vld [vmem:[%s7226_s3 + $0x138] sm:$0xff]  ;;  %v4313_v45 = vld [vmem:[%s6639_s7 + $0x50] sm:$0xff] }
 0x10f   : > { %v1146_v57 = vpop.permute.xlu1 %1145  ;;  %3252 = vmatprep.mubr.bf16.mxu0 %v2133_v40  ;;  %v4314_v44 = vld [vmem:[%s6639_s7 + $0x58] sm:$0xff]  ;;  %v2140_v46 = vunpack.c.l.s8.bf16 %v6706_v32  ;;  %v663_v56 = vunpack.c.h.bf16 %v495_v43 }
 0x110   : > { %v1678_v59 = vmul.f32 %v1146_v57, %v654_v41  ;;  %v1679_v60 = vmul.f32 %v1146_v57, %v655_v42  ;;  %v1141_v61 = vpop.permute.xlu0 %1140  ;;  %3563 = vmatprep.subr.bf16.mxu0 %v1961_v52  ;;  %v784_v41 = vunpack.c.l.bf16 %v556_v28  ;;  %v785_v42 = vunpack.c.h.bf16 %v556_v28  ;;  %v6720_v57 = vld [vmem:[%s6244_s5 + $0x88] sm:$0xff] }
 0x111   : > { %v1676_v1 = vmul.f32 %v1141_v61, %v652_v48  ;;  %v1677_v2 = vmul.f32 %v1141_v61, %v653_v49  ;;  %4394 = vperm.xlu1 %5957, %v4308_v53   ;;  %4389 = vperm.xlu0 %5956, %v4307_v54   ;;  %v661_v61 = vunpack.c.h.bf16 %v494_v47 }
 0x112   : > { %2547 = vmatmul.mubr.bf16.gmra.mrb[4].mxu1 %v2128_v55  ;;  %3564 = vmatpush1.bf16.msra.mxu0 %v1960_v51  ;;  %v2149_v51 = vunpack.c.h.s8.bf16 %v6681_v0  ;;  %v662_v55 = vunpack.c.l.bf16 %v495_v43  ;;  %v4315_v0 = vld [vmem:[%s6639_s7 + $0x60] sm:$0xff] }
 0x113   : > { %v1898_v10 = vpack.c.bf16 %v1678_v59, %v1676_v1  ;;  %v1466_v11 = vpop.permute.xlu1 %1465  ;;  %v1899_v12 = vpack.c.bf16 %v1679_v60, %v1677_v2  ;;  %2556 = vmatprep.mubr.bf16.mxu1 %v2137_v58  ;;  %v660_v60 = vunpack.c.l.bf16 %v494_v47  ;;  %v2144_v1 = vunpack.c.h.s8.bf16 %v6693_v13  ;;  %v558_v2 = vld [vmem:[%s7226_s3 + $0x330] sm:$0xff] }
 0x114   : > { %v1806_v15 = vmul.f32 %v1466_v11, %v782_v62  ;;  %v1807_v16 = vmul.f32 %v1466_v11, %v783_v63  ;;  %v1461_v17 = vpop.permute.xlu0 %1460  ;;  %v559_v62 = vld [vmem:[%s7226_s3 + $0x338] sm:$0xff]  ;;  %v4316_v63 = vld [vmem:[%s6639_s7 + $0x68] sm:$0xff] }
 0x115   : > { %v1804_v20 = vmul.f32 %v1461_v17, %v780_v3  ;;  %v1805_v21 = vmul.f32 %v1461_v17, %v781_v4  ;;  %4404 = vperm.xlu1 %5957, %v4310_v6   ;;  %4399 = vperm.xlu0 %5956, %v4309_v7   ;;  %v2153_v6 = vunpack.c.l.s8.bf16 %v6720_v57  ;;  %v791_v11 = vunpack.c.h.bf16 %v559_v62  ;;  %v497_v17 = vld [vmem:[%s7226_s3 + $0x148] sm:$0xff] }
 0x116   : > { %2859 = vmatprep.subr.bf16.mxu1 %v1899_v12  ;;  %3253 = vmatmul.mubr.bf16.gmra.mrb[4].mxu0 %v2132_v8  ;;  %v6733_v12 = vld [vmem:[%s6244_s5 + $0xa8] sm:$0xff] }
 0x117   : > { %v1962_v29 = vpack.c.bf16 %v1806_v15, %v1804_v20  ;;  %2860 = vmatpush1.bf16.msra.mxu1 %v1898_v10  ;;  %v1156_v30 = vpop.permute.xlu1 %1155  ;;  %v1963_v31 = vpack.c.bf16 %v1807_v16, %v1805_v21  ;;  %3262 = vmatprep.mubr.bf16.mxu0 %v2141_v14  ;;  %v790_v10 = vunpack.c.l.bf16 %v559_v62  ;;  %v788_v15 = vunpack.c.l.bf16 %v558_v2  ;;  %v496_v21 = vld [vmem:[%s7226_s3 + $0x140] sm:$0xff] }
 0x118   : > { %v1682_v34 = vmul.f32 %v1156_v30, %v658_v18  ;;  %v1683_v35 = vmul.f32 %v1156_v30, %v659_v19  ;;  %v1151_v36 = vpop.permute.xlu0 %1150  ;;  %v789_v16 = vunpack.c.h.bf16 %v558_v2  ;;  %v4318_v18 = vld [vmem:[%s6639_s7 + $0x78] sm:$0xff]  ;;  %v4317_v19 = vld [vmem:[%s6639_s7 + $0x70] sm:$0xff]  ;;  %v2148_v20 = vunpack.c.h.s8.bf16 %v6706_v32 }
 0x119   : > { %v1680_v39 = vmul.f32 %v1151_v36, %v656_v22  ;;  %v1681_v40 = vmul.f32 %v1151_v36, %v657_v23  ;;  %4414 = vperm.xlu1 %5957, %v4312_v25   ;;  %4409 = vperm.xlu0 %5956, %v4311_v26   ;;  %v6745_v25 = vld [vmem:[%s6244_s5 + $0x80] sm:$0xff]  ;;  %v2157_v26 = vunpack.c.l.s8.bf16 %v6733_v12  ;;  %v666_v30 = vunpack.c.l.bf16 %v497_v17  ;;  %v561_v36 = vld [vmem:[%s7226_s3 + $0x348] sm:$0xff] }
 0x11a   : > { %2557 = vmatmul.mubr.bf16.gmra.mrb[8].mxu1 %v2136_v27  ;;  %3565 = vmatprep.subr.bf16.mxu0 %v1963_v31  ;;  %v667_v31 = vunpack.c.h.bf16 %v497_v17 }
 0x11b   : > { %v1900_v48 = vpack.c.bf16 %v1682_v34, %v1680_v39  ;;  %3566 = vmatpush1.bf16.msra.mxu0 %v1962_v29  ;;  %v1476_v49 = vpop.permute.xlu1 %1475  ;;  %v1901_v50 = vpack.c.bf16 %v1683_v35, %v1681_v40  ;;  %2566 = vmatprep.mubr.bf16.mxu1 %v2145_v33  ;;  %v664_v34 = vunpack.c.l.bf16 %v496_v21  ;;  %v665_v35 = vunpack.c.h.bf16 %v496_v21  ;;  %v560_v40 = vld [vmem:[%s7226_s3 + $0x340] sm:$0xff] }
 0x11c   : > { %v1810_v52 = vmul.f32 %v1476_v49, %v786_v37  ;;  %v1811_v53 = vmul.f32 %v1476_v49, %v787_v38  ;;  %v1471_v54 = vpop.permute.xlu0 %1470  ;;  %v4320_v37 = vld [vmem:[%s6639_s7 + $0x88] sm:$0xff]  ;;  %v4319_v38 = vld [vmem:[%s6639_s7 + $0x80] sm:$0xff]  ;;  %v2152_v39 = vunpack.c.l.s8.bf16 %v6745_v25  ;;  %v794_v49 = vunpack.c.l.bf16 %v561_v36 }
 0x11d   : > { %v1808_v58 = vmul.f32 %v1471_v54, %v784_v41  ;;  %v1809_v59 = vmul.f32 %v1471_v54, %v785_v42  ;;  %4424 = vperm.xlu1 %5957, %v4314_v44   ;;  %4419 = vperm.xlu0 %5956, %v4313_v45   ;;  %v6758_v44 = vld [vmem:[%s6244_s5 + $0xa0] sm:$0xff]  ;;  %v2161_v45 = vunpack.c.h.s8.bf16 %v6720_v57  ;;  %v793_v54 = vunpack.c.h.bf16 %v560_v40  ;;  %v4321_v57 = vld [vmem:[%s6639_s7 + $0x90] sm:$0xff] }
 0x11e   : > { %2861 = vmatprep.subr.bf16.mxu1 %v1901_v50  ;;  %3263 = vmatmul.mubr.bf16.gmra.mrb[8].mxu0 %v2140_v46  ;;  %v795_v50 = vunpack.c.h.bf16 %v561_v36 }
 0x11f   : > { %v1964_v3 = vpack.c.bf16 %v1810_v52, %v1808_v58  ;;  %2862 = vmatpush1.bf16.msra.mxu1 %v1900_v48  ;;  %v1166_v4 = vpop.permute.xlu1 %1165  ;;  %v1965_v5 = vpack.c.bf16 %v1811_v53, %v1809_v59  ;;  %3272 = vmatprep.mubr.bf16.mxu0 %v2149_v51  ;;  %v792_v53 = vunpack.c.l.bf16 %v560_v40  ;;  %v2156_v58 = vunpack.c.l.s8.bf16 %v6758_v44  ;;  %v498_v59 = vld [vmem:[%s7226_s3 + $0x150] sm:$0xff] }
 0x120   : > { %v1686_v7 = vmul.f32 %v1166_v4, %v662_v55  ;;  %v1687_v8 = vmul.f32 %v1166_v4, %v663_v56  ;;  %v1161_v9 = vpop.permute.xlu0 %1160  ;;  %v499_v55 = vld [vmem:[%s7226_s3 + $0x158] sm:$0xff] }
 0x121   : > { %v1684_v13 = vmul.f32 %v1161_v9, %v660_v60  ;;  %v1685_v14 = vmul.f32 %v1161_v9, %v661_v61  ;;  %4434 = vperm.xlu1 %5957, %v4316_v63   ;;  %4429 = vperm.xlu0 %5956, %v4315_v0   ;;  %v4322_v56 = vld [vmem:[%s6639_s7 + $0x98] sm:$0xff]  ;;  %v2165_v63 = vunpack.c.h.s8.bf16 %v6733_v12  ;;  %v671_v4 = vunpack.c.h.bf16 %v499_v55  ;;  %v4323_v12 = vld [vmem:[%s6639_s7 + $0xa0] sm:$0xff] }
 0x122   : > { %2567 = vmatmul.mubr.bf16.gmra.mrb[12].mxu1 %v2144_v1  ;;  %3567 = vmatprep.subr.bf16.mxu0 %v1965_v5  ;;  %v6772_v5 = vld [vmem:[%s6244_s5 + $0xc8] sm:$0xff]  ;;  %v669_v9 = vunpack.c.h.bf16 %v498_v59 }
 0x123   : > { %v1902_v22 = vpack.c.bf16 %v1686_v7, %v1684_v13  ;;  %3568 = vmatpush1.bf16.msra.mxu0 %v1964_v3  ;;  %v1486_v23 = vpop.permute.xlu1 %1485  ;;  %v1903_v24 = vpack.c.bf16 %v1687_v8, %v1685_v14  ;;  %2576 = vmatprep.mubr.bf16.mxu1 %v2153_v6  ;;  %v670_v3 = vunpack.c.l.bf16 %v499_v55  ;;  %v668_v8 = vunpack.c.l.bf16 %v498_v59  ;;  %v562_v14 = vld [vmem:[%s7226_s3 + $0x350] sm:$0xff] }
 0x124   : > { %v1814_v27 = vmul.f32 %v1486_v23, %v790_v10  ;;  %v1815_v28 = vmul.f32 %v1486_v23, %v791_v11  ;;  %v1481_v29 = vpop.permute.xlu0 %1480  ;;  %v563_v10 = vld [vmem:[%s7226_s3 + $0x358] sm:$0xff]  ;;  %v4324_v11 = vld [vmem:[%s6639_s7 + $0xa8] sm:$0xff]  ;;  %v2160_v13 = vunpack.c.h.s8.bf16 %v6745_v25 }
 0x125   : > { %v1812_v32 = vmul.f32 %v1481_v29, %v788_v15  ;;  %v1813_v33 = vmul.f32 %v1481_v29, %v789_v16  ;;  %4444 = vperm.xlu1 %5957, %v4318_v18   ;;  %4439 = vperm.xlu0 %5956, %v4317_v19   ;;  %v2169_v18 = vunpack.c.l.s8.bf16 %v6772_v5  ;;  %v799_v23 = vunpack.c.h.bf16 %v563_v10  ;;  %v501_v29 = vld [vmem:[%s7226_s3 + $0x168] sm:$0xff] }
 0x126   : > { %2863 = vmatprep.subr.bf16.mxu1 %v1903_v24  ;;  %3273 = vmatmul.mubr.bf16.gmra.mrb[12].mxu0 %v2148_v20  ;;  %v6785_v24 = vld [vmem:[%s6244_s5 + $0xe8] sm:$0xff] }
 0x127   : > { %v1966_v41 = vpack.c.bf16 %v1814_v27, %v1812_v32  ;;  %2864 = vmatpush1.bf16.msra.mxu1 %v1902_v22  ;;  %v1176_v42 = vpop.permute.xlu1 %1175  ;;  %v1967_v43 = vpack.c.bf16 %v1815_v28, %v1813_v33  ;;  %3282 = vmatprep.mubr.bf16.mxu0 %v2157_v26  ;;  %v798_v22 = vunpack.c.l.bf16 %v563_v10  ;;  %v796_v27 = vunpack.c.l.bf16 %v562_v14  ;;  %v500_v33 = vld [vmem:[%s7226_s3 + $0x160] sm:$0xff] }
 0x128   : > { %v1690_v46 = vmul.f32 %v1176_v42, %v666_v30  ;;  %v1691_v47 = vmul.f32 %v1176_v42, %v667_v31  ;;  %v1171_v48 = vpop.permute.xlu0 %1170  ;;  %v797_v28 = vunpack.c.h.bf16 %v562_v14  ;;  %v4326_v30 = vld [vmem:[%s6639_s7 + $0xb8] sm:$0xff]  ;;  %v4325_v31 = vld [vmem:[%s6639_s7 + $0xb0] sm:$0xff]  ;;  %v2164_v32 = vunpack.c.h.s8.bf16 %v6758_v44 }
 0x129   : > { %v1688_v51 = vmul.f32 %v1171_v48, %v664_v34  ;;  %v1689_v52 = vmul.f32 %v1171_v48, %v665_v35  ;;  %4454 = vperm.xlu1 %5957, %v4320_v37   ;;  %4449 = vperm.xlu0 %5956, %v4319_v38   ;;  %v6797_v37 = vld [vmem:[%s6244_s5 + $0xc0] sm:$0xff]  ;;  %v2173_v38 = vunpack.c.l.s8.bf16 %v6785_v24  ;;  %v674_v42 = vunpack.c.l.bf16 %v501_v29  ;;  %v565_v48 = vld [vmem:[%s7226_s3 + $0x368] sm:$0xff] }
 0x12a   : > { %2577 = vmatmul.mubr.bf16.gmra.mrb[16].mxu1 %v2152_v39  ;;  %3569 = vmatprep.subr.bf16.mxu0 %v1967_v43  ;;  %v675_v43 = vunpack.c.h.bf16 %v501_v29 }
 0x12b   : > { %v1904_v60 = vpack.c.bf16 %v1690_v46, %v1688_v51  ;;  %3570 = vmatpush1.bf16.msra.mxu0 %v1966_v41  ;;  %v1496_v61 = vpop.permute.xlu1 %1495  ;;  %v1905_v62 = vpack.c.bf16 %v1691_v47, %v1689_v52  ;;  %2586 = vmatprep.mubr.bf16.mxu1 %v2161_v45  ;;  %v672_v46 = vunpack.c.l.bf16 %v500_v33  ;;  %v673_v47 = vunpack.c.h.bf16 %v500_v33  ;;  %v564_v52 = vld [vmem:[%s7226_s3 + $0x360] sm:$0xff] }
 0x12c   : > { %v1818_v0 = vmul.f32 %v1496_v61, %v794_v49  ;;  %v1819_v1 = vmul.f32 %v1496_v61, %v795_v50  ;;  %v1491_v2 = vpop.permute.xlu0 %1490  ;;  %v4328_v49 = vld [vmem:[%s6639_s7 + $0xc8] sm:$0xff]  ;;  %v4327_v50 = vld [vmem:[%s6639_s7 + $0xc0] sm:$0xff]  ;;  %v2168_v51 = vunpack.c.l.s8.bf16 %v6797_v37  ;;  %v802_v61 = vunpack.c.l.bf16 %v565_v48 }
 0x12d   : > { %v1816_v6 = vmul.f32 %v1491_v2, %v792_v53  ;;  %v1817_v7 = vmul.f32 %v1491_v2, %v793_v54  ;;  %4464 = vperm.xlu1 %5957, %v4322_v56   ;;  %4459 = vperm.xlu0 %5956, %v4321_v57   ;;  %v6810_v56 = vld [vmem:[%s6244_s5 + $0xe0] sm:$0xff]  ;;  %v2177_v57 = vunpack.c.h.s8.bf16 %v6772_v5  ;;  %v801_v2 = vunpack.c.h.bf16 %v564_v52  ;;  %v4329_v5 = vld [vmem:[%s6639_s7 + $0xd0] sm:$0xff] }
 0x12e   : > { %2865 = vmatprep.subr.bf16.mxu1 %v1905_v62  ;;  %3283 = vmatmul.mubr.bf16.gmra.mrb[16].mxu0 %v2156_v58  ;;  %v803_v62 = vunpack.c.h.bf16 %v565_v48 }
 0x12f   : > { %v1968_v15 = vpack.c.bf16 %v1818_v0, %v1816_v6  ;;  %2866 = vmatpush1.bf16.msra.mxu1 %v1904_v60  ;;  %v1186_v16 = vpop.permute.xlu1 %1185  ;;  %v1969_v17 = vpack.c.bf16 %v1819_v1, %v1817_v7  ;;  %3292 = vmatprep.mubr.bf16.mxu0 %v2165_v63  ;;  %v800_v1 = vunpack.c.l.bf16 %v564_v52  ;;  %v2172_v6 = vunpack.c.l.s8.bf16 %v6810_v56  ;;  %v502_v7 = vld [vmem:[%s7226_s3 + $0x170] sm:$0xff] }
 0x130   : > { %v1694_v19 = vmul.f32 %v1186_v16, %v670_v3  ;;  %v1695_v20 = vmul.f32 %v1186_v16, %v671_v4  ;;  %v1181_v21 = vpop.permute.xlu0 %1180  ;;  %v503_v3 = vld [vmem:[%s7226_s3 + $0x178] sm:$0xff] }
 0x131   : > { %v1692_v25 = vmul.f32 %v1181_v21, %v668_v8  ;;  %v1693_v26 = vmul.f32 %v1181_v21, %v669_v9  ;;  %4474 = vperm.xlu1 %5957, %v4324_v11   ;;  %4469 = vperm.xlu0 %5956, %v4323_v12   ;;  %v4330_v4 = vld [vmem:[%s6639_s7 + $0xd8] sm:$0xff]  ;;  %v2181_v11 = vunpack.c.h.s8.bf16 %v6785_v24  ;;  %v679_v16 = vunpack.c.h.bf16 %v503_v3  ;;  %v4331_v24 = vld [vmem:[%s6639_s7 + $0xe0] sm:$0xff] }
 0x132   : > { %2587 = vmatmul.mubr.bf16.gmra.mrb[20].mxu1 %v2160_v13  ;;  %3571 = vmatprep.subr.bf16.mxu0 %v1969_v17  ;;  %v6824_v17 = vld [vmem:[%s6244_s5 + $0x108] sm:$0xff]  ;;  %v677_v21 = vunpack.c.h.bf16 %v502_v7 }
 0x133   : > { %v1906_v34 = vpack.c.bf16 %v1694_v19, %v1692_v25  ;;  %3572 = vmatpush1.bf16.msra.mxu0 %v1968_v15  ;;  %v1506_v35 = vpop.permute.xlu1 %1505  ;;  %v1907_v36 = vpack.c.bf16 %v1695_v20, %v1693_v26  ;;  %2596 = vmatprep.mubr.bf16.mxu1 %v2169_v18  ;;  %v678_v15 = vunpack.c.l.bf16 %v503_v3  ;;  %v676_v20 = vunpack.c.l.bf16 %v502_v7  ;;  %v566_v26 = vld [vmem:[%s7226_s3 + $0x370] sm:$0xff] }
 0x134   : > { %v1822_v39 = vmul.f32 %v1506_v35, %v798_v22  ;;  %v1823_v40 = vmul.f32 %v1506_v35, %v799_v23  ;;  %v1501_v41 = vpop.permute.xlu0 %1500  ;;  %v567_v22 = vld [vmem:[%s7226_s3 + $0x378] sm:$0xff]  ;;  %v4332_v23 = vld [vmem:[%s6639_s7 + $0xe8] sm:$0xff]  ;;  %v2176_v25 = vunpack.c.h.s8.bf16 %v6797_v37 }
 0x135   : > { %v1820_v44 = vmul.f32 %v1501_v41, %v796_v27  ;;  %v1821_v45 = vmul.f32 %v1501_v41, %v797_v28  ;;  %4484 = vperm.xlu1 %5957, %v4326_v30   ;;  %4479 = vperm.xlu0 %5956, %v4325_v31   ;;  %v2185_v30 = vunpack.c.l.s8.bf16 %v6824_v17  ;;  %v807_v35 = vunpack.c.h.bf16 %v567_v22  ;;  %v505_v41 = vld [vmem:[%s7226_s3 + $0x188] sm:$0xff] }
 0x136   : > { %2867 = vmatprep.subr.bf16.mxu1 %v1907_v36  ;;  %3293 = vmatmul.mubr.bf16.gmra.mrb[20].mxu0 %v2164_v32  ;;  %v6837_v36 = vld [vmem:[%s6244_s5 + $0x128] sm:$0xff] }
 0x137   : > { %v1970_v53 = vpack.c.bf16 %v1822_v39, %v1820_v44  ;;  %2868 = vmatpush1.bf16.msra.mxu1 %v1906_v34  ;;  %v1196_v54 = vpop.permute.xlu1 %1195  ;;  %v1971_v55 = vpack.c.bf16 %v1823_v40, %v1821_v45  ;;  %3302 = vmatprep.mubr.bf16.mxu0 %v2173_v38  ;;  %v806_v34 = vunpack.c.l.bf16 %v567_v22  ;;  %v804_v39 = vunpack.c.l.bf16 %v566_v26  ;;  %v504_v45 = vld [vmem:[%s7226_s3 + $0x180] sm:$0xff] }
 0x138   : > { %v1698_v58 = vmul.f32 %v1196_v54, %v674_v42  ;;  %v1699_v59 = vmul.f32 %v1196_v54, %v675_v43  ;;  %v1191_v60 = vpop.permute.xlu0 %1190  ;;  %v805_v40 = vunpack.c.h.bf16 %v566_v26  ;;  %v4334_v42 = vld [vmem:[%s6639_s7 + $0xf8] sm:$0xff]  ;;  %v4333_v43 = vld [vmem:[%s6639_s7 + $0xf0] sm:$0xff]  ;;  %v2180_v44 = vunpack.c.h.s8.bf16 %v6810_v56 }
 0x139   : > { %v1696_v63 = vmul.f32 %v1191_v60, %v672_v46  ;;  %v1697_v0 = vmul.f32 %v1191_v60, %v673_v47  ;;  %4494 = vperm.xlu1 %5957, %v4328_v49   ;;  %4489 = vperm.xlu0 %5956, %v4327_v50   ;;  %v6849_v49 = vld [vmem:[%s6244_s5 + $0x100] sm:$0xff]  ;;  %v2189_v50 = vunpack.c.l.s8.bf16 %v6837_v36  ;;  %v682_v54 = vunpack.c.l.bf16 %v505_v41  ;;  %v569_v60 = vld [vmem:[%s7226_s3 + $0x388] sm:$0xff] }
 0x13a   : > { %2597 = vmatmul.mubr.bf16.gmra.mrb[24].mxu1 %v2168_v51  ;;  %3573 = vmatprep.subr.bf16.mxu0 %v1971_v55  ;;  %v683_v55 = vunpack.c.h.bf16 %v505_v41 }
 0x13b   : > { %v1908_v8 = vpack.c.bf16 %v1698_v58, %v1696_v63  ;;  %3574 = vmatpush1.bf16.msra.mxu0 %v1970_v53  ;;  %v1516_v9 = vpop.permute.xlu1 %1515  ;;  %v1909_v10 = vpack.c.bf16 %v1699_v59, %v1697_v0  ;;  %2606 = vmatprep.mubr.bf16.mxu1 %v2177_v57  ;;  %v680_v58 = vunpack.c.l.bf16 %v504_v45  ;;  %v681_v59 = vunpack.c.h.bf16 %v504_v45  ;;  %v568_v0 = vld [vmem:[%s7226_s3 + $0x380] sm:$0xff] }
 0x13c   : > { %v1826_v12 = vmul.f32 %v1516_v9, %v802_v61  ;;  %v1827_v13 = vmul.f32 %v1516_v9, %v803_v62  ;;  %v1511_v14 = vpop.permute.xlu0 %1510  ;;  %v4336_v61 = vld [vmem:[%s6639_s7 + $0x108] sm:$0xff]  ;;  %v4335_v62 = vld [vmem:[%s6639_s7 + $0x100] sm:$0xff]  ;;  %v2184_v63 = vunpack.c.l.s8.bf16 %v6849_v49  ;;  %v810_v9 = vunpack.c.l.bf16 %v569_v60 }
 0x13d   : > { %v1824_v18 = vmul.f32 %v1511_v14, %v800_v1  ;;  %v1825_v19 = vmul.f32 %v1511_v14, %v801_v2  ;;  %4504 = vperm.xlu1 %5957, %v4330_v4   ;;  %4499 = vperm.xlu0 %5956, %v4329_v5   ;;  %v6862_v4 = vld [vmem:[%s6244_s5 + $0x120] sm:$0xff]  ;;  %v2193_v5 = vunpack.c.h.s8.bf16 %v6824_v17  ;;  %v809_v14 = vunpack.c.h.bf16 %v568_v0  ;;  %v4337_v17 = vld [vmem:[%s6639_s7 + $0x110] sm:$0xff] }
 0x13e   : > { %2869 = vmatprep.subr.bf16.mxu1 %v1909_v10  ;;  %3303 = vmatmul.mubr.bf16.gmra.mrb[24].mxu0 %v2172_v6  ;;  %v811_v10 = vunpack.c.h.bf16 %v569_v60 }
 0x13f   : > { %v1972_v27 = vpack.c.bf16 %v1826_v12, %v1824_v18  ;;  %2870 = vmatpush1.bf16.msra.mxu1 %v1908_v8  ;;  %v1206_v28 = vpop.permute.xlu1 %1205  ;;  %v1973_v29 = vpack.c.bf16 %v1827_v13, %v1825_v19  ;;  %3312 = vmatprep.mubr.bf16.mxu0 %v2181_v11  ;;  %v808_v13 = vunpack.c.l.bf16 %v568_v0  ;;  %v2188_v18 = vunpack.c.l.s8.bf16 %v6862_v4  ;;  %v506_v19 = vld [vmem:[%s7226_s3 + $0x190] sm:$0xff] }
 0x140   : > { %v1702_v31 = vmul.f32 %v1206_v28, %v678_v15  ;;  %v1703_v32 = vmul.f32 %v1206_v28, %v679_v16  ;;  %v1201_v33 = vpop.permute.xlu0 %1200  ;;  %v507_v15 = vld [vmem:[%s7226_s3 + $0x198] sm:$0xff] }
 0x141   : > { %v1700_v37 = vmul.f32 %v1201_v33, %v676_v20  ;;  %v1701_v38 = vmul.f32 %v1201_v33, %v677_v21  ;;  %4514 = vperm.xlu1 %5957, %v4332_v23   ;;  %4509 = vperm.xlu0 %5956, %v4331_v24   ;;  %v4338_v16 = vld [vmem:[%s6639_s7 + $0x118] sm:$0xff]  ;;  %v2197_v23 = vunpack.c.h.s8.bf16 %v6837_v36  ;;  %v687_v28 = vunpack.c.h.bf16 %v507_v15  ;;  %v4339_v36 = vld [vmem:[%s6639_s7 + $0x120] sm:$0xff] }
 0x142   : > { %2607 = vmatmul.mubr.bf16.gmra.mrb[28].mxu1 %v2176_v25  ;;  %3575 = vmatprep.subr.bf16.mxu0 %v1973_v29  ;;  %v6876_v29 = vld [vmem:[%s6244_s5 + $0x148] sm:$0xff]  ;;  %v685_v33 = vunpack.c.h.bf16 %v506_v19 }
 0x143   : > { %v1910_v46 = vpack.c.bf16 %v1702_v31, %v1700_v37  ;;  %3576 = vmatpush1.bf16.msra.mxu0 %v1972_v27  ;;  %v1526_v47 = vpop.permute.xlu1 %1525  ;;  %v1911_v48 = vpack.c.bf16 %v1703_v32, %v1701_v38  ;;  %2616 = vmatprep.mubr.bf16.mxu1 %v2185_v30  ;;  %v686_v27 = vunpack.c.l.bf16 %v507_v15  ;;  %v684_v32 = vunpack.c.l.bf16 %v506_v19  ;;  %v570_v38 = vld [vmem:[%s7226_s3 + $0x390] sm:$0xff] }
 0x144   : > { %v1830_v51 = vmul.f32 %v1526_v47, %v806_v34  ;;  %v1831_v52 = vmul.f32 %v1526_v47, %v807_v35  ;;  %v1521_v53 = vpop.permute.xlu0 %1520  ;;  %v571_v34 = vld [vmem:[%s7226_s3 + $0x398] sm:$0xff]  ;;  %v4340_v35 = vld [vmem:[%s6639_s7 + $0x128] sm:$0xff]  ;;  %v2192_v37 = vunpack.c.h.s8.bf16 %v6849_v49 }
 0x145   : > { %v1828_v56 = vmul.f32 %v1521_v53, %v804_v39  ;;  %v1829_v57 = vmul.f32 %v1521_v53, %v805_v40  ;;  %4524 = vperm.xlu1 %5957, %v4334_v42   ;;  %4519 = vperm.xlu0 %5956, %v4333_v43   ;;  %v2201_v42 = vunpack.c.l.s8.bf16 %v6876_v29  ;;  %v815_v47 = vunpack.c.h.bf16 %v571_v34  ;;  %v509_v53 = vld [vmem:[%s7226_s3 + $0x1a8] sm:$0xff] }
 0x146   : > { %2871 = vmatprep.subr.bf16.mxu1 %v1911_v48  ;;  %3313 = vmatmul.mubr.bf16.gmra.mrb[28].mxu0 %v2180_v44  ;;  %v6889_v48 = vld [vmem:[%s6244_s5 + $0x168] sm:$0xff] }
 0x147   : > { %v1974_v1 = vpack.c.bf16 %v1830_v51, %v1828_v56  ;;  %v1975_v2 = vpack.c.bf16 %v1831_v52, %v1829_v57  ;;  %2872 = vmatpush1.bf16.msra.mxu1 %v1910_v46  ;;  %v1216_v3 = vpop.permute.xlu1 %1215  ;;  %3322 = vmatprep.mubr.bf16.mxu0 %v2189_v50  ;;  %v814_v46 = vunpack.c.l.bf16 %v571_v34  ;;  %v812_v51 = vunpack.c.l.bf16 %v570_v38  ;;  %v508_v57 = vld [vmem:[%s7226_s3 + $0x1a0] sm:$0xff] }
 0x148   : > { %v1706_v6 = vmul.f32 %v1216_v3, %v682_v54  ;;  %v1707_v7 = vmul.f32 %v1216_v3, %v683_v55  ;;  %v1211_v8 = vpop.permute.xlu0 %1210  ;;  %v813_v52 = vunpack.c.h.bf16 %v570_v38  ;;  %v4342_v54 = vld [vmem:[%s6639_s7 + $0x138] sm:$0xff]  ;;  %v4341_v55 = vld [vmem:[%s6639_s7 + $0x130] sm:$0xff]  ;;  %v2196_v56 = vunpack.c.h.s8.bf16 %v6862_v4 }
 0x149   : > { %v1704_v11 = vmul.f32 %v1211_v8, %v680_v58  ;;  %v1705_v12 = vmul.f32 %v1211_v8, %v681_v59  ;;  %4534 = vperm.xlu1 %5957, %v4336_v61   ;;  %4529 = vperm.xlu0 %5956, %v4335_v62   ;;  %v6901_v61 = vld [vmem:[%s6244_s5 + $0x140] sm:$0xff]  ;;  %v2205_v62 = vunpack.c.l.s8.bf16 %v6889_v48  ;;  %v691_v3 = vunpack.c.h.bf16 %v509_v53  ;;  %v573_v8 = vld [vmem:[%s7226_s3 + $0x3a8] sm:$0xff] }
 0x14a   : > { %2617 = vmatmul.mubr.bf16.gmra.mrb[32].mxu1 %v2184_v63  ;;  %3577 = vmatprep.subr.bf16.mxu0 %v1975_v2  ;;  %v690_v2 = vunpack.c.l.bf16 %v509_v53 }
 0x14b   : > { %v1912_v20 = vpack.c.bf16 %v1706_v6, %v1704_v11  ;;  %v1913_v21 = vpack.c.bf16 %v1707_v7, %v1705_v12  ;;  %3578 = vmatpush1.bf16.msra.mxu0 %v1974_v1  ;;  %v1536_v22 = vpop.permute.xlu1 %1535  ;;  %2626 = vmatprep.mubr.bf16.mxu1 %v2193_v5  ;;  %v688_v6 = vunpack.c.l.bf16 %v508_v57  ;;  %v689_v7 = vunpack.c.h.bf16 %v508_v57  ;;  %v572_v12 = vld [vmem:[%s7226_s3 + $0x3a0] sm:$0xff] }
 0x14c   : > { %v1834_v24 = vmul.f32 %v1536_v22, %v810_v9  ;;  %v1835_v25 = vmul.f32 %v1536_v22, %v811_v10  ;;  %v1531_v26 = vpop.permute.xlu0 %1530  ;;  %v4344_v9 = vld [vmem:[%s6639_s7 + $0x148] sm:$0xff]  ;;  %v4343_v10 = vld [vmem:[%s6639_s7 + $0x140] sm:$0xff]  ;;  %v2200_v11 = vunpack.c.l.s8.bf16 %v6901_v61  ;;  %v819_v22 = vunpack.c.h.bf16 %v573_v8 }
 0x14d   : > { %v1832_v30 = vmul.f32 %v1531_v26, %v808_v13  ;;  %v1833_v31 = vmul.f32 %v1531_v26, %v809_v14  ;;  %4544 = vperm.xlu1 %5957, %v4338_v16   ;;  %4539 = vperm.xlu0 %5956, %v4337_v17   ;;  %v6914_v16 = vld [vmem:[%s6244_s5 + $0x160] sm:$0xff]  ;;  %v2209_v17 = vunpack.c.h.s8.bf16 %v6876_v29  ;;  %v817_v26 = vunpack.c.h.bf16 %v572_v12  ;;  %v4345_v29 = vld [vmem:[%s6639_s7 + $0x150] sm:$0xff] }
 0x14e   : > { %2873 = vmatprep.subr.bf16.mxu1 %v1913_v21  ;;  %3323 = vmatmul.mubr.bf16.gmra.mrb[32].mxu0 %v2188_v18  ;;  %v818_v21 = vunpack.c.l.bf16 %v573_v8 }
 0x14f   : > { %v1976_v39 = vpack.c.bf16 %v1834_v24, %v1832_v30  ;;  %v1977_v40 = vpack.c.bf16 %v1835_v25, %v1833_v31  ;;  %2874 = vmatpush1.bf16.msra.mxu1 %v1912_v20  ;;  %v1226_v41 = vpop.permute.xlu1 %1225  ;;  %3332 = vmatprep.mubr.bf16.mxu0 %v2197_v23  ;;  %v816_v25 = vunpack.c.l.bf16 %v572_v12  ;;  %v2204_v30 = vunpack.c.l.s8.bf16 %v6914_v16  ;;  %v510_v31 = vld [vmem:[%s7226_s3 + $0x1b0] sm:$0xff] }
 0x150   : > { %v1710_v43 = vmul.f32 %v1226_v41, %v686_v27  ;;  %v1711_v44 = vmul.f32 %v1226_v41, %v687_v28  ;;  %v1221_v45 = vpop.permute.xlu0 %1220  ;;  %v511_v27 = vld [vmem:[%s7226_s3 + $0x1b8] sm:$0xff]  ;;  %v6928_v41 = vld [vmem:[%s6244_s5 + $0x188] sm:$0xff] }
 0x151   : > { %v1708_v49 = vmul.f32 %v1221_v45, %v684_v32  ;;  %v1709_v50 = vmul.f32 %v1221_v45, %v685_v33  ;;  %4554 = vperm.xlu1 %5957, %v4340_v35   ;;  %4549 = vperm.xlu0 %5956, %v4339_v36   ;;  %v4346_v28 = vld [vmem:[%s6639_s7 + $0x158] sm:$0xff]  ;;  %v2213_v35 = vunpack.c.h.s8.bf16 %v6889_v48  ;;  %v693_v45 = vunpack.c.h.bf16 %v510_v31  ;;  %v4347_v48 = vld [vmem:[%s6639_s7 + $0x160] sm:$0xff] }
 0x152   : > { %2627 = vmatmul.mubr.bf16.gmra.mrb[36].mxu1 %v2192_v37  ;;  %3579 = vmatprep.subr.bf16.mxu0 %v1977_v40  ;;  %v695_v40 = vunpack.c.h.bf16 %v511_v27 }
 0x153   : > { %v1914_v58 = vpack.c.bf16 %v1710_v43, %v1708_v49  ;;  %v1915_v59 = vpack.c.bf16 %v1711_v44, %v1709_v50  ;;  %3580 = vmatpush1.bf16.msra.mxu0 %v1976_v39  ;;  %v1546_v60 = vpop.permute.xlu1 %1545  ;;  %2636 = vmatprep.mubr.bf16.mxu1 %v2201_v42  ;;  %v694_v39 = vunpack.c.l.bf16 %v511_v27  ;;  %v692_v44 = vunpack.c.l.bf16 %v510_v31  ;;  %v574_v50 = vld [vmem:[%s7226_s3 + $0x3b0] sm:$0xff] }
 0x154   : > { %v1838_v63 = vmul.f32 %v1546_v60, %v814_v46  ;;  %v1839_v0 = vmul.f32 %v1546_v60, %v815_v47  ;;  %v1541_v1 = vpop.permute.xlu0 %1540  ;;  %v575_v46 = vld [vmem:[%s7226_s3 + $0x3b8] sm:$0xff]  ;;  %v4348_v47 = vld [vmem:[%s6639_s7 + $0x168] sm:$0xff]  ;;  %v2208_v49 = vunpack.c.h.s8.bf16 %v6901_v61 }
 0x155   : > { %v1836_v4 = vmul.f32 %v1541_v1, %v812_v51  ;;  %v1837_v5 = vmul.f32 %v1541_v1, %v813_v52  ;;  %4564 = vperm.xlu1 %5957, %v4342_v54   ;;  %4559 = vperm.xlu0 %5956, %v4341_v55   ;;  %v2217_v54 = vunpack.c.l.s8.bf16 %v6928_v41  ;;  %v6941_v60 = vld [vmem:[%s6244_s5 + $0x1a8] sm:$0xff] }
 0x156   : > { %2875 = vmatprep.subr.bf16.mxu1 %v1915_v59  ;;  %3333 = vmatmul.mubr.bf16.gmra.mrb[36].mxu0 %v2196_v56  ;;  %v823_v59 = vunpack.c.h.bf16 %v575_v46  ;;  %v513_v1 = vld [vmem:[%s7226_s3 + $0x1c8] sm:$0xff] }
 0x157   : > { %v1978_v13 = vpack.c.bf16 %v1838_v63, %v1836_v4  ;;  %v1979_v14 = vpack.c.bf16 %v1839_v0, %v1837_v5  ;;  %2876 = vmatpush1.bf16.msra.mxu1 %v1914_v58  ;;  %v1236_v15 = vpop.permute.xlu1 %1235  ;;  %3342 = vmatprep.mubr.bf16.mxu0 %v2205_v62  ;;  %v822_v58 = vunpack.c.l.bf16 %v575_v46  ;;  %v820_v63 = vunpack.c.l.bf16 %v574_v50  ;;  %v512_v5 = vld [vmem:[%s7226_s3 + $0x1c0] sm:$0xff] }
 0x158   : > { %v1714_v18 = vmul.f32 %v1236_v15, %v690_v2  ;;  %v1715_v19 = vmul.f32 %v1236_v15, %v691_v3  ;;  %v1231_v20 = vpop.permute.xlu0 %1230  ;;  %v821_v0 = vunpack.c.h.bf16 %v574_v50  ;;  %v4350_v2 = vld [vmem:[%s6639_s7 + $0x178] sm:$0xff]  ;;  %v4349_v3 = vld [vmem:[%s6639_s7 + $0x170] sm:$0xff]  ;;  %v2212_v4 = vunpack.c.h.s8.bf16 %v6914_v16 }
 0x159   : > { %v1712_v23 = vmul.f32 %v1231_v20, %v688_v6  ;;  %v1713_v24 = vmul.f32 %v1231_v20, %v689_v7  ;;  %4574 = vperm.xlu1 %5957, %v4344_v9   ;;  %4569 = vperm.xlu0 %5956, %v4343_v10   ;;  %v6953_v9 = vld [vmem:[%s6244_s5 + $0x180] sm:$0xff]  ;;  %v2221_v10 = vunpack.c.l.s8.bf16 %v6941_v60  ;;  %v699_v15 = vunpack.c.h.bf16 %v513_v1  ;;  %v577_v20 = vld [vmem:[%s7226_s3 + $0x3c8] sm:$0xff] }
 0x15a   : > { %2637 = vmatmul.mubr.bf16.gmra.mrb[40].mxu1 %v2200_v11  ;;  %3581 = vmatprep.subr.bf16.mxu0 %v1979_v14  ;;  %v698_v14 = vunpack.c.l.bf16 %v513_v1 }
 0x15b   : > { %v1916_v32 = vpack.c.bf16 %v1714_v18, %v1712_v23  ;;  %v1917_v33 = vpack.c.bf16 %v1715_v19, %v1713_v24  ;;  %3582 = vmatpush1.bf16.msra.mxu0 %v1978_v13  ;;  %v1556_v34 = vpop.permute.xlu1 %1555  ;;  %2646 = vmatprep.mubr.bf16.mxu1 %v2209_v17  ;;  %v696_v18 = vunpack.c.l.bf16 %v512_v5  ;;  %v697_v19 = vunpack.c.h.bf16 %v512_v5  ;;  %v576_v24 = vld [vmem:[%s7226_s3 + $0x3c0] sm:$0xff] }
 0x15c   : > { %v1842_v36 = vmul.f32 %v1556_v34, %v818_v21  ;;  %v1843_v37 = vmul.f32 %v1556_v34, %v819_v22  ;;  %v1551_v38 = vpop.permute.xlu0 %1550  ;;  %v4352_v21 = vld [vmem:[%s6639_s7 + $0x188] sm:$0xff]  ;;  %v4351_v22 = vld [vmem:[%s6639_s7 + $0x180] sm:$0xff]  ;;  %v2216_v23 = vunpack.c.l.s8.bf16 %v6953_v9  ;;  %v827_v34 = vunpack.c.h.bf16 %v577_v20 }
 0x15d   : > { %v1840_v42 = vmul.f32 %v1551_v38, %v816_v25  ;;  %v1841_v43 = vmul.f32 %v1551_v38, %v817_v26  ;;  %4584 = vperm.xlu1 %5957, %v4346_v28   ;;  %4579 = vperm.xlu0 %5956, %v4345_v29   ;;  %v6966_v28 = vld [vmem:[%s6244_s5 + $0x1a0] sm:$0xff]  ;;  %v2225_v29 = vunpack.c.h.s8.bf16 %v6928_v41  ;;  %v825_v38 = vunpack.c.h.bf16 %v576_v24  ;;  %v4353_v41 = vld [vmem:[%s6639_s7 + $0x190] sm:$0xff] }
 0x15e   : > { %2877 = vmatprep.subr.bf16.mxu1 %v1917_v33  ;;  %3343 = vmatmul.mubr.bf16.gmra.mrb[40].mxu0 %v2204_v30  ;;  %v826_v33 = vunpack.c.l.bf16 %v577_v20 }
 0x15f   : > { %v1980_v51 = vpack.c.bf16 %v1842_v36, %v1840_v42  ;;  %v1981_v52 = vpack.c.bf16 %v1843_v37, %v1841_v43  ;;  %2878 = vmatpush1.bf16.msra.mxu1 %v1916_v32  ;;  %v1246_v53 = vpop.permute.xlu1 %1245  ;;  %3352 = vmatprep.mubr.bf16.mxu0 %v2213_v35  ;;  %v824_v37 = vunpack.c.l.bf16 %v576_v24  ;;  %v2220_v42 = vunpack.c.l.s8.bf16 %v6966_v28  ;;  %v514_v43 = vld [vmem:[%s7226_s3 + $0x1d0] sm:$0xff] }
 0x160   : > { %v1718_v55 = vmul.f32 %v1246_v53, %v694_v39  ;;  %v1719_v56 = vmul.f32 %v1246_v53, %v695_v40  ;;  %v1241_v57 = vpop.permute.xlu0 %1240  ;;  %v515_v39 = vld [vmem:[%s7226_s3 + $0x1d8] sm:$0xff]  ;;  %v6980_v53 = vld [vmem:[%s6244_s5 + $0x1c8] sm:$0xff] }
 0x161   : > { %v1716_v61 = vmul.f32 %v1241_v57, %v692_v44  ;;  %v1717_v62 = vmul.f32 %v1241_v57, %v693_v45  ;;  %4594 = vperm.xlu1 %5957, %v4348_v47   ;;  %4589 = vperm.xlu0 %5956, %v4347_v48   ;;  %v4354_v40 = vld [vmem:[%s6639_s7 + $0x198] sm:$0xff]  ;;  %v2229_v47 = vunpack.c.h.s8.bf16 %v6941_v60  ;;  %v701_v57 = vunpack.c.h.bf16 %v514_v43  ;;  %v4355_v60 = vld [vmem:[%s6639_s7 + $0x1a0] sm:$0xff] }
 0x162   : > { %2647 = vmatmul.mubr.bf16.gmra.mrb[44].mxu1 %v2208_v49  ;;  %3583 = vmatprep.subr.bf16.mxu0 %v1981_v52  ;;  %v703_v52 = vunpack.c.h.bf16 %v515_v39 }
 0x163   : > { %v1918_v6 = vpack.c.bf16 %v1718_v55, %v1716_v61  ;;  %v1919_v7 = vpack.c.bf16 %v1719_v56, %v1717_v62  ;;  %3584 = vmatpush1.bf16.msra.mxu0 %v1980_v51  ;;  %v1566_v8 = vpop.permute.xlu1 %1565  ;;  %2656 = vmatprep.mubr.bf16.mxu1 %v2217_v54  ;;  %v702_v51 = vunpack.c.l.bf16 %v515_v39  ;;  %v700_v56 = vunpack.c.l.bf16 %v514_v43  ;;  %v578_v62 = vld [vmem:[%s7226_s3 + $0x3d0] sm:$0xff] }
 0x164   : > { %v1846_v11 = vmul.f32 %v1566_v8, %v822_v58  ;;  %v1847_v12 = vmul.f32 %v1566_v8, %v823_v59  ;;  %v1561_v13 = vpop.permute.xlu0 %1560  ;;  %v579_v58 = vld [vmem:[%s7226_s3 + $0x3d8] sm:$0xff]  ;;  %v4356_v59 = vld [vmem:[%s6639_s7 + $0x1a8] sm:$0xff]  ;;  %v2224_v61 = vunpack.c.h.s8.bf16 %v6953_v9 }
 0x165   : > { %v1844_v16 = vmul.f32 %v1561_v13, %v820_v63  ;;  %v1845_v17 = vmul.f32 %v1561_v13, %v821_v0  ;;  %4604 = vperm.xlu1 %5957, %v4350_v2   ;;  %4599 = vperm.xlu0 %5956, %v4349_v3   ;;  %v2233_v2 = vunpack.c.l.s8.bf16 %v6980_v53  ;;  %v6993_v8 = vld [vmem:[%s6244_s5 + $0x1e8] sm:$0xff] }
 0x166   : > { %2879 = vmatprep.subr.bf16.mxu1 %v1919_v7  ;;  %3353 = vmatmul.mubr.bf16.gmra.mrb[44].mxu0 %v2212_v4  ;;  %v831_v7 = vunpack.c.h.bf16 %v579_v58  ;;  %v517_v13 = vld [vmem:[%s7226_s3 + $0x1e8] sm:$0xff] }
 0x167   : > { %v1982_v25 = vpack.c.bf16 %v1846_v11, %v1844_v16  ;;  %v1983_v26 = vpack.c.bf16 %v1847_v12, %v1845_v17  ;;  %2880 = vmatpush1.bf16.msra.mxu1 %v1918_v6  ;;  %v1256_v27 = vpop.permute.xlu1 %1255  ;;  %3362 = vmatprep.mubr.bf16.mxu0 %v2221_v10  ;;  %v830_v6 = vunpack.c.l.bf16 %v579_v58  ;;  %v828_v11 = vunpack.c.l.bf16 %v578_v62  ;;  %v516_v17 = vld [vmem:[%s7226_s3 + $0x1e0] sm:$0xff] }
 0x168   : > { %v1722_v30 = vmul.f32 %v1256_v27, %v698_v14  ;;  %v1723_v31 = vmul.f32 %v1256_v27, %v699_v15  ;;  %v1251_v32 = vpop.permute.xlu0 %1250  ;;  %v829_v12 = vunpack.c.h.bf16 %v578_v62  ;;  %v4358_v14 = vld [vmem:[%s6639_s7 + $0x1b8] sm:$0xff]  ;;  %v4357_v15 = vld [vmem:[%s6639_s7 + $0x1b0] sm:$0xff]  ;;  %v2228_v16 = vunpack.c.h.s8.bf16 %v6966_v28 }
 0x169   : > { %v1720_v35 = vmul.f32 %v1251_v32, %v696_v18  ;;  %v1721_v36 = vmul.f32 %v1251_v32, %v697_v19  ;;  %4614 = vperm.xlu1 %5957, %v4352_v21   ;;  %4609 = vperm.xlu0 %5956, %v4351_v22   ;;  %v7005_v21 = vld [vmem:[%s6244_s5 + $0x1c0] sm:$0xff]  ;;  %v2237_v22 = vunpack.c.l.s8.bf16 %v6993_v8  ;;  %v707_v27 = vunpack.c.h.bf16 %v517_v13  ;;  %v581_v32 = vld [vmem:[%s7226_s3 + $0x3e8] sm:$0xff] }
 0x16a   : > { %2657 = vmatmul.mubr.bf16.gmra.mrb[48].mxu1 %v2216_v23  ;;  %3585 = vmatprep.subr.bf16.mxu0 %v1983_v26  ;;  %v706_v26 = vunpack.c.l.bf16 %v517_v13 }
 0x16b   : > { %v1920_v44 = vpack.c.bf16 %v1722_v30, %v1720_v35  ;;  %v1921_v45 = vpack.c.bf16 %v1723_v31, %v1721_v36  ;;  %3586 = vmatpush1.bf16.msra.mxu0 %v1982_v25  ;;  %v1576_v46 = vpop.permute.xlu1 %1575  ;;  %2666 = vmatprep.mubr.bf16.mxu1 %v2225_v29  ;;  %v704_v30 = vunpack.c.l.bf16 %v516_v17  ;;  %v705_v31 = vunpack.c.h.bf16 %v516_v17  ;;  %v580_v36 = vld [vmem:[%s7226_s3 + $0x3e0] sm:$0xff] }
 0x16c   : > { %v1850_v48 = vmul.f32 %v1576_v46, %v826_v33  ;;  %v1851_v49 = vmul.f32 %v1576_v46, %v827_v34  ;;  %v1571_v50 = vpop.permute.xlu0 %1570  ;;  %v4360_v33 = vld [vmem:[%s6639_s7 + $0x1c8] sm:$0xff]  ;;  %v4359_v34 = vld [vmem:[%s6639_s7 + $0x1c0] sm:$0xff]  ;;  %v2232_v35 = vunpack.c.l.s8.bf16 %v7005_v21  ;;  %v835_v46 = vunpack.c.h.bf16 %v581_v32 }
 0x16d   : > { %v1848_v54 = vmul.f32 %v1571_v50, %v824_v37  ;;  %v1849_v55 = vmul.f32 %v1571_v50, %v825_v38  ;;  %4624 = vperm.xlu1 %5957, %v4354_v40   ;;  %4619 = vperm.xlu0 %5956, %v4353_v41   ;;  %v7018_v40 = vld [vmem:[%s6244_s5 + $0x1e0] sm:$0xff]  ;;  %v2241_v41 = vunpack.c.h.s8.bf16 %v6980_v53  ;;  %v833_v50 = vunpack.c.h.bf16 %v580_v36  ;;  %v4361_v53 = vld [vmem:[%s6639_s7 + $0x1d0] sm:$0xff] }
 0x16e   : > { %2881 = vmatprep.subr.bf16.mxu1 %v1921_v45  ;;  %3363 = vmatmul.mubr.bf16.gmra.mrb[48].mxu0 %v2220_v42  ;;  %v834_v45 = vunpack.c.l.bf16 %v581_v32 }
 0x16f   : > { %v1984_v63 = vpack.c.bf16 %v1850_v48, %v1848_v54  ;;  %v1985_v0 = vpack.c.bf16 %v1851_v49, %v1849_v55  ;;  %2882 = vmatpush1.bf16.msra.mxu1 %v1920_v44  ;;  %v1266_v1 = vpop.permute.xlu1 %1265  ;;  %3372 = vmatprep.mubr.bf16.mxu0 %v2229_v47  ;;  %v832_v49 = vunpack.c.l.bf16 %v580_v36  ;;  %v2236_v54 = vunpack.c.l.s8.bf16 %v7018_v40  ;;  %v518_v55 = vld [vmem:[%s7226_s3 + $0x1f0] sm:$0xff] }
 0x170   : > { %v1726_v3 = vmul.f32 %v1266_v1, %v702_v51  ;;  %v1727_v4 = vmul.f32 %v1266_v1, %v703_v52  ;;  %v1261_v5 = vpop.permute.xlu0 %1260  ;;  %v519_v51 = vld [vmem:[%s7226_s3 + $0x1f8] sm:$0xff]  ;;  %v7032_v1 = vld [vmem:[%s6244_s5 + $0x208] sm:$0xff] }
 0x171   : > { %v1724_v9 = vmul.f32 %v1261_v5, %v700_v56  ;;  %v1725_v10 = vmul.f32 %v1261_v5, %v701_v57  ;;  %4634 = vperm.xlu1 %5957, %v4356_v59   ;;  %4629 = vperm.xlu0 %5956, %v4355_v60   ;;  %v4362_v52 = vld [vmem:[%s6639_s7 + $0x1d8] sm:$0xff]  ;;  %v2245_v59 = vunpack.c.h.s8.bf16 %v6993_v8  ;;  %v709_v5 = vunpack.c.h.bf16 %v518_v55  ;;  %v4363_v8 = vld [vmem:[%s6639_s7 + $0x1e0] sm:$0xff] }
 0x172   : > { %2667 = vmatmul.mubr.bf16.gmra.mrb[52].mxu1 %v2224_v61  ;;  %3587 = vmatprep.subr.bf16.mxu0 %v1985_v0  ;;  %v711_v0 = vunpack.c.h.bf16 %v519_v51 }
 0x173   : > { %v1922_v18 = vpack.c.bf16 %v1726_v3, %v1724_v9  ;;  %v1923_v19 = vpack.c.bf16 %v1727_v4, %v1725_v10  ;;  %3588 = vmatpush1.bf16.msra.mxu0 %v1984_v63  ;;  %v1586_v20 = vpop.permute.xlu1 %1585  ;;  %2676 = vmatprep.mubr.bf16.mxu1 %v2233_v2  ;;  %v710_v63 = vunpack.c.l.bf16 %v519_v51  ;;  %v708_v4 = vunpack.c.l.bf16 %v518_v55  ;;  %v582_v10 = vld [vmem:[%s7226_s3 + $0x3f0] sm:$0xff] }
 0x174   : > { %v1854_v23 = vmul.f32 %v1586_v20, %v830_v6  ;;  %v1855_v24 = vmul.f32 %v1586_v20, %v831_v7  ;;  %v1581_v25 = vpop.permute.xlu0 %1580  ;;  %v583_v6 = vld [vmem:[%s7226_s3 + $0x3f8] sm:$0xff]  ;;  %v4364_v7 = vld [vmem:[%s6639_s7 + $0x1e8] sm:$0xff]  ;;  %v2240_v9 = vunpack.c.h.s8.bf16 %v7005_v21 }
 0x175   : > { %v1852_v28 = vmul.f32 %v1581_v25, %v828_v11  ;;  %v1853_v29 = vmul.f32 %v1581_v25, %v829_v12  ;;  %4644 = vperm.xlu1 %5957, %v4358_v14   ;;  %4639 = vperm.xlu0 %5956, %v4357_v15   ;;  %v2249_v14 = vunpack.c.l.s8.bf16 %v7032_v1  ;;  %v2061_v20 = vld [vmem:[%s6244_s5 + $0x228] sm:$0xff]  ;;  %v4366_v25 = vld [vmem:[%s6639_s7 + $0x1f8] sm:$0xff] }
 0x176   : > { %2883 = vmatprep.subr.bf16.mxu1 %v1923_v19  ;;  %3373 = vmatmul.mubr.bf16.gmra.mrb[52].mxu0 %v2228_v16  ;;  %v839_v19 = vunpack.c.h.bf16 %v583_v6  ;;  %v2253_v32 = vunpack.c.l.s8.bf16 %v2061_v20 }
 0x177   : > { %v1986_v37 = vpack.c.bf16 %v1854_v23, %v1852_v28  ;;  %v1987_v38 = vpack.c.bf16 %v1855_v24, %v1853_v29  ;;  %2884 = vmatpush1.bf16.msra.mxu1 %v1922_v18  ;;  %v1276_v39 = vpop.permute.xlu1 %1275  ;;  %3382 = vmatprep.mubr.bf16.mxu0 %v2237_v22  ;;  %v838_v18 = vunpack.c.l.bf16 %v583_v6  ;;  %v836_v23 = vunpack.c.l.bf16 %v582_v10 }
 0x178   : > { %v1730_v42 = vmul.f32 %v1276_v39, %v706_v26  ;;  %v1731_v43 = vmul.f32 %v1276_v39, %v707_v27  ;;  %v1271_v44 = vpop.permute.xlu0 %1270  ;;  %v837_v24 = vunpack.c.h.bf16 %v582_v10  ;;  %v4365_v26 = vld [vmem:[%s6639_s7 + $0x1f0] sm:$0xff]  ;;  %v2244_v27 = vunpack.c.h.s8.bf16 %v7018_v40  ;;  %v2080_v10 = vld [vmem:[%s6244_s5 + $0x2c0] sm:$0xff] }
 0x179   : > { %v1728_v47 = vmul.f32 %v1271_v44, %v704_v30  ;;  %v1729_v48 = vmul.f32 %v1271_v44, %v705_v31  ;;  %4654 = vperm.xlu1 %5957, %v4360_v33   ;;  %4649 = vperm.xlu0 %5956, %v4359_v34   ;;  %v2056_v31 = vld [vmem:[%s6244_s5 + $0x200] sm:$0xff]  ;;  %v2261_v44 = vunpack.c.h.s8.bf16 %v2061_v20  ;;  %v2093_v20 = vld [vmem:[%s6244_s5 + $0x328] sm:$0xff] }
 0x17a   : > { %2677 = vmatmul.mubr.bf16.gmra.mrb[56].mxu1 %v2232_v35  ;;  %3589 = vmatprep.subr.bf16.mxu0 %v1987_v38  ;;  %v2248_v38 = vunpack.c.l.s8.bf16 %v2056_v31 }
 0x17b   : > { %v1924_v56 = vpack.c.bf16 %v1730_v42, %v1728_v47  ;;  %v1925_v57 = vpack.c.bf16 %v1731_v43, %v1729_v48  ;;  %3590 = vmatpush1.bf16.msra.mxu0 %v1986_v37  ;;  %v1596_v58 = vpop.permute.xlu1 %1595  ;;  %2686 = vmatprep.mubr.bf16.mxu1 %v2241_v41  ;;  %v2060_v41 = vld [vmem:[%s6244_s5 + $0x220] sm:$0xff]  ;;  %v2257_v42 = vunpack.c.h.s8.bf16 %v7032_v1  ;;  %v2069_v48 = vld [vmem:[%s6244_s5 + $0x268] sm:$0xff] }
 0x17c   : > { %v1858_v60 = vmul.f32 %v1596_v58, %v834_v45  ;;  %v1859_v61 = vmul.f32 %v1596_v58, %v835_v46  ;;  %v1591_v62 = vpop.permute.xlu0 %1590  ;;  %v2252_v43 = vunpack.c.l.s8.bf16 %v2060_v41  ;;  %v2065_v45 = vld [vmem:[%s6244_s5 + $0x248] sm:$0xff]  ;;  %v2256_v46 = vunpack.c.h.s8.bf16 %v2056_v31  ;;  %v2076_v1 = vld [vmem:[%s6244_s5 + $0x2a0] sm:$0xff] }
 0x17d   : > { %v1856_v2 = vmul.f32 %v1591_v62, %v832_v49  ;;  %v1857_v3 = vmul.f32 %v1591_v62, %v833_v50  ;;  %4664 = vperm.xlu1 %5957, %v4362_v52   ;;  %4659 = vperm.xlu0 %5956, %v4361_v53   ;;  %v2265_v47 = vunpack.c.l.s8.bf16 %v2065_v45  ;;  %v2260_v49 = vunpack.c.h.s8.bf16 %v2060_v41  ;;  %v2064_v50 = vld [vmem:[%s6244_s5 + $0x240] sm:$0xff]  ;;  %v2105_v41 = vld [vmem:[%s6244_s5 + $0x388] sm:$0xff] }
 0x17e   : > { %2885 = vmatprep.subr.bf16.mxu1 %v1925_v57  ;;  %3383 = vmatmul.mubr.bf16.gmra.mrb[56].mxu0 %v2236_v54  ;;  %v2269_v51 = vunpack.c.l.s8.bf16 %v2069_v48  ;;  %v2264_v52 = vunpack.c.l.s8.bf16 %v2064_v50  ;;  %v2068_v53 = vld [vmem:[%s6244_s5 + $0x260] sm:$0xff]  ;;  %v2273_v54 = vunpack.c.h.s8.bf16 %v2065_v45  ;;  %v2073_v57 = vld [vmem:[%s6244_s5 + $0x288] sm:$0xff]  ;;  %v2272_v58 = vunpack.c.h.s8.bf16 %v2064_v50 }
 0x17f   : > { %v1988_v11 = vpack.c.bf16 %v1858_v60, %v1856_v2  ;;  %v1989_v12 = vpack.c.bf16 %v1859_v61, %v1857_v3  ;;  %2886 = vmatpush1.bf16.msra.mxu1 %v1924_v56  ;;  %v1286_v13 = vpop.permute.xlu1 %1285  ;;  %3392 = vmatprep.mubr.bf16.mxu0 %v2245_v59  ;;  %v2268_v55 = vunpack.c.l.s8.bf16 %v2068_v53  ;;  %v2277_v56 = vunpack.c.h.s8.bf16 %v2069_v48  ;;  %v2077_v60 = vld [vmem:[%s6244_s5 + $0x2a8] sm:$0xff]  ;;  %v2072_v62 = vld [vmem:[%s6244_s5 + $0x280] sm:$0xff] }
 0x180   : > { %v1734_v15 = vmul.f32 %v1286_v13, %v710_v63  ;;  %v1735_v16 = vmul.f32 %v1286_v13, %v711_v0  ;;  %v1281_v17 = vpop.permute.xlu0 %1280  ;;  %v2281_v59 = vunpack.c.l.s8.bf16 %v2073_v57  ;;  %v2276_v61 = vunpack.c.h.s8.bf16 %v2068_v53  ;;  %v2084_v13 = vld [vmem:[%s6244_s5 + $0x2e0] sm:$0xff]  ;;  %v2113_v53 = vld [vmem:[%s6244_s5 + $0x3c8] sm:$0xff] }
 0x181   : > { %v1732_v21 = vmul.f32 %v1281_v17, %v708_v4  ;;  %v1733_v22 = vmul.f32 %v1281_v17, %v709_v5  ;;  %4674 = vperm.xlu1 %5957, %v4364_v7   ;;  %4669 = vperm.xlu0 %5956, %v4363_v8   ;;  %v2285_v63 = vunpack.c.l.s8.bf16 %v2077_v60  ;;  %v2280_v0 = vunpack.c.l.s8.bf16 %v2072_v62  ;;  %v2081_v5 = vld [vmem:[%s6244_s5 + $0x2c8] sm:$0xff] }
 0x182   : > { %2687 = vmatmul.mubr.bf16.gmra.mrb[60].mxu1 %v2240_v9  ;;  %3591 = vmatprep.subr.bf16.mxu0 %v1989_v12  ;;  %v2289_v2 = vunpack.c.h.s8.bf16 %v2073_v57  ;;  %v2284_v3 = vunpack.c.l.s8.bf16 %v2076_v1  ;;  %v2293_v4 = vunpack.c.h.s8.bf16 %v2077_v60  ;;  %v2288_v6 = vunpack.c.h.s8.bf16 %v2072_v62  ;;  %v2085_v8 = vld [vmem:[%s6244_s5 + $0x2e8] sm:$0xff] }
 0x183   : > { %v1926_v28 = vpack.c.bf16 %v1734_v15, %v1732_v21  ;;  %v1927_v29 = vpack.c.bf16 %v1735_v16, %v1733_v22  ;;  %3592 = vmatpush1.bf16.msra.mxu0 %v1988_v11  ;;  %v1606_v30 = vpop.permute.xlu1 %1605  ;;  %2696 = vmatprep.mubr.bf16.mxu1 %v2249_v14  ;;  %v2297_v7 = vunpack.c.l.s8.bf16 %v2081_v5  ;;  %v2292_v9 = vunpack.c.h.s8.bf16 %v2076_v1  ;;  %v2089_v17 = vld [vmem:[%s6244_s5 + $0x308] sm:$0xff]  ;;  %v2088_v22 = vld [vmem:[%s6244_s5 + $0x300] sm:$0xff]  ;;  %v1995_v1 = vld [vmem:[%s6244_s5 + $0x18] sm:$0xff] }
 0x184   : > { %v1862_v33 = vmul.f32 %v1606_v30, %v838_v18  ;;  %v1863_v34 = vmul.f32 %v1606_v30, %v839_v19  ;;  %v1601_v35 = vpop.permute.xlu0 %1600  ;;  %v2301_v11 = vunpack.c.l.s8.bf16 %v2085_v8  ;;  %v2296_v12 = vunpack.c.l.s8.bf16 %v2080_v10 }
 0x185   : > { %v1860_v36 = vmul.f32 %v1601_v35, %v836_v23  ;;  %v1861_v37 = vmul.f32 %v1601_v35, %v837_v24  ;;  %4684 = vperm.xlu1 %5957, %v4366_v25   ;;  %4679 = vperm.xlu0 %5956, %v4365_v26   ;;  %v2305_v14 = vunpack.c.h.s8.bf16 %v2081_v5  ;;  %v2300_v15 = vunpack.c.l.s8.bf16 %v2084_v13  ;;  %v2092_v25 = vld [vmem:[%s6244_s5 + $0x320] sm:$0xff] }
 0x186   : > { %2887 = vmatprep.subr.bf16.mxu1 %v1927_v29  ;;  %3393 = vmatmul.mubr.bf16.gmra.mrb[60].mxu0 %v2244_v27  ;;  %v2309_v16 = vunpack.c.h.s8.bf16 %v2085_v8  ;;  %v2304_v18 = vunpack.c.h.s8.bf16 %v2080_v10  ;;  %v2313_v19 = vunpack.c.l.s8.bf16 %v2089_v17  ;;  %v2308_v21 = vunpack.c.h.s8.bf16 %v2084_v13  ;;  %v2097_v29 = vld [vmem:[%s6244_s5 + $0x348] sm:$0xff]  ;;  %v2003_v13 = vld [vmem:[%s6244_s5 + $0x58] sm:$0xff] }
 0x187   : > { %v1990_v39 = vpack.c.bf16 %v1862_v33, %v1860_v36  ;;  %v1991_v40 = vpack.c.bf16 %v1863_v34, %v1861_v37  ;;  %2888 = vmatpush1.bf16.msra.mxu1 %v1926_v28  ;;  %3402 = vmatprep.mubr.bf16.mxu0 %v2253_v32  ;;  %v2317_v23 = vunpack.c.l.s8.bf16 %v2093_v20  ;;  %v2312_v24 = vunpack.c.l.s8.bf16 %v2088_v22  ;;  %v2101_v32 = vld [vmem:[%s6244_s5 + $0x368] sm:$0xff]  ;;  %v2096_v34 = vld [vmem:[%s6244_s5 + $0x340] sm:$0xff] }
 0x188   : > { %v2321_v26 = vunpack.c.h.s8.bf16 %v2089_v17  ;;  %v2316_v27 = vunpack.c.l.s8.bf16 %v2092_v25  ;;  %v2325_v28 = vunpack.c.h.s8.bf16 %v2093_v20  ;;  %v2320_v30 = vunpack.c.h.s8.bf16 %v2088_v22  ;;  %v2100_v37 = vld [vmem:[%s6244_s5 + $0x360] sm:$0xff] }
 0x189   : > { %3593 = vmatprep.subr.bf16.mxu0 %v1991_v40  ;;  %v2329_v31 = vunpack.c.l.s8.bf16 %v2097_v29  ;;  %v2324_v33 = vunpack.c.h.s8.bf16 %v2092_v25  ;;  %v2333_v35 = vunpack.c.l.s8.bf16 %v2101_v32  ;;  %v2328_v36 = vunpack.c.l.s8.bf16 %v2096_v34  ;;  %v2011_v25 = vld [vmem:[%s6244_s5 + $0x98] sm:$0xff] }
 0x18a   : > { %2697 = vmatmul.mubr.bf16.gmra.mrb[64].mxu1 %v2248_v38  ;;  %3594 = vmatpush1.bf16.msra.mxu0 %v1990_v39  ;;  %v2337_v38 = vunpack.c.h.s8.bf16 %v2097_v29  ;;  %v2332_v39 = vunpack.c.l.s8.bf16 %v2100_v37  ;;  %v2341_v40 = vunpack.c.h.s8.bf16 %v2101_v32  ;;  %v2340_v45 = vunpack.c.h.s8.bf16 %v2100_v37  ;;  %v2019_v37 = vld [vmem:[%s6244_s5 + $0xd8] sm:$0xff] }
 0x18b   : > { %2706 = vmatprep.mubr.bf16.mxu1 %v2257_v42  ;;  %v2336_v42 = vunpack.c.h.s8.bf16 %v2096_v34  ;;  %v2353_v50 = vunpack.c.h.s8.bf16 %v2105_v41  ;;  %v2369_v62 = vunpack.c.h.s8.bf16 %v2113_v53  ;;  %v2131_v10 = vunpack.c.h.s8.bf16 %v1995_v1 }
 0x18c   : > { %v2147_v22 = vunpack.c.h.s8.bf16 %v2003_v13  ;;  %v2163_v34 = vunpack.c.h.s8.bf16 %v2011_v25 }
 0x18e   : > { %3403 = vmatmul.mubr.bf16.gmra.mrb[64].mxu0 %v2252_v43  ;;  %v2345_v43 = vunpack.c.l.s8.bf16 %v2105_v41 }
 0x18f   : > { %3412 = vmatprep.mubr.bf16.mxu0 %v2261_v44  ;;  %v2109_v44 = vld [vmem:[%s6244_s5 + $0x3a8] sm:$0xff] }
 0x192   : > { %2707 = vmatmul.mubr.bf16.gmra.mrb[68].mxu1 %v2256_v46  ;;  %v2104_v46 = vld [vmem:[%s6244_s5 + $0x380] sm:$0xff] }
 0x193   : > { %2716 = vmatprep.mubr.bf16.mxu1 %v2265_v47  ;;  %v2349_v47 = vunpack.c.l.s8.bf16 %v2109_v44  ;;  %v2344_v48 = vunpack.c.l.s8.bf16 %v2104_v46 }
 0x196   : > { %3413 = vmatmul.mubr.bf16.gmra.mrb[68].mxu0 %v2260_v49  ;;  %v2108_v49 = vld [vmem:[%s6244_s5 + $0x3a0] sm:$0xff] }
 0x197   : > { %3422 = vmatprep.mubr.bf16.mxu0 %v2269_v51  ;;  %v2348_v51 = vunpack.c.l.s8.bf16 %v2108_v49  ;;  %v2356_v57 = vunpack.c.h.s8.bf16 %v2108_v49  ;;  %v2027_v49 = vld [vmem:[%s6244_s5 + $0x118] sm:$0xff] }
 0x19a   : > { %2717 = vmatmul.mubr.bf16.gmra.mrb[72].mxu1 %v2264_v52  ;;  %v2357_v52 = vunpack.c.h.s8.bf16 %v2109_v44 }
 0x19b   : > { %2726 = vmatprep.mubr.bf16.mxu1 %v2273_v54  ;;  %v2352_v54 = vunpack.c.h.s8.bf16 %v2104_v46  ;;  %v2179_v46 = vunpack.c.h.s8.bf16 %v2019_v37 }
 0x19e   : > { %3423 = vmatmul.mubr.bf16.gmra.mrb[72].mxu0 %v2268_v55  ;;  %v2361_v55 = vunpack.c.l.s8.bf16 %v2113_v53 }
 0x19f   : > { %3432 = vmatprep.mubr.bf16.mxu0 %v2277_v56  ;;  %v2117_v56 = vld [vmem:[%s6244_s5 + $0x3e8] sm:$0xff] }
 0x1a2   : > { %2727 = vmatmul.mubr.bf16.gmra.mrb[76].mxu1 %v2272_v58  ;;  %v2112_v58 = vld [vmem:[%s6244_s5 + $0x3c0] sm:$0xff] }
 0x1a3   : > { %2736 = vmatprep.mubr.bf16.mxu1 %v2281_v59  ;;  %v2365_v59 = vunpack.c.l.s8.bf16 %v2117_v56  ;;  %v2360_v60 = vunpack.c.l.s8.bf16 %v2112_v58 }
 0x1a6   : > { %3433 = vmatmul.mubr.bf16.gmra.mrb[76].mxu0 %v2276_v61  ;;  %v2116_v61 = vld [vmem:[%s6244_s5 + $0x3e0] sm:$0xff] }
 0x1a7   : > { %3442 = vmatprep.mubr.bf16.mxu0 %v2285_v63  ;;  %v2364_v63 = vunpack.c.l.s8.bf16 %v2116_v61  ;;  %v2372_v5 = vunpack.c.h.s8.bf16 %v2116_v61  ;;  %v2035_v61 = vld [vmem:[%s6244_s5 + $0x158] sm:$0xff] }
 0x1aa   : > { %2737 = vmatmul.mubr.bf16.gmra.mrb[80].mxu1 %v2280_v0  ;;  %v2373_v0 = vunpack.c.h.s8.bf16 %v2117_v56 }
 0x1ab   : > { %2746 = vmatprep.mubr.bf16.mxu1 %v2289_v2  ;;  %v2368_v2 = vunpack.c.h.s8.bf16 %v2112_v58  ;;  %v2195_v58 = vunpack.c.h.s8.bf16 %v2027_v49 }
 0x1ae   : > { %3443 = vmatmul.mubr.bf16.gmra.mrb[80].mxu0 %v2284_v3  ;;  %v2123_v3 = vunpack.c.l.s8.bf16 %v1995_v1 }
 0x1af   : > { %3452 = vmatprep.mubr.bf16.mxu0 %v2293_v4  ;;  %v1999_v4 = vld [vmem:[%s6244_s5 + $0x38] sm:$0xff] }
 0x1b2   : > { %2747 = vmatmul.mubr.bf16.gmra.mrb[84].mxu1 %v2288_v6  ;;  %v1994_v6 = vld [vmem:[%s6244_s5 + $0x10] sm:$0xff] }
 0x1b3   : > { %2756 = vmatprep.mubr.bf16.mxu1 %v2297_v7  ;;  %v2127_v7 = vunpack.c.l.s8.bf16 %v1999_v4  ;;  %v2122_v8 = vunpack.c.l.s8.bf16 %v1994_v6 }
 0x1b6   : > { %3453 = vmatmul.mubr.bf16.gmra.mrb[84].mxu0 %v2292_v9  ;;  %v1998_v9 = vld [vmem:[%s6244_s5 + $0x30] sm:$0xff] }
 0x1b7   : > { %3462 = vmatprep.mubr.bf16.mxu0 %v2301_v11  ;;  %v2126_v11 = vunpack.c.l.s8.bf16 %v1998_v9  ;;  %v2134_v17 = vunpack.c.h.s8.bf16 %v1998_v9  ;;  %v2043_v9 = vld [vmem:[%s6244_s5 + $0x198] sm:$0xff] }
 0x1ba   : > { %2757 = vmatmul.mubr.bf16.gmra.mrb[88].mxu1 %v2296_v12  ;;  %v2135_v12 = vunpack.c.h.s8.bf16 %v1999_v4 }
 0x1bb   : > { %2766 = vmatprep.mubr.bf16.mxu1 %v2305_v14  ;;  %v2130_v14 = vunpack.c.h.s8.bf16 %v1994_v6  ;;  %v2211_v6 = vunpack.c.h.s8.bf16 %v2035_v61 }
 0x1be   : > { %3463 = vmatmul.mubr.bf16.gmra.mrb[88].mxu0 %v2300_v15  ;;  %v2139_v15 = vunpack.c.l.s8.bf16 %v2003_v13 }
 0x1bf   : > { %3472 = vmatprep.mubr.bf16.mxu0 %v2309_v16  ;;  %v2007_v16 = vld [vmem:[%s6244_s5 + $0x78] sm:$0xff] }
 0x1c2   : > { %2767 = vmatmul.mubr.bf16.gmra.mrb[92].mxu1 %v2304_v18  ;;  %v2002_v18 = vld [vmem:[%s6244_s5 + $0x50] sm:$0xff] }
 0x1c3   : > { %2776 = vmatprep.mubr.bf16.mxu1 %v2313_v19  ;;  %v2143_v19 = vunpack.c.l.s8.bf16 %v2007_v16  ;;  %v2138_v20 = vunpack.c.l.s8.bf16 %v2002_v18 }
 0x1c6   : > { %3473 = vmatmul.mubr.bf16.gmra.mrb[92].mxu0 %v2308_v21  ;;  %v2006_v21 = vld [vmem:[%s6244_s5 + $0x70] sm:$0xff] }
 0x1c7   : > { %3482 = vmatprep.mubr.bf16.mxu0 %v2317_v23  ;;  %v2142_v23 = vunpack.c.l.s8.bf16 %v2006_v21  ;;  %v2150_v29 = vunpack.c.h.s8.bf16 %v2006_v21  ;;  %v2051_v21 = vld [vmem:[%s6244_s5 + $0x1d8] sm:$0xff] }
 0x1ca   : > { %2777 = vmatmul.mubr.bf16.gmra.mrb[96].mxu1 %v2312_v24  ;;  %v2151_v24 = vunpack.c.h.s8.bf16 %v2007_v16 }
 0x1cb   : > { %2786 = vmatprep.mubr.bf16.mxu1 %v2321_v26  ;;  %v2146_v26 = vunpack.c.h.s8.bf16 %v2002_v18  ;;  %v2227_v18 = vunpack.c.h.s8.bf16 %v2043_v9 }
 0x1ce   : > { %3483 = vmatmul.mubr.bf16.gmra.mrb[96].mxu0 %v2316_v27  ;;  %v2155_v27 = vunpack.c.l.s8.bf16 %v2011_v25 }
 0x1cf   : > { %3492 = vmatprep.mubr.bf16.mxu0 %v2325_v28  ;;  %v2015_v28 = vld [vmem:[%s6244_s5 + $0xb8] sm:$0xff] }
 0x1d2   : > { %2787 = vmatmul.mubr.bf16.gmra.mrb[100].mxu1 %v2320_v30  ;;  %v2010_v30 = vld [vmem:[%s6244_s5 + $0x90] sm:$0xff] }
 0x1d3   : > { %2796 = vmatprep.mubr.bf16.mxu1 %v2329_v31  ;;  %v2159_v31 = vunpack.c.l.s8.bf16 %v2015_v28  ;;  %v2154_v32 = vunpack.c.l.s8.bf16 %v2010_v30 }
 0x1d6   : > { %3493 = vmatmul.mubr.bf16.gmra.mrb[100].mxu0 %v2324_v33  ;;  %v2014_v33 = vld [vmem:[%s6244_s5 + $0xb0] sm:$0xff] }
 0x1d7   : > { %3502 = vmatprep.mubr.bf16.mxu0 %v2333_v35  ;;  %v2158_v35 = vunpack.c.l.s8.bf16 %v2014_v33  ;;  %v2166_v41 = vunpack.c.h.s8.bf16 %v2014_v33  ;;  %v2059_v33 = vld [vmem:[%s6244_s5 + $0x218] sm:$0xff] }
 0x1da   : > { %2797 = vmatmul.mubr.bf16.gmra.mrb[104].mxu1 %v2328_v36  ;;  %v2167_v36 = vunpack.c.h.s8.bf16 %v2015_v28 }
 0x1db   : > { %2806 = vmatprep.mubr.bf16.mxu1 %v2337_v38  ;;  %v2162_v38 = vunpack.c.h.s8.bf16 %v2010_v30  ;;  %v2243_v30 = vunpack.c.h.s8.bf16 %v2051_v21 }
 0x1de   : > { %3503 = vmatmul.mubr.bf16.gmra.mrb[104].mxu0 %v2332_v39  ;;  %v2171_v39 = vunpack.c.l.s8.bf16 %v2019_v37 }
 0x1df   : > { %3512 = vmatprep.mubr.bf16.mxu0 %v2341_v40  ;;  %v2023_v40 = vld [vmem:[%s6244_s5 + $0xf8] sm:$0xff] }
 0x1e2   : > { %2807 = vmatmul.mubr.bf16.gmra.mrb[108].mxu1 %v2336_v42  ;;  %v2018_v42 = vld [vmem:[%s6244_s5 + $0xd0] sm:$0xff] }
 0x1e3   : > { %2816 = vmatprep.mubr.bf16.mxu1 %v2345_v43  ;;  %v2175_v43 = vunpack.c.l.s8.bf16 %v2023_v40  ;;  %v2170_v44 = vunpack.c.l.s8.bf16 %v2018_v42 }
 0x1e6   : > { %3513 = vmatmul.mubr.bf16.gmra.mrb[108].mxu0 %v2340_v45  ;;  %v2022_v45 = vld [vmem:[%s6244_s5 + $0xf0] sm:$0xff] }
 0x1e7   : > { %3522 = vmatprep.mubr.bf16.mxu0 %v2349_v47  ;;  %v2174_v47 = vunpack.c.l.s8.bf16 %v2022_v45  ;;  %v2182_v53 = vunpack.c.h.s8.bf16 %v2022_v45  ;;  %v2067_v45 = vld [vmem:[%s6244_s5 + $0x258] sm:$0xff] }
 0x1ea   : > { %2817 = vmatmul.mubr.bf16.gmra.mrb[112].mxu1 %v2344_v48  ;;  %v2183_v48 = vunpack.c.h.s8.bf16 %v2023_v40 }
 0x1eb   : > { %2826 = vmatprep.mubr.bf16.mxu1 %v2353_v50  ;;  %v2178_v50 = vunpack.c.h.s8.bf16 %v2018_v42  ;;  %v2259_v42 = vunpack.c.h.s8.bf16 %v2059_v33 }
 0x1ee   : > { %3523 = vmatmul.mubr.bf16.gmra.mrb[112].mxu0 %v2348_v51  ;;  %v2187_v51 = vunpack.c.l.s8.bf16 %v2027_v49 }
 0x1ef   : > { %3532 = vmatprep.mubr.bf16.mxu0 %v2357_v52  ;;  %v2031_v52 = vld [vmem:[%s6244_s5 + $0x138] sm:$0xff] }
 0x1f2   : > { %2827 = vmatmul.mubr.bf16.gmra.mrb[116].mxu1 %v2352_v54  ;;  %v2026_v54 = vld [vmem:[%s6244_s5 + $0x110] sm:$0xff] }
 0x1f3   : > { %2836 = vmatprep.mubr.bf16.mxu1 %v2361_v55  ;;  %v2191_v55 = vunpack.c.l.s8.bf16 %v2031_v52  ;;  %v2186_v56 = vunpack.c.l.s8.bf16 %v2026_v54 }
 0x1f6   : > { %3533 = vmatmul.mubr.bf16.gmra.mrb[116].mxu0 %v2356_v57  ;;  %v2030_v57 = vld [vmem:[%s6244_s5 + $0x130] sm:$0xff] }
 0x1f7   : > { %3542 = vmatprep.mubr.bf16.mxu0 %v2365_v59  ;;  %v2190_v59 = vunpack.c.l.s8.bf16 %v2030_v57  ;;  %v2198_v1 = vunpack.c.h.s8.bf16 %v2030_v57  ;;  %v2075_v57 = vld [vmem:[%s6244_s5 + $0x298] sm:$0xff] }
 0x1fa   : > { %2837 = vmatmul.mubr.bf16.gmra.mrb[120].mxu1 %v2360_v60  ;;  %v2199_v60 = vunpack.c.h.s8.bf16 %v2031_v52 }
 0x1fb   : > { %2846 = vmatprep.mubr.bf16.mxu1 %v2369_v62  ;;  %v2194_v62 = vunpack.c.h.s8.bf16 %v2026_v54  ;;  %v2275_v54 = vunpack.c.h.s8.bf16 %v2067_v45 }
 0x1fe   : > { %3543 = vmatmul.mubr.bf16.gmra.mrb[120].mxu0 %v2364_v63  ;;  %v2203_v63 = vunpack.c.l.s8.bf16 %v2035_v61 }
 0x1ff   : > { %3552 = vmatprep.mubr.bf16.mxu0 %v2373_v0  ;;  %v2039_v0 = vld [vmem:[%s6244_s5 + $0x178] sm:$0xff] }
 0x202   : > { %2847 = vmatmul.mubr.bf16.gmra.mrb[124].mxu1 %v2368_v2  ;;  %v2034_v2 = vld [vmem:[%s6244_s5 + $0x150] sm:$0xff] }
 0x203   : > { %2889 = vmatprep.mubr.bf16.mxu1 %v2123_v3  ;;  %v2207_v3 = vunpack.c.l.s8.bf16 %v2039_v0  ;;  %v2202_v4 = vunpack.c.l.s8.bf16 %v2034_v2 }
 0x206   : > { %3553 = vmatmul.mubr.bf16.gmra.mrb[124].mxu0 %v2372_v5  ;;  %v2038_v5 = vld [vmem:[%s6244_s5 + $0x170] sm:$0xff] }
 0x207   : > { %3595 = vmatprep.mubr.bf16.mxu0 %v2127_v7  ;;  %v2206_v7 = vunpack.c.l.s8.bf16 %v2038_v5  ;;  %v2214_v13 = vunpack.c.h.s8.bf16 %v2038_v5  ;;  %v2083_v5 = vld [vmem:[%s6244_s5 + $0x2d8] sm:$0xff] }
 0x20a   : > { %2890 = vmatmul.mubr.bf16.vlgmr.msra.gmra.mrb[0].mxu1 %v2122_v8  ;;  %v2215_v8 = vunpack.c.h.s8.bf16 %v2039_v0 }
 0x20b   : > { %2899 = vmatprep.mubr.bf16.mxu1 %v2131_v10  ;;  %v2210_v10 = vunpack.c.h.s8.bf16 %v2034_v2  ;;  %v2291_v2 = vunpack.c.h.s8.bf16 %v2075_v57 }
 0x20e   : > { %3596 = vmatmul.mubr.bf16.vlgmr.msra.gmra.mrb[0].mxu0 %v2126_v11  ;;  %v2219_v11 = vunpack.c.l.s8.bf16 %v2043_v9 }
 0x20f   : > { %3605 = vmatprep.mubr.bf16.mxu0 %v2135_v12  ;;  %v2047_v12 = vld [vmem:[%s6244_s5 + $0x1b8] sm:$0xff] }
 0x212   : > { %2900 = vmatmul.mubr.bf16.gmra.mrb[4].mxu1 %v2130_v14  ;;  %v2042_v14 = vld [vmem:[%s6244_s5 + $0x190] sm:$0xff] }
 0x213   : > { %2909 = vmatprep.mubr.bf16.mxu1 %v2139_v15  ;;  %v2223_v15 = vunpack.c.l.s8.bf16 %v2047_v12  ;;  %v2218_v16 = vunpack.c.l.s8.bf16 %v2042_v14 }
 0x216   : > { %3606 = vmatmul.mubr.bf16.gmra.mrb[4].mxu0 %v2134_v17  ;;  %v2046_v17 = vld [vmem:[%s6244_s5 + $0x1b0] sm:$0xff] }
 0x217   : > { %3615 = vmatprep.mubr.bf16.mxu0 %v2143_v19  ;;  %v2222_v19 = vunpack.c.l.s8.bf16 %v2046_v17  ;;  %v2230_v25 = vunpack.c.h.s8.bf16 %v2046_v17  ;;  %v2091_v17 = vld [vmem:[%s6244_s5 + $0x318] sm:$0xff] }
 0x21a   : > { %2910 = vmatmul.mubr.bf16.gmra.mrb[8].mxu1 %v2138_v20  ;;  %v2231_v20 = vunpack.c.h.s8.bf16 %v2047_v12 }
 0x21b   : > { %2919 = vmatprep.mubr.bf16.mxu1 %v2147_v22  ;;  %v2226_v22 = vunpack.c.h.s8.bf16 %v2042_v14  ;;  %v2307_v14 = vunpack.c.h.s8.bf16 %v2083_v5 }
 0x21e   : > { %3616 = vmatmul.mubr.bf16.gmra.mrb[8].mxu0 %v2142_v23  ;;  %v2235_v23 = vunpack.c.l.s8.bf16 %v2051_v21 }
 0x21f   : > { %3625 = vmatprep.mubr.bf16.mxu0 %v2151_v24  ;;  %v2055_v24 = vld [vmem:[%s6244_s5 + $0x1f8] sm:$0xff] }
 0x222   : > { %2920 = vmatmul.mubr.bf16.gmra.mrb[12].mxu1 %v2146_v26  ;;  %v2050_v26 = vld [vmem:[%s6244_s5 + $0x1d0] sm:$0xff] }
 0x223   : > { %2929 = vmatprep.mubr.bf16.mxu1 %v2155_v27  ;;  %v2239_v27 = vunpack.c.l.s8.bf16 %v2055_v24  ;;  %v2234_v28 = vunpack.c.l.s8.bf16 %v2050_v26 }
 0x226   : > { %3626 = vmatmul.mubr.bf16.gmra.mrb[12].mxu0 %v2150_v29  ;;  %v2054_v29 = vld [vmem:[%s6244_s5 + $0x1f0] sm:$0xff] }
 0x227   : > { %3635 = vmatprep.mubr.bf16.mxu0 %v2159_v31  ;;  %v2238_v31 = vunpack.c.l.s8.bf16 %v2054_v29  ;;  %v2246_v37 = vunpack.c.h.s8.bf16 %v2054_v29  ;;  %v2099_v29 = vld [vmem:[%s6244_s5 + $0x358] sm:$0xff] }
 0x22a   : > { %2930 = vmatmul.mubr.bf16.gmra.mrb[16].mxu1 %v2154_v32  ;;  %v2247_v32 = vunpack.c.h.s8.bf16 %v2055_v24 }
 0x22b   : > { %2939 = vmatprep.mubr.bf16.mxu1 %v2163_v34  ;;  %v2242_v34 = vunpack.c.h.s8.bf16 %v2050_v26  ;;  %v2323_v26 = vunpack.c.h.s8.bf16 %v2091_v17 }
 0x22e   : > { %3636 = vmatmul.mubr.bf16.gmra.mrb[16].mxu0 %v2158_v35  ;;  %v2251_v35 = vunpack.c.l.s8.bf16 %v2059_v33 }
 0x22f   : > { %3645 = vmatprep.mubr.bf16.mxu0 %v2167_v36  ;;  %v2063_v36 = vld [vmem:[%s6244_s5 + $0x238] sm:$0xff] }
 0x232   : > { %2940 = vmatmul.mubr.bf16.gmra.mrb[20].mxu1 %v2162_v38  ;;  %v2058_v38 = vld [vmem:[%s6244_s5 + $0x210] sm:$0xff] }
 0x233   : > { %2949 = vmatprep.mubr.bf16.mxu1 %v2171_v39  ;;  %v2255_v39 = vunpack.c.l.s8.bf16 %v2063_v36  ;;  %v2250_v40 = vunpack.c.l.s8.bf16 %v2058_v38 }
 0x236   : > { %3646 = vmatmul.mubr.bf16.gmra.mrb[20].mxu0 %v2166_v41  ;;  %v2062_v41 = vld [vmem:[%s6244_s5 + $0x230] sm:$0xff] }
 0x237   : > { %3655 = vmatprep.mubr.bf16.mxu0 %v2175_v43  ;;  %v2254_v43 = vunpack.c.l.s8.bf16 %v2062_v41  ;;  %v2262_v49 = vunpack.c.h.s8.bf16 %v2062_v41  ;;  %v2107_v41 = vld [vmem:[%s6244_s5 + $0x398] sm:$0xff] }
 0x23a   : > { %2950 = vmatmul.mubr.bf16.gmra.mrb[24].mxu1 %v2170_v44  ;;  %v2263_v44 = vunpack.c.h.s8.bf16 %v2063_v36 }
 0x23b   : > { %2959 = vmatprep.mubr.bf16.mxu1 %v2179_v46  ;;  %v2258_v46 = vunpack.c.h.s8.bf16 %v2058_v38  ;;  %v2339_v38 = vunpack.c.h.s8.bf16 %v2099_v29 }
 0x23e   : > { %3656 = vmatmul.mubr.bf16.gmra.mrb[24].mxu0 %v2174_v47  ;;  %v2267_v47 = vunpack.c.l.s8.bf16 %v2067_v45 }
 0x23f   : > { %3665 = vmatprep.mubr.bf16.mxu0 %v2183_v48  ;;  %v2071_v48 = vld [vmem:[%s6244_s5 + $0x278] sm:$0xff] }
 0x242   : > { %2960 = vmatmul.mubr.bf16.gmra.mrb[28].mxu1 %v2178_v50  ;;  %v2066_v50 = vld [vmem:[%s6244_s5 + $0x250] sm:$0xff] }
 0x243   : > { %2969 = vmatprep.mubr.bf16.mxu1 %v2187_v51  ;;  %v2271_v51 = vunpack.c.l.s8.bf16 %v2071_v48  ;;  %v2266_v52 = vunpack.c.l.s8.bf16 %v2066_v50 }
 0x246   : > { %3666 = vmatmul.mubr.bf16.gmra.mrb[28].mxu0 %v2182_v53  ;;  %v2070_v53 = vld [vmem:[%s6244_s5 + $0x270] sm:$0xff] }
 0x247   : > { %3675 = vmatprep.mubr.bf16.mxu0 %v2191_v55  ;;  %v2270_v55 = vunpack.c.l.s8.bf16 %v2070_v53  ;;  %v2278_v61 = vunpack.c.h.s8.bf16 %v2070_v53  ;;  %v4370_v53 = vpop.permute.xlu0 %4369 }
 0x24a   : > { %2970 = vmatmul.mubr.bf16.gmra.mrb[32].mxu1 %v2186_v56  ;;  %v2279_v56 = vunpack.c.h.s8.bf16 %v2071_v48  ;;  %v2111_v48 = vld [vmem:[%s6244_s5 + $0x3b8] sm:$0xff] }
 0x24b   : > { %2979 = vmatprep.mubr.bf16.mxu1 %v2195_v58  ;;  %v2274_v58 = vunpack.c.h.s8.bf16 %v2066_v50 }
 0x24e   : > { %3676 = vmatmul.mubr.bf16.gmra.mrb[32].mxu0 %v2190_v59  ;;  %v2283_v59 = vunpack.c.l.s8.bf16 %v2075_v57  ;;  %v2351_v57 = vunpack.c.l.s8.bf16 %v2111_v48 }
 0x24f   : > { %3685 = vmatprep.mubr.bf16.mxu0 %v2199_v60  ;;  %v2079_v60 = vld [vmem:[%s6244_s5 + $0x2b8] sm:$0xff] }
 0x252   : > { %2980 = vmatmul.mubr.bf16.gmra.mrb[36].mxu1 %v2194_v62  ;;  %v2074_v62 = vld [vmem:[%s6244_s5 + $0x290] sm:$0xff] }
 0x253   : > { %2989 = vmatprep.mubr.bf16.mxu1 %v2203_v63  ;;  %v2287_v63 = vunpack.c.l.s8.bf16 %v2079_v60  ;;  %v2282_v0 = vunpack.c.l.s8.bf16 %v2074_v62 }
 0x256   : > { %3686 = vmatmul.mubr.bf16.gmra.mrb[36].mxu0 %v2198_v1  ;;  %v2078_v1 = vld [vmem:[%s6244_s5 + $0x2b0] sm:$0xff] }
 0x257   : > { %3695 = vmatprep.mubr.bf16.mxu0 %v2207_v3  ;;  %v2286_v3 = vunpack.c.l.s8.bf16 %v2078_v1  ;;  %v2294_v9 = vunpack.c.h.s8.bf16 %v2078_v1 }
 0x25a   : > { %2990 = vmatmul.mubr.bf16.gmra.mrb[40].mxu1 %v2202_v4  ;;  %v2295_v4 = vunpack.c.h.s8.bf16 %v2079_v60 }
 0x25b   : > { %2999 = vmatprep.mubr.bf16.mxu1 %v2211_v6  ;;  %v2290_v6 = vunpack.c.h.s8.bf16 %v2074_v62 }
 0x25e   : > { %3696 = vmatmul.mubr.bf16.gmra.mrb[40].mxu0 %v2206_v7  ;;  %v2299_v7 = vunpack.c.l.s8.bf16 %v2083_v5 }
 0x25f   : > { %3705 = vmatprep.mubr.bf16.mxu0 %v2215_v8  ;;  %v2087_v8 = vld [vmem:[%s6244_s5 + $0x2f8] sm:$0xff] }
 0x262   : > { %3000 = vmatmul.mubr.bf16.gmra.mrb[44].mxu1 %v2210_v10  ;;  %v2082_v10 = vld [vmem:[%s6244_s5 + $0x2d0] sm:$0xff] }
 0x263   : > { %3009 = vmatprep.mubr.bf16.mxu1 %v2219_v11  ;;  %v2303_v11 = vunpack.c.l.s8.bf16 %v2087_v8  ;;  %v2298_v12 = vunpack.c.l.s8.bf16 %v2082_v10 }
 0x266   : > { %3706 = vmatmul.mubr.bf16.gmra.mrb[44].mxu0 %v2214_v13  ;;  %v2086_v13 = vld [vmem:[%s6244_s5 + $0x2f0] sm:$0xff] }
 0x267   : > { %3715 = vmatprep.mubr.bf16.mxu0 %v2223_v15  ;;  %v2302_v15 = vunpack.c.l.s8.bf16 %v2086_v13  ;;  %v2310_v21 = vunpack.c.h.s8.bf16 %v2086_v13 }
 0x26a   : > { %3010 = vmatmul.mubr.bf16.gmra.mrb[48].mxu1 %v2218_v16  ;;  %v2311_v16 = vunpack.c.h.s8.bf16 %v2087_v8  ;;  %v2355_v8 = vunpack.c.h.s8.bf16 %v2107_v41 }
 0x26b   : > { %3019 = vmatprep.mubr.bf16.mxu1 %v2227_v18  ;;  %v2306_v18 = vunpack.c.h.s8.bf16 %v2082_v10 }
 0x26e   : > { %3716 = vmatmul.mubr.bf16.gmra.mrb[48].mxu0 %v2222_v19  ;;  %v2315_v19 = vunpack.c.l.s8.bf16 %v2091_v17 }
 0x26f   : > { %3725 = vmatprep.mubr.bf16.mxu0 %v2231_v20  ;;  %v2095_v20 = vld [vmem:[%s6244_s5 + $0x338] sm:$0xff] }
 0x272   : > { %3020 = vmatmul.mubr.bf16.gmra.mrb[52].mxu1 %v2226_v22  ;;  %v2090_v22 = vld [vmem:[%s6244_s5 + $0x310] sm:$0xff] }
 0x273   : > { %3029 = vmatprep.mubr.bf16.mxu1 %v2235_v23  ;;  %v2319_v23 = vunpack.c.l.s8.bf16 %v2095_v20  ;;  %v2314_v24 = vunpack.c.l.s8.bf16 %v2090_v22 }
 0x276   : > { %3726 = vmatmul.mubr.bf16.gmra.mrb[52].mxu0 %v2230_v25  ;;  %v2094_v25 = vld [vmem:[%s6244_s5 + $0x330] sm:$0xff] }
 0x277   : > { %3735 = vmatprep.mubr.bf16.mxu0 %v2239_v27  ;;  %v2318_v27 = vunpack.c.l.s8.bf16 %v2094_v25  ;;  %v2326_v33 = vunpack.c.h.s8.bf16 %v2094_v25 }
 0x27a   : > { %3030 = vmatmul.mubr.bf16.gmra.mrb[56].mxu1 %v2234_v28  ;;  %v2327_v28 = vunpack.c.h.s8.bf16 %v2095_v20 }
 0x27b   : > { %3039 = vmatprep.mubr.bf16.mxu1 %v2243_v30  ;;  %v2322_v30 = vunpack.c.h.s8.bf16 %v2090_v22  ;;  %v2115_v22 = vld [vmem:[%s6244_s5 + $0x3d8] sm:$0xff] }
 0x27e   : > { %3736 = vmatmul.mubr.bf16.gmra.mrb[56].mxu0 %v2238_v31  ;;  %v2331_v31 = vunpack.c.l.s8.bf16 %v2099_v29 }
 0x27f   : > { %3745 = vmatprep.mubr.bf16.mxu0 %v2247_v32  ;;  %v2103_v32 = vld [vmem:[%s6244_s5 + $0x378] sm:$0xff] }
 0x282   : > { %3040 = vmatmul.mubr.bf16.gmra.mrb[60].mxu1 %v2242_v34  ;;  %v2098_v34 = vld [vmem:[%s6244_s5 + $0x350] sm:$0xff] }
 0x283   : > { %3049 = vmatprep.mubr.bf16.mxu1 %v2251_v35  ;;  %v2335_v35 = vunpack.c.l.s8.bf16 %v2103_v32  ;;  %v2330_v36 = vunpack.c.l.s8.bf16 %v2098_v34 }
 0x286   : > { %3746 = vmatmul.mubr.bf16.gmra.mrb[60].mxu0 %v2246_v37  ;;  %v2102_v37 = vld [vmem:[%s6244_s5 + $0x370] sm:$0xff] }
 0x287   : > { %3755 = vmatprep.mubr.bf16.mxu0 %v2255_v39  ;;  %v2334_v39 = vunpack.c.l.s8.bf16 %v2102_v37 }
 0x28a   : > { %3050 = vmatmul.mubr.bf16.gmra.mrb[64].mxu1 %v2250_v40  ;;  %v2343_v40 = vunpack.c.h.s8.bf16 %v2103_v32 }
 0x28b   : > { %3059 = vmatprep.mubr.bf16.mxu1 %v2259_v42 }
 0x28e   : > { %3756 = vmatmul.mubr.bf16.gmra.mrb[64].mxu0 %v2254_v43 }
 0x28f   : > { %3765 = vmatprep.mubr.bf16.mxu0 %v2263_v44  ;;  %v2338_v44 = vunpack.c.h.s8.bf16 %v2098_v34 }
 0x292   : > { %3060 = vmatmul.mubr.bf16.gmra.mrb[68].mxu1 %v2258_v46  ;;  %v2347_v46 = vunpack.c.l.s8.bf16 %v2107_v41 }
 0x293   : > { %3069 = vmatprep.mubr.bf16.mxu1 %v2267_v47 }
 0x296   : > { %3766 = vmatmul.mubr.bf16.gmra.mrb[68].mxu0 %v2262_v49 }
 0x297   : > { %3775 = vmatprep.mubr.bf16.mxu0 %v2271_v51 }
 0x29a   : > { %3070 = vmatmul.mubr.bf16.gmra.mrb[72].mxu1 %v2266_v52  ;;  %v2342_v52 = vunpack.c.h.s8.bf16 %v2102_v37 }
 0x29b   : > { %3079 = vmatprep.mubr.bf16.mxu1 %v2275_v54 }
 0x29e   : > { %3776 = vmatmul.mubr.bf16.gmra.mrb[72].mxu0 %v2270_v55 }
 0x29f   : > { %3785 = vmatprep.mubr.bf16.mxu0 %v2279_v56  ;;  %v2106_v56 = vld [vmem:[%s6244_s5 + $0x390] sm:$0xff] }
 0x2a0   : > { %v2354_v29 = vunpack.c.h.s8.bf16 %v2106_v56 }
 0x2a2   : > { %3080 = vmatmul.mubr.bf16.gmra.mrb[76].mxu1 %v2274_v58 }
 0x2a3   : > { %3089 = vmatprep.mubr.bf16.mxu1 %v2283_v59 }
 0x2a6   : > { %3786 = vmatmul.mubr.bf16.gmra.mrb[76].mxu0 %v2278_v61  ;;  %v4375_v61 = vpop.permute.xlu1 %4374 }
 0x2a7   : > { %3795 = vmatprep.mubr.bf16.mxu0 %v2287_v63 }
 0x2aa   : > { %3090 = vmatmul.mubr.bf16.gmra.mrb[80].mxu1 %v2282_v0 }
 0x2ab   : > { %3099 = vmatprep.mubr.bf16.mxu1 %v2291_v2 }
 0x2ae   : > { %3796 = vmatmul.mubr.bf16.gmra.mrb[80].mxu0 %v2286_v3  ;;  %v2346_v3 = vunpack.c.l.s8.bf16 %v2106_v56 }
 0x2af   : > { %3805 = vmatprep.mubr.bf16.mxu0 %v2295_v4 }
 0x2b2   : > { %3100 = vmatmul.mubr.bf16.gmra.mrb[84].mxu1 %v2290_v6 }
 0x2b3   : > { %3109 = vmatprep.mubr.bf16.mxu1 %v2299_v7  ;;  %v2110_v7 = vld [vmem:[%s6244_s5 + $0x3b0] sm:$0xff] }
 0x2b6   : > { %3806 = vmatmul.mubr.bf16.gmra.mrb[84].mxu0 %v2294_v9 }
 0x2b7   : > { %3815 = vmatprep.mubr.bf16.mxu0 %v2303_v11 }
 0x2ba   : > { %3110 = vmatmul.mubr.bf16.gmra.mrb[88].mxu1 %v2298_v12 }
 0x2bb   : > { %3119 = vmatprep.mubr.bf16.mxu1 %v2307_v14  ;;  %v2350_v14 = vunpack.c.l.s8.bf16 %v2110_v7 }
 0x2be   : > { %3816 = vmatmul.mubr.bf16.gmra.mrb[88].mxu0 %v2302_v15  ;;  %v4380_v15 = vpop.permute.xlu0 %4379 }
 0x2bf   : > { %3825 = vmatprep.mubr.bf16.mxu0 %v2311_v16 }
 0x2c2   : > { %3120 = vmatmul.mubr.bf16.gmra.mrb[92].mxu1 %v2306_v18  ;;  %v2359_v18 = vunpack.c.h.s8.bf16 %v2111_v48  ;;  %v4390_v41 = vpop.permute.xlu0 %4389 }
 0x2c3   : > { %3129 = vmatprep.mubr.bf16.mxu1 %v2315_v19 }
 0x2c6   : > { %3826 = vmatmul.mubr.bf16.gmra.mrb[92].mxu0 %v2310_v21 }
 0x2c7   : > { %3835 = vmatprep.mubr.bf16.mxu0 %v2319_v23  ;;  %v4385_v23 = vpop.permute.xlu1 %4384 }
 0x2ca   : > { %3130 = vmatmul.mubr.bf16.gmra.mrb[96].mxu1 %v2314_v24 }
 0x2cb   : > { %3139 = vmatprep.mubr.bf16.mxu1 %v2323_v26 }
 0x2ce   : > { %3836 = vmatmul.mubr.bf16.gmra.mrb[96].mxu0 %v2318_v27 }
 0x2cf   : > { %3845 = vmatprep.mubr.bf16.mxu0 %v2327_v28 }
 0x2d2   : > { %3140 = vmatmul.mubr.bf16.gmra.mrb[100].mxu1 %v2322_v30 }
 0x2d3   : > { %3149 = vmatprep.mubr.bf16.mxu1 %v2331_v31 }
 0x2d6   : > { %3846 = vmatmul.mubr.bf16.gmra.mrb[100].mxu0 %v2326_v33  ;;  %v2363_v33 = vunpack.c.l.s8.bf16 %v2115_v22 }
 0x2d7   : > { %3855 = vmatprep.mubr.bf16.mxu0 %v2335_v35  ;;  %v2119_v35 = vld [vmem:[%s6244_s5 + $0x3f8] sm:$0xff] }
 0x2da   : > { %3150 = vmatmul.mubr.bf16.gmra.mrb[104].mxu1 %v2330_v36 }
 0x2db   : > { %3159 = vmatprep.mubr.bf16.mxu1 %v2339_v38 }
 0x2dd   : > { %v2891_v42 = vpop.f32.mrb[0].mxu1 }
 0x2de   : > { %v2893_v43 = vpop.f32.mrb[1].mxu1  ;;  %3856 = vmatmul.mubr.bf16.gmra.mrb[104].mxu0 %v2334_v39 }
 0x2df   : > { %v2895_v45 = vpop.f32.mrb[2].mxu1  ;;  %3865 = vmatprep.mubr.bf16.mxu0 %v2343_v40  ;;  %v2358_v40 = vunpack.c.h.s8.bf16 %v2110_v7 }
 0x2e0   : > { %v2897_v47 = vpop.f32.mrb[3].mxu1 }
 0x2e1   : > { %v3597_v49 = vpop.f32.mrb[0].mxu0 }
 0x2e2   : > { %v5547_v50 = vadd.f32 %v3597_v49, %v2891_v42  ;;  %3160 = vmatmul.mubr.bf16.gmra.mrb[108].mxu1 %v2338_v44  ;;  %v3599_v51 = vpop.f32.mrb[1].mxu0  ;;  %v2114_v44 = vld [vmem:[%s6244_s5 + $0x3d0] sm:$0xff]  ;;  %v4395_v49 = vpop.permute.xlu1 %4394 }
 0x2e3   : > { %v5548_v54 = vadd.f32 %v3599_v51, %v2893_v43  ;;  %v3601_v55 = vpop.f32.mrb[2].mxu0  ;;  %3169 = vmatprep.mubr.bf16.mxu1 %v2347_v46 }
 0x2e4   : > { %v4687_v58 = vmul.f32 %v5547_v50, %v4370_v53  ;;  %v5549_v59 = vadd.f32 %v3601_v55, %v2895_v45  ;;  %v3603_v60 = vpop.f32.mrb[3].mxu0  ;;  %v2367_v45 = vunpack.c.l.s8.bf16 %v2119_v35  ;;  %v2362_v55 = vunpack.c.l.s8.bf16 %v2114_v44 }
 0x2e5   : > { %v4688_v62 = vmul.f32 %v5548_v54, %v4370_v53  ;;  %v5550_v63 = vadd.f32 %v3603_v60, %v2897_v47  ;;  %v2901_v0 = vpop.f32.mrb[4].mxu1  ;;  %v2371_v60 = vunpack.c.h.s8.bf16 %v2115_v22 }
 0x2e6   : > { %v4689_v1 = vmul.f32 %v5549_v59, %v4375_v61  ;;  %v2903_v2 = vpop.f32.mrb[5].mxu1  ;;  %3866 = vmatmul.mubr.bf16.gmra.mrb[108].mxu0 %v2342_v52  ;;  %v2118_v59 = vld [vmem:[%s6244_s5 + $0x3f0] sm:$0xff] }
 0x2e7   : > { %v5483_v4 = vpack.c.bf16 %v4688_v62, %v4687_v58  ;;  %v4690_v5 = vmul.f32 %v5550_v63, %v4375_v61  ;;  %v2905_v6 = vpop.f32.mrb[6].mxu1  ;;  %3875 = vmatprep.mubr.bf16.mxu0 %v2351_v57 }
 0x2e8   : > { %v2907_v9 = vpop.f32.mrb[7].mxu1 }
 0x2e9   : > { %5199 = vst [vmem:[%s7143_s23] sm:$0xff] %v5483_v4  ;;  %v5484_v10 = vpack.c.bf16 %v4690_v5, %v4689_v1  ;;  %v3607_v11 = vpop.f32.mrb[4].mxu0 }
 0x2ea   : > { %v5551_v12 = vadd.f32 %v3607_v11, %v2901_v0  ;;  %3170 = vmatmul.mubr.bf16.gmra.mrb[112].mxu1 %v2346_v3  ;;  %v3609_v13 = vpop.f32.mrb[5].mxu0  ;;  %v4400_v3 = vpop.permute.xlu0 %4399 }
 0x2eb   : > { %5200 = vst [vmem:[%s7143_s23 + $0x8] sm:$0xff] %v5484_v10  ;;  %v5552_v16 = vadd.f32 %v3609_v13, %v2903_v2  ;;  %v3611_v17 = vpop.f32.mrb[6].mxu0  ;;  %3179 = vmatprep.mubr.bf16.mxu1 %v2355_v8  ;;  %v2366_v2 = vunpack.c.l.s8.bf16 %v2118_v59  ;;  %v4405_v10 = vpop.permute.xlu1 %4404 }
 0x2ec   : > { %v4691_v19 = vmul.f32 %v5551_v12, %v4380_v15  ;;  %v5553_v20 = vadd.f32 %v3611_v17, %v2905_v6  ;;  %v3613_v21 = vpop.f32.mrb[7].mxu0  ;;  %v2375_v6 = vunpack.c.h.s8.bf16 %v2119_v35 }
 0x2ed   : > { %v4692_v24 = vmul.f32 %v5552_v16, %v4380_v15  ;;  %v5554_v25 = vadd.f32 %v3613_v21, %v2907_v9  ;;  %v2911_v26 = vpop.f32.mrb[8].mxu1  ;;  %v2370_v16 = vunpack.c.h.s8.bf16 %v2114_v44 }
 0x2ee   : > { %v4693_v27 = vmul.f32 %v5553_v20, %v4385_v23  ;;  %v2913_v28 = vpop.f32.mrb[9].mxu1  ;;  %3876 = vmatmul.mubr.bf16.gmra.mrb[112].mxu0 %v2350_v14 }
 0x2ef   : > { %v5485_v30 = vpack.c.bf16 %v4692_v24, %v4691_v19  ;;  %v4694_v31 = vmul.f32 %v5554_v25, %v4385_v23  ;;  %v2915_v32 = vpop.f32.mrb[10].mxu1  ;;  %3885 = vmatprep.mubr.bf16.mxu0 %v2359_v18  ;;  %v2374_v25 = vunpack.c.h.s8.bf16 %v2118_v59 }
 0x2f0   : > { %v2917_v34 = vpop.f32.mrb[11].mxu1 }
 0x2f1   : > { %5201 = vst [vmem:[%s7143_s23 + $0x10] sm:$0xff] %v5485_v30  ;;  %v5486_v36 = vpack.c.bf16 %v4694_v31, %v4693_v27  ;;  %v3617_v37 = vpop.f32.mrb[8].mxu0 }
 0x2f2   : > { %v5555_v38 = vadd.f32 %v3617_v37, %v2911_v26  ;;  %3180 = vmatmul.mubr.bf16.gmra.mrb[116].mxu1 %v2354_v29  ;;  %v3619_v39 = vpop.f32.mrb[9].mxu0  ;;  %v4410_v26 = vpop.permute.xlu0 %4409 }
 0x2f3   : > { %5202 = vst [vmem:[%s7143_s23 + $0x18] sm:$0xff] %v5486_v36  ;;  %v5556_v42 = vadd.f32 %v3619_v39, %v2913_v28  ;;  %v3621_v43 = vpop.f32.mrb[10].mxu0  ;;  %3189 = vmatprep.mubr.bf16.mxu1 %v2363_v33 }
 0x2f4   : > { %v4695_v46 = vmul.f32 %v5555_v38, %v4390_v41  ;;  %v5557_v47 = vadd.f32 %v3621_v43, %v2915_v32  ;;  %v3623_v48 = vpop.f32.mrb[11].mxu0  ;;  %v4415_v32 = vpop.permute.xlu1 %4414 }
 0x2f5   : > { %v4696_v50 = vmul.f32 %v5556_v42, %v4390_v41  ;;  %v5558_v51 = vadd.f32 %v3623_v48, %v2917_v34  ;;  %v2921_v52 = vpop.f32.mrb[12].mxu1 }
 0x2f6   : > { %v4697_v53 = vmul.f32 %v5557_v47, %v4395_v49  ;;  %v2923_v54 = vpop.f32.mrb[13].mxu1  ;;  %3886 = vmatmul.mubr.bf16.gmra.mrb[116].mxu0 %v2358_v40 }
 0x2f7   : > { %v5487_v56 = vpack.c.bf16 %v4696_v50, %v4695_v46  ;;  %v4698_v57 = vmul.f32 %v5558_v51, %v4395_v49  ;;  %v2925_v58 = vpop.f32.mrb[14].mxu1  ;;  %3895 = vmatprep.mubr.bf16.mxu0 %v2367_v45  ;;  %v4420_v46 = vpop.permute.xlu0 %4419 }
 0x2f8   : > { %v2927_v61 = vpop.f32.mrb[15].mxu1 }
 0x2f9   : > { %5203 = vst [vmem:[%s7143_s23 + $0x20] sm:$0xff] %v5487_v56  ;;  %v5488_v62 = vpack.c.bf16 %v4698_v57, %v4697_v53  ;;  %v3627_v63 = vpop.f32.mrb[12].mxu0 }
 0x2fa   : > { %v5559_v0 = vadd.f32 %v3627_v63, %v2921_v52  ;;  %3190 = vmatmul.mubr.bf16.gmra.mrb[120].mxu1 %v2362_v55  ;;  %v3629_v1 = vpop.f32.mrb[13].mxu0  ;;  %v4425_v52 = vpop.permute.xlu1 %4424 }
 0x2fb   : > { %5204 = vst [vmem:[%s7143_s23 + $0x28] sm:$0xff] %v5488_v62  ;;  %v5560_v4 = vadd.f32 %v3629_v1, %v2923_v54  ;;  %v3631_v5 = vpop.f32.mrb[14].mxu0  ;;  %3199 = vmatprep.mubr.bf16.mxu1 %v2371_v60 }
 0x2fc   : > { %v4699_v7 = vmul.f32 %v5559_v0, %v4400_v3  ;;  %v5561_v8 = vadd.f32 %v3631_v5, %v2925_v58  ;;  %v3633_v9 = vpop.f32.mrb[15].mxu0 }
 0x2fd   : > { %v4700_v11 = vmul.f32 %v5560_v4, %v4400_v3  ;;  %v5562_v12 = vadd.f32 %v3633_v9, %v2927_v61  ;;  %v2931_v13 = vpop.f32.mrb[16].mxu1 }
 0x2fe   : > { %v4701_v14 = vmul.f32 %v5561_v8, %v4405_v10  ;;  %v2933_v15 = vpop.f32.mrb[17].mxu1  ;;  %3896 = vmatmul.mubr.bf16.gmra.mrb[120].mxu0 %v2366_v2  ;;  %v4430_v2 = vpop.permute.xlu0 %4429 }
 0x2ff   : > { %v5489_v17 = vpack.c.bf16 %v4700_v11, %v4699_v7  ;;  %v4702_v18 = vmul.f32 %v5562_v12, %v4405_v10  ;;  %v2935_v19 = vpop.f32.mrb[18].mxu1  ;;  %3905 = vmatprep.mubr.bf16.mxu0 %v2375_v6  ;;  %v4435_v8 = vpop.permute.xlu1 %4434 }
 0x300   : > { %v2937_v20 = vpop.f32.mrb[19].mxu1 }
 0x301   : > { %5205 = vst [vmem:[%s7143_s23 + $0x30] sm:$0xff] %v5489_v17  ;;  %v5490_v21 = vpack.c.bf16 %v4702_v18, %v4701_v14  ;;  %v3637_v22 = vpop.f32.mrb[16].mxu0 }
 0x302   : > { %v5563_v23 = vadd.f32 %v3637_v22, %v2931_v13  ;;  %3200 = vmatmul.mubr.bf16.gmra.mrb[124].mxu1 %v2370_v16  ;;  %v3639_v24 = vpop.f32.mrb[17].mxu0  ;;  %v4440_v22 = vpop.permute.xlu0 %4439 }
 0x303   : > { %5206 = vst [vmem:[%s7143_s23 + $0x38] sm:$0xff] %v5490_v21  ;;  %v5564_v27 = vadd.f32 %v3639_v24, %v2933_v15  ;;  %v3641_v28 = vpop.f32.mrb[18].mxu0 }
 0x304   : > { %v4703_v29 = vmul.f32 %v5563_v23, %v4410_v26  ;;  %v5565_v30 = vadd.f32 %v3641_v28, %v2935_v19  ;;  %v3643_v31 = vpop.f32.mrb[19].mxu0  ;;  %v4445_v28 = vpop.permute.xlu1 %4444 }
 0x305   : > { %v4704_v33 = vmul.f32 %v5564_v27, %v4410_v26  ;;  %v5566_v34 = vadd.f32 %v3643_v31, %v2937_v20  ;;  %v2941_v35 = vpop.f32.mrb[20].mxu1 }
 0x306   : > { %v4705_v36 = vmul.f32 %v5565_v30, %v4415_v32  ;;  %v2943_v37 = vpop.f32.mrb[21].mxu1  ;;  %3906 = vmatmul.mubr.bf16.gmra.mrb[124].mxu0 %v2374_v25 }
 0x307   : > { %v5491_v38 = vpack.c.bf16 %v4704_v33, %v4703_v29  ;;  %v4706_v39 = vmul.f32 %v5566_v34, %v4415_v32  ;;  %v2945_v40 = vpop.f32.mrb[22].mxu1 }
 0x308   : > { %v2947_v41 = vpop.f32.mrb[23].mxu1 }
 0x309   : > { %5207 = vst [vmem:[%s7143_s23 + $0x40] sm:$0xff] %v5491_v38  ;;  %v5492_v42 = vpack.c.bf16 %v4706_v39, %v4705_v36  ;;  %v3647_v43 = vpop.f32.mrb[20].mxu0 }
 0x30a   : > { %v5567_v44 = vadd.f32 %v3647_v43, %v2941_v35  ;;  %v3649_v45 = vpop.f32.mrb[21].mxu0 }
 0x30b   : > { %5208 = vst [vmem:[%s7143_s23 + $0x48] sm:$0xff] %v5492_v42  ;;  %v5568_v47 = vadd.f32 %v3649_v45, %v2943_v37  ;;  %v3651_v48 = vpop.f32.mrb[22].mxu0  ;;  %v4450_v42 = vpop.permute.xlu0 %4449 }
 0x30c   : > { %v4707_v49 = vmul.f32 %v5567_v44, %v4420_v46  ;;  %v5569_v50 = vadd.f32 %v3651_v48, %v2945_v40  ;;  %v3653_v51 = vpop.f32.mrb[23].mxu0  ;;  %v4455_v48 = vpop.permute.xlu1 %4454 }
 0x30d   : > { %v4708_v53 = vmul.f32 %v5568_v47, %v4420_v46  ;;  %v5570_v54 = vadd.f32 %v3653_v51, %v2947_v41  ;;  %v2951_v55 = vpop.f32.mrb[24].mxu1 }
 0x30e   : > { %v4709_v56 = vmul.f32 %v5569_v50, %v4425_v52  ;;  %v2953_v57 = vpop.f32.mrb[25].mxu1 }
 0x30f   : > { %v5493_v58 = vpack.c.bf16 %v4708_v53, %v4707_v49  ;;  %v4710_v59 = vmul.f32 %v5570_v54, %v4425_v52  ;;  %v2955_v60 = vpop.f32.mrb[26].mxu1 }
 0x310   : > { %v2957_v61 = vpop.f32.mrb[27].mxu1 }
 0x311   : > { %5209 = vst [vmem:[%s7143_s23 + $0x50] sm:$0xff] %v5493_v58  ;;  %v5494_v62 = vpack.c.bf16 %v4710_v59, %v4709_v56  ;;  %v3657_v63 = vpop.f32.mrb[24].mxu0 }
 0x312   : > { %v5571_v0 = vadd.f32 %v3657_v63, %v2951_v55  ;;  %v3659_v1 = vpop.f32.mrb[25].mxu0 }
 0x313   : > { %5210 = vst [vmem:[%s7143_s23 + $0x58] sm:$0xff] %v5494_v62  ;;  %v5572_v3 = vadd.f32 %v3659_v1, %v2953_v57  ;;  %v3661_v4 = vpop.f32.mrb[26].mxu0  ;;  %v4460_v62 = vpop.permute.xlu0 %4459 }
 0x314   : > { %v4711_v5 = vmul.f32 %v5571_v0, %v4430_v2  ;;  %v5573_v6 = vadd.f32 %v3661_v4, %v2955_v60  ;;  %v3663_v7 = vpop.f32.mrb[27].mxu0  ;;  %v4465_v4 = vpop.permute.xlu1 %4464 }
 0x315   : > { %v4712_v9 = vmul.f32 %v5572_v3, %v4430_v2  ;;  %v5574_v10 = vadd.f32 %v3663_v7, %v2957_v61  ;;  %v2961_v11 = vpop.f32.mrb[28].mxu1 }
 0x316   : > { %v4713_v12 = vmul.f32 %v5573_v6, %v4435_v8  ;;  %v2963_v13 = vpop.f32.mrb[29].mxu1 }
 0x317   : > { %v5495_v14 = vpack.c.bf16 %v4712_v9, %v4711_v5  ;;  %v4714_v15 = vmul.f32 %v5574_v10, %v4435_v8  ;;  %v2965_v16 = vpop.f32.mrb[30].mxu1 }
 0x318   : > { %v2967_v17 = vpop.f32.mrb[31].mxu1 }
 0x319   : > { %5211 = vst [vmem:[%s7143_s23 + $0x60] sm:$0xff] %v5495_v14  ;;  %v5496_v18 = vpack.c.bf16 %v4714_v15, %v4713_v12  ;;  %v3667_v19 = vpop.f32.mrb[28].mxu0 }
 0x31a   : > { %v5575_v20 = vadd.f32 %v3667_v19, %v2961_v11  ;;  %v3669_v21 = vpop.f32.mrb[29].mxu0 }
 0x31b   : > { %5212 = vst [vmem:[%s7143_s23 + $0x68] sm:$0xff] %v5496_v18  ;;  %v5576_v23 = vadd.f32 %v3669_v21, %v2963_v13  ;;  %v3671_v24 = vpop.f32.mrb[30].mxu0  ;;  %v4470_v18 = vpop.permute.xlu0 %4469 }
 0x31c   : > { %v4715_v25 = vmul.f32 %v5575_v20, %v4440_v22  ;;  %v5577_v26 = vadd.f32 %v3671_v24, %v2965_v16  ;;  %v3673_v27 = vpop.f32.mrb[31].mxu0  ;;  %v4475_v24 = vpop.permute.xlu1 %4474 }
 0x31d   : > { %v4716_v29 = vmul.f32 %v5576_v23, %v4440_v22  ;;  %v5578_v30 = vadd.f32 %v3673_v27, %v2967_v17  ;;  %v2971_v31 = vpop.f32.mrb[32].mxu1 }
 0x31e   : > { %v4717_v32 = vmul.f32 %v5577_v26, %v4445_v28  ;;  %v2973_v33 = vpop.f32.mrb[33].mxu1 }
 0x31f   : > { %v5497_v34 = vpack.c.bf16 %v4716_v29, %v4715_v25  ;;  %v4718_v35 = vmul.f32 %v5578_v30, %v4445_v28  ;;  %v2975_v36 = vpop.f32.mrb[34].mxu1 }
 0x320   : > { %v2977_v37 = vpop.f32.mrb[35].mxu1 }
 0x321   : > { %5213 = vst [vmem:[%s7143_s23 + $0x70] sm:$0xff] %v5497_v34  ;;  %v5498_v38 = vpack.c.bf16 %v4718_v35, %v4717_v32  ;;  %v3677_v39 = vpop.f32.mrb[32].mxu0 }
 0x322   : > { %v5579_v40 = vadd.f32 %v3677_v39, %v2971_v31  ;;  %v3679_v41 = vpop.f32.mrb[33].mxu0 }
 0x323   : > { %5214 = vst [vmem:[%s7143_s23 + $0x78] sm:$0xff] %v5498_v38  ;;  %v5580_v43 = vadd.f32 %v3679_v41, %v2973_v33  ;;  %v3681_v44 = vpop.f32.mrb[34].mxu0  ;;  %v4480_v38 = vpop.permute.xlu0 %4479 }
 0x324   : > { %v4719_v45 = vmul.f32 %v5579_v40, %v4450_v42  ;;  %v5581_v46 = vadd.f32 %v3681_v44, %v2975_v36  ;;  %v3683_v47 = vpop.f32.mrb[35].mxu0  ;;  %v4485_v44 = vpop.permute.xlu1 %4484 }
 0x325   : > { %v4720_v49 = vmul.f32 %v5580_v43, %v4450_v42  ;;  %v5582_v50 = vadd.f32 %v3683_v47, %v2977_v37  ;;  %v2981_v51 = vpop.f32.mrb[36].mxu1 }
 0x326   : > { %v4721_v52 = vmul.f32 %v5581_v46, %v4455_v48  ;;  %v2983_v53 = vpop.f32.mrb[37].mxu1 }
 0x327   : > { %v5499_v54 = vpack.c.bf16 %v4720_v49, %v4719_v45  ;;  %v4722_v55 = vmul.f32 %v5582_v50, %v4455_v48  ;;  %v2985_v56 = vpop.f32.mrb[38].mxu1 }
 0x328   : > { %v2987_v57 = vpop.f32.mrb[39].mxu1 }
 0x329   : > { %5215 = vst [vmem:[%s7143_s23 + $0x80] sm:$0xff] %v5499_v54  ;;  %v5500_v58 = vpack.c.bf16 %v4722_v55, %v4721_v52  ;;  %v3687_v59 = vpop.f32.mrb[36].mxu0 }
 0x32a   : > { %v5583_v60 = vadd.f32 %v3687_v59, %v2981_v51  ;;  %v3689_v61 = vpop.f32.mrb[37].mxu0 }
 0x32b   : > { %5216 = vst [vmem:[%s7143_s23 + $0x88] sm:$0xff] %v5500_v58  ;;  %v5584_v63 = vadd.f32 %v3689_v61, %v2983_v53  ;;  %v3691_v0 = vpop.f32.mrb[38].mxu0  ;;  %v4490_v58 = vpop.permute.xlu0 %4489 }
 0x32c   : > { %v4723_v1 = vmul.f32 %v5583_v60, %v4460_v62  ;;  %v5585_v2 = vadd.f32 %v3691_v0, %v2985_v56  ;;  %v3693_v3 = vpop.f32.mrb[39].mxu0  ;;  %v4495_v0 = vpop.permute.xlu1 %4494 }
 0x32d   : > { %v4724_v5 = vmul.f32 %v5584_v63, %v4460_v62  ;;  %v5586_v6 = vadd.f32 %v3693_v3, %v2987_v57  ;;  %v2991_v7 = vpop.f32.mrb[40].mxu1 }
 0x32e   : > { %v4725_v8 = vmul.f32 %v5585_v2, %v4465_v4  ;;  %v2993_v9 = vpop.f32.mrb[41].mxu1 }
 0x32f   : > { %v5501_v10 = vpack.c.bf16 %v4724_v5, %v4723_v1  ;;  %v4726_v11 = vmul.f32 %v5586_v6, %v4465_v4  ;;  %v2995_v12 = vpop.f32.mrb[42].mxu1 }
 0x330   : > { %v2997_v13 = vpop.f32.mrb[43].mxu1 }
 0x331   : > { %5217 = vst [vmem:[%s7143_s23 + $0x90] sm:$0xff] %v5501_v10  ;;  %v5502_v14 = vpack.c.bf16 %v4726_v11, %v4725_v8  ;;  %v3697_v15 = vpop.f32.mrb[40].mxu0 }
 0x332   : > { %v5587_v16 = vadd.f32 %v3697_v15, %v2991_v7  ;;  %v3699_v17 = vpop.f32.mrb[41].mxu0 }
 0x333   : > { %5218 = vst [vmem:[%s7143_s23 + $0x98] sm:$0xff] %v5502_v14  ;;  %v5588_v19 = vadd.f32 %v3699_v17, %v2993_v9  ;;  %v3701_v20 = vpop.f32.mrb[42].mxu0  ;;  %v4500_v14 = vpop.permute.xlu0 %4499 }
 0x334   : > { %v4727_v21 = vmul.f32 %v5587_v16, %v4470_v18  ;;  %v5589_v22 = vadd.f32 %v3701_v20, %v2995_v12  ;;  %v3703_v23 = vpop.f32.mrb[43].mxu0  ;;  %v4505_v20 = vpop.permute.xlu1 %4504 }
 0x335   : > { %v4728_v25 = vmul.f32 %v5588_v19, %v4470_v18  ;;  %v5590_v26 = vadd.f32 %v3703_v23, %v2997_v13  ;;  %v3001_v27 = vpop.f32.mrb[44].mxu1 }
 0x336   : > { %v4729_v28 = vmul.f32 %v5589_v22, %v4475_v24  ;;  %v3003_v29 = vpop.f32.mrb[45].mxu1 }
 0x337   : > { %v5503_v30 = vpack.c.bf16 %v4728_v25, %v4727_v21  ;;  %v4730_v31 = vmul.f32 %v5590_v26, %v4475_v24  ;;  %v3005_v32 = vpop.f32.mrb[46].mxu1 }
 0x338   : > { %v3007_v33 = vpop.f32.mrb[47].mxu1 }
 0x339   : > { %5219 = vst [vmem:[%s7143_s23 + $0xa0] sm:$0xff] %v5503_v30  ;;  %v5504_v34 = vpack.c.bf16 %v4730_v31, %v4729_v28  ;;  %v3707_v35 = vpop.f32.mrb[44].mxu0 }
 0x33a   : > { %v5591_v36 = vadd.f32 %v3707_v35, %v3001_v27  ;;  %v3709_v37 = vpop.f32.mrb[45].mxu0 }
 0x33b   : > { %5220 = vst [vmem:[%s7143_s23 + $0xa8] sm:$0xff] %v5504_v34  ;;  %v5592_v39 = vadd.f32 %v3709_v37, %v3003_v29  ;;  %v3711_v40 = vpop.f32.mrb[46].mxu0  ;;  %v4510_v34 = vpop.permute.xlu0 %4509 }
 0x33c   : > { %v4731_v41 = vmul.f32 %v5591_v36, %v4480_v38  ;;  %v5593_v42 = vadd.f32 %v3711_v40, %v3005_v32  ;;  %v3713_v43 = vpop.f32.mrb[47].mxu0  ;;  %v4515_v40 = vpop.permute.xlu1 %4514 }
 0x33d   : > { %v4732_v45 = vmul.f32 %v5592_v39, %v4480_v38  ;;  %v5594_v46 = vadd.f32 %v3713_v43, %v3007_v33  ;;  %v3011_v47 = vpop.f32.mrb[48].mxu1 }
 0x33e   : > { %v4733_v48 = vmul.f32 %v5593_v42, %v4485_v44  ;;  %v3013_v49 = vpop.f32.mrb[49].mxu1 }
 0x33f   : > { %v5505_v50 = vpack.c.bf16 %v4732_v45, %v4731_v41  ;;  %v4734_v51 = vmul.f32 %v5594_v46, %v4485_v44  ;;  %v3015_v52 = vpop.f32.mrb[50].mxu1 }
 0x340   : > { %v3017_v53 = vpop.f32.mrb[51].mxu1 }
 0x341   : > { %5221 = vst [vmem:[%s7143_s23 + $0xb0] sm:$0xff] %v5505_v50  ;;  %v5506_v54 = vpack.c.bf16 %v4734_v51, %v4733_v48  ;;  %v3717_v55 = vpop.f32.mrb[48].mxu0 }
 0x342   : > { %v5595_v56 = vadd.f32 %v3717_v55, %v3011_v47  ;;  %v3719_v57 = vpop.f32.mrb[49].mxu0 }
 0x343   : > { %5222 = vst [vmem:[%s7143_s23 + $0xb8] sm:$0xff] %v5506_v54  ;;  %v5596_v59 = vadd.f32 %v3719_v57, %v3013_v49  ;;  %v3721_v60 = vpop.f32.mrb[50].mxu0  ;;  %v4520_v54 = vpop.permute.xlu0 %4519 }
 0x344   : > { %v4735_v61 = vmul.f32 %v5595_v56, %v4490_v58  ;;  %v5597_v62 = vadd.f32 %v3721_v60, %v3015_v52  ;;  %v3723_v63 = vpop.f32.mrb[51].mxu0  ;;  %v4525_v60 = vpop.permute.xlu1 %4524 }
 0x345   : > { %v4736_v1 = vmul.f32 %v5596_v59, %v4490_v58  ;;  %v5598_v2 = vadd.f32 %v3723_v63, %v3017_v53  ;;  %v3021_v3 = vpop.f32.mrb[52].mxu1 }
 0x346   : > { %v4737_v4 = vmul.f32 %v5597_v62, %v4495_v0  ;;  %v3023_v5 = vpop.f32.mrb[53].mxu1 }
 0x347   : > { %v5507_v6 = vpack.c.bf16 %v4736_v1, %v4735_v61  ;;  %v4738_v7 = vmul.f32 %v5598_v2, %v4495_v0  ;;  %v3025_v8 = vpop.f32.mrb[54].mxu1 }
 0x348   : > { %v3027_v9 = vpop.f32.mrb[55].mxu1 }
 0x349   : > { %5223 = vst [vmem:[%s7143_s23 + $0xc0] sm:$0xff] %v5507_v6  ;;  %v5508_v10 = vpack.c.bf16 %v4738_v7, %v4737_v4  ;;  %v3727_v11 = vpop.f32.mrb[52].mxu0 }
 0x34a   : > { %v5599_v12 = vadd.f32 %v3727_v11, %v3021_v3  ;;  %v3729_v13 = vpop.f32.mrb[53].mxu0 }
 0x34b   : > { %5224 = vst [vmem:[%s7143_s23 + $0xc8] sm:$0xff] %v5508_v10  ;;  %v5600_v15 = vadd.f32 %v3729_v13, %v3023_v5  ;;  %v3731_v16 = vpop.f32.mrb[54].mxu0  ;;  %v4530_v10 = vpop.permute.xlu0 %4529 }
 0x34c   : > { %v4739_v17 = vmul.f32 %v5599_v12, %v4500_v14  ;;  %v5601_v18 = vadd.f32 %v3731_v16, %v3025_v8  ;;  %v3733_v19 = vpop.f32.mrb[55].mxu0  ;;  %v4535_v16 = vpop.permute.xlu1 %4534 }
 0x34d   : > { %v4740_v21 = vmul.f32 %v5600_v15, %v4500_v14  ;;  %v5602_v22 = vadd.f32 %v3733_v19, %v3027_v9  ;;  %v3031_v23 = vpop.f32.mrb[56].mxu1 }
 0x34e   : > { %v4741_v24 = vmul.f32 %v5601_v18, %v4505_v20  ;;  %v3033_v25 = vpop.f32.mrb[57].mxu1 }
 0x34f   : > { %v5509_v26 = vpack.c.bf16 %v4740_v21, %v4739_v17  ;;  %v4742_v27 = vmul.f32 %v5602_v22, %v4505_v20  ;;  %v3035_v28 = vpop.f32.mrb[58].mxu1 }
 0x350   : > { %v3037_v29 = vpop.f32.mrb[59].mxu1 }
 0x351   : > { %5225 = vst [vmem:[%s7143_s23 + $0xd0] sm:$0xff] %v5509_v26  ;;  %v5510_v30 = vpack.c.bf16 %v4742_v27, %v4741_v24  ;;  %v3737_v31 = vpop.f32.mrb[56].mxu0 }
 0x352   : > { %v5603_v32 = vadd.f32 %v3737_v31, %v3031_v23  ;;  %v3739_v33 = vpop.f32.mrb[57].mxu0 }
 0x353   : > { %5226 = vst [vmem:[%s7143_s23 + $0xd8] sm:$0xff] %v5510_v30  ;;  %v5604_v35 = vadd.f32 %v3739_v33, %v3033_v25  ;;  %v3741_v36 = vpop.f32.mrb[58].mxu0  ;;  %v4540_v30 = vpop.permute.xlu0 %4539 }
 0x354   : > { %v4743_v37 = vmul.f32 %v5603_v32, %v4510_v34  ;;  %v5605_v38 = vadd.f32 %v3741_v36, %v3035_v28  ;;  %v3743_v39 = vpop.f32.mrb[59].mxu0  ;;  %v4545_v36 = vpop.permute.xlu1 %4544 }
 0x355   : > { %v4744_v41 = vmul.f32 %v5604_v35, %v4510_v34  ;;  %v5606_v42 = vadd.f32 %v3743_v39, %v3037_v29  ;;  %v3041_v43 = vpop.f32.mrb[60].mxu1 }
 0x356   : > { %v4745_v44 = vmul.f32 %v5605_v38, %v4515_v40  ;;  %v3043_v45 = vpop.f32.mrb[61].mxu1 }
 0x357   : > { %v5511_v46 = vpack.c.bf16 %v4744_v41, %v4743_v37  ;;  %v4746_v47 = vmul.f32 %v5606_v42, %v4515_v40  ;;  %v3045_v48 = vpop.f32.mrb[62].mxu1 }
 0x358   : > { %v3047_v49 = vpop.f32.mrb[63].mxu1 }
 0x359   : > { %5227 = vst [vmem:[%s7143_s23 + $0xe0] sm:$0xff] %v5511_v46  ;;  %v5512_v50 = vpack.c.bf16 %v4746_v47, %v4745_v44  ;;  %v3747_v51 = vpop.f32.mrb[60].mxu0 }
 0x35a   : > { %v5607_v52 = vadd.f32 %v3747_v51, %v3041_v43  ;;  %v3749_v53 = vpop.f32.mrb[61].mxu0 }
 0x35b   : > { %5228 = vst [vmem:[%s7143_s23 + $0xe8] sm:$0xff] %v5512_v50  ;;  %v5608_v55 = vadd.f32 %v3749_v53, %v3043_v45  ;;  %v3751_v56 = vpop.f32.mrb[62].mxu0  ;;  %v4550_v50 = vpop.permute.xlu0 %4549 }
 0x35c   : > { %v4747_v57 = vmul.f32 %v5607_v52, %v4520_v54  ;;  %v5609_v58 = vadd.f32 %v3751_v56, %v3045_v48  ;;  %v3753_v59 = vpop.f32.mrb[63].mxu0  ;;  %v4555_v56 = vpop.permute.xlu1 %4554 }
 0x35d   : > { %v4748_v61 = vmul.f32 %v5608_v55, %v4520_v54  ;;  %v5610_v62 = vadd.f32 %v3753_v59, %v3047_v49  ;;  %v3051_v63 = vpop.f32.mrb[64].mxu1 }
 0x35e   : > { %v4749_v0 = vmul.f32 %v5609_v58, %v4525_v60  ;;  %v3053_v1 = vpop.f32.mrb[65].mxu1 }
 0x35f   : > { %v5513_v2 = vpack.c.bf16 %v4748_v61, %v4747_v57  ;;  %v4750_v3 = vmul.f32 %v5610_v62, %v4525_v60  ;;  %v3055_v4 = vpop.f32.mrb[66].mxu1 }
 0x360   : > { %v3057_v5 = vpop.f32.mrb[67].mxu1 }
 0x361   : > { %5229 = vst [vmem:[%s7143_s23 + $0xf0] sm:$0xff] %v5513_v2  ;;  %v5514_v6 = vpack.c.bf16 %v4750_v3, %v4749_v0  ;;  %v3757_v7 = vpop.f32.mrb[64].mxu0 }
 0x362   : > { %v5611_v8 = vadd.f32 %v3757_v7, %v3051_v63  ;;  %v3759_v9 = vpop.f32.mrb[65].mxu0 }
 0x363   : > { %5230 = vst [vmem:[%s7143_s23 + $0xf8] sm:$0xff] %v5514_v6  ;;  %v5612_v11 = vadd.f32 %v3759_v9, %v3053_v1  ;;  %v3761_v12 = vpop.f32.mrb[66].mxu0  ;;  %v4560_v6 = vpop.permute.xlu0 %4559 }
 0x364   : > { %v4751_v13 = vmul.f32 %v5611_v8, %v4530_v10  ;;  %v5613_v14 = vadd.f32 %v3761_v12, %v3055_v4  ;;  %v3763_v15 = vpop.f32.mrb[67].mxu0  ;;  %v4565_v12 = vpop.permute.xlu1 %4564 }
 0x365   : > { %v4752_v17 = vmul.f32 %v5612_v11, %v4530_v10  ;;  %v5614_v18 = vadd.f32 %v3763_v15, %v3057_v5  ;;  %v3061_v19 = vpop.f32.mrb[68].mxu1 }
 0x366   : > { %v4753_v20 = vmul.f32 %v5613_v14, %v4535_v16  ;;  %v3063_v21 = vpop.f32.mrb[69].mxu1 }
 0x367   : > { %v5515_v22 = vpack.c.bf16 %v4752_v17, %v4751_v13  ;;  %v4754_v23 = vmul.f32 %v5614_v18, %v4535_v16  ;;  %v3065_v24 = vpop.f32.mrb[70].mxu1 }
 0x368   : > { %v3067_v25 = vpop.f32.mrb[71].mxu1 }
 0x369   : > { %5231 = vst [vmem:[%s7143_s23 + $0x100] sm:$0xff] %v5515_v22  ;;  %v5516_v26 = vpack.c.bf16 %v4754_v23, %v4753_v20  ;;  %v3767_v27 = vpop.f32.mrb[68].mxu0 }
 0x36a   : > { %v5615_v28 = vadd.f32 %v3767_v27, %v3061_v19  ;;  %v3769_v29 = vpop.f32.mrb[69].mxu0 }
 0x36b   : > { %5232 = vst [vmem:[%s7143_s23 + $0x108] sm:$0xff] %v5516_v26  ;;  %v5616_v31 = vadd.f32 %v3769_v29, %v3063_v21  ;;  %v3771_v32 = vpop.f32.mrb[70].mxu0  ;;  %v4570_v26 = vpop.permute.xlu0 %4569 }
 0x36c   : > { %v4755_v33 = vmul.f32 %v5615_v28, %v4540_v30  ;;  %v5617_v34 = vadd.f32 %v3771_v32, %v3065_v24  ;;  %v3773_v35 = vpop.f32.mrb[71].mxu0  ;;  %v4575_v32 = vpop.permute.xlu1 %4574 }
 0x36d   : > { %v4756_v37 = vmul.f32 %v5616_v31, %v4540_v30  ;;  %v5618_v38 = vadd.f32 %v3773_v35, %v3067_v25  ;;  %v3071_v39 = vpop.f32.mrb[72].mxu1 }
 0x36e   : > { %v4757_v40 = vmul.f32 %v5617_v34, %v4545_v36  ;;  %v3073_v41 = vpop.f32.mrb[73].mxu1 }
 0x36f   : > { %v5517_v42 = vpack.c.bf16 %v4756_v37, %v4755_v33  ;;  %v4758_v43 = vmul.f32 %v5618_v38, %v4545_v36  ;;  %v3075_v44 = vpop.f32.mrb[74].mxu1 }
 0x370   : > { %v3077_v45 = vpop.f32.mrb[75].mxu1 }
 0x371   : > { %5233 = vst [vmem:[%s7143_s23 + $0x110] sm:$0xff] %v5517_v42  ;;  %v5518_v46 = vpack.c.bf16 %v4758_v43, %v4757_v40  ;;  %v3777_v47 = vpop.f32.mrb[72].mxu0 }
 0x372   : > { %v5619_v48 = vadd.f32 %v3777_v47, %v3071_v39  ;;  %v3779_v49 = vpop.f32.mrb[73].mxu0 }
 0x373   : > { %5234 = vst [vmem:[%s7143_s23 + $0x118] sm:$0xff] %v5518_v46  ;;  %v5620_v51 = vadd.f32 %v3779_v49, %v3073_v41  ;;  %v3781_v52 = vpop.f32.mrb[74].mxu0  ;;  %v4580_v46 = vpop.permute.xlu0 %4579 }
 0x374   : > { %v4759_v53 = vmul.f32 %v5619_v48, %v4550_v50  ;;  %v5621_v54 = vadd.f32 %v3781_v52, %v3075_v44  ;;  %v3783_v55 = vpop.f32.mrb[75].mxu0  ;;  %v4585_v52 = vpop.permute.xlu1 %4584 }
 0x375   : > { %v4760_v57 = vmul.f32 %v5620_v51, %v4550_v50  ;;  %v5622_v58 = vadd.f32 %v3783_v55, %v3077_v45  ;;  %v3081_v59 = vpop.f32.mrb[76].mxu1 }
 0x376   : > { %v4761_v60 = vmul.f32 %v5621_v54, %v4555_v56  ;;  %v3083_v61 = vpop.f32.mrb[77].mxu1 }
 0x377   : > { %v5519_v62 = vpack.c.bf16 %v4760_v57, %v4759_v53  ;;  %v4762_v63 = vmul.f32 %v5622_v58, %v4555_v56  ;;  %v3085_v0 = vpop.f32.mrb[78].mxu1 }
 0x378   : > { %v3087_v1 = vpop.f32.mrb[79].mxu1 }
 0x379   : > { %5235 = vst [vmem:[%s7143_s23 + $0x120] sm:$0xff] %v5519_v62  ;;  %v5520_v2 = vpack.c.bf16 %v4762_v63, %v4761_v60  ;;  %v3787_v3 = vpop.f32.mrb[76].mxu0 }
 0x37a   : > { %v5623_v4 = vadd.f32 %v3787_v3, %v3081_v59  ;;  %v3789_v5 = vpop.f32.mrb[77].mxu0 }
 0x37b   : > { %5236 = vst [vmem:[%s7143_s23 + $0x128] sm:$0xff] %v5520_v2  ;;  %v5624_v7 = vadd.f32 %v3789_v5, %v3083_v61  ;;  %v3791_v8 = vpop.f32.mrb[78].mxu0  ;;  %v4590_v2 = vpop.permute.xlu0 %4589 }
 0x37c   : > { %v4763_v9 = vmul.f32 %v5623_v4, %v4560_v6  ;;  %v5625_v10 = vadd.f32 %v3791_v8, %v3085_v0  ;;  %v3793_v11 = vpop.f32.mrb[79].mxu0  ;;  %v4595_v8 = vpop.permute.xlu1 %4594 }
 0x37d   : > { %v4764_v13 = vmul.f32 %v5624_v7, %v4560_v6  ;;  %v5626_v14 = vadd.f32 %v3793_v11, %v3087_v1  ;;  %v3091_v15 = vpop.f32.mrb[80].mxu1 }
 0x37e   : > { %v4765_v16 = vmul.f32 %v5625_v10, %v4565_v12  ;;  %v3093_v17 = vpop.f32.mrb[81].mxu1 }
 0x37f   : > { %v5521_v18 = vpack.c.bf16 %v4764_v13, %v4763_v9  ;;  %v4766_v19 = vmul.f32 %v5626_v14, %v4565_v12  ;;  %v3095_v20 = vpop.f32.mrb[82].mxu1 }
 0x380   : > { %v3097_v21 = vpop.f32.mrb[83].mxu1 }
 0x381   : > { %5237 = vst [vmem:[%s7143_s23 + $0x130] sm:$0xff] %v5521_v18  ;;  %v5522_v22 = vpack.c.bf16 %v4766_v19, %v4765_v16  ;;  %v3797_v23 = vpop.f32.mrb[80].mxu0 }
 0x382   : > { %v5627_v24 = vadd.f32 %v3797_v23, %v3091_v15  ;;  %v3799_v25 = vpop.f32.mrb[81].mxu0 }
 0x383   : > { %5238 = vst [vmem:[%s7143_s23 + $0x138] sm:$0xff] %v5522_v22  ;;  %v5628_v27 = vadd.f32 %v3799_v25, %v3093_v17  ;;  %v3801_v28 = vpop.f32.mrb[82].mxu0  ;;  %v4600_v22 = vpop.permute.xlu0 %4599 }
 0x384   : > { %v4767_v29 = vmul.f32 %v5627_v24, %v4570_v26  ;;  %v5629_v30 = vadd.f32 %v3801_v28, %v3095_v20  ;;  %v3803_v31 = vpop.f32.mrb[83].mxu0  ;;  %v4605_v28 = vpop.permute.xlu1 %4604 }
 0x385   : > { %v4768_v33 = vmul.f32 %v5628_v27, %v4570_v26  ;;  %v5630_v34 = vadd.f32 %v3803_v31, %v3097_v21  ;;  %v3101_v35 = vpop.f32.mrb[84].mxu1 }
 0x386   : > { %v4769_v36 = vmul.f32 %v5629_v30, %v4575_v32  ;;  %v3103_v37 = vpop.f32.mrb[85].mxu1 }
 0x387   : > { %v5523_v38 = vpack.c.bf16 %v4768_v33, %v4767_v29  ;;  %v4770_v39 = vmul.f32 %v5630_v34, %v4575_v32  ;;  %v3105_v40 = vpop.f32.mrb[86].mxu1 }
 0x388   : > { %v3107_v41 = vpop.f32.mrb[87].mxu1 }
 0x389   : > { %5239 = vst [vmem:[%s7143_s23 + $0x140] sm:$0xff] %v5523_v38  ;;  %v5524_v42 = vpack.c.bf16 %v4770_v39, %v4769_v36  ;;  %v3807_v43 = vpop.f32.mrb[84].mxu0 }
 0x38a   : > { %v5631_v44 = vadd.f32 %v3807_v43, %v3101_v35  ;;  %v3809_v45 = vpop.f32.mrb[85].mxu0 }
 0x38b   : > { %5240 = vst [vmem:[%s7143_s23 + $0x148] sm:$0xff] %v5524_v42  ;;  %v5632_v47 = vadd.f32 %v3809_v45, %v3103_v37  ;;  %v3811_v48 = vpop.f32.mrb[86].mxu0  ;;  %v4610_v42 = vpop.permute.xlu0 %4609 }
 0x38c   : > { %v4771_v49 = vmul.f32 %v5631_v44, %v4580_v46  ;;  %v5633_v50 = vadd.f32 %v3811_v48, %v3105_v40  ;;  %v3813_v51 = vpop.f32.mrb[87].mxu0  ;;  %v4615_v48 = vpop.permute.xlu1 %4614 }
 0x38d   : > { %v4772_v53 = vmul.f32 %v5632_v47, %v4580_v46  ;;  %v5634_v54 = vadd.f32 %v3813_v51, %v3107_v41  ;;  %v3111_v55 = vpop.f32.mrb[88].mxu1 }
 0x38e   : > { %v4773_v56 = vmul.f32 %v5633_v50, %v4585_v52  ;;  %v3113_v57 = vpop.f32.mrb[89].mxu1 }
 0x38f   : > { %v5525_v58 = vpack.c.bf16 %v4772_v53, %v4771_v49  ;;  %v4774_v59 = vmul.f32 %v5634_v54, %v4585_v52  ;;  %v3115_v60 = vpop.f32.mrb[90].mxu1 }
 0x390   : > { %v3117_v61 = vpop.f32.mrb[91].mxu1 }
 0x391   : > { %5241 = vst [vmem:[%s7143_s23 + $0x150] sm:$0xff] %v5525_v58  ;;  %v5526_v62 = vpack.c.bf16 %v4774_v59, %v4773_v56  ;;  %v3817_v63 = vpop.f32.mrb[88].mxu0 }
 0x392   : > { %v5635_v0 = vadd.f32 %v3817_v63, %v3111_v55  ;;  %v3819_v1 = vpop.f32.mrb[89].mxu0 }
 0x393   : > { %5242 = vst [vmem:[%s7143_s23 + $0x158] sm:$0xff] %v5526_v62  ;;  %v5636_v3 = vadd.f32 %v3819_v1, %v3113_v57  ;;  %v3821_v4 = vpop.f32.mrb[90].mxu0  ;;  %v4620_v62 = vpop.permute.xlu0 %4619 }
 0x394   : > { %v4775_v5 = vmul.f32 %v5635_v0, %v4590_v2  ;;  %v5637_v6 = vadd.f32 %v3821_v4, %v3115_v60  ;;  %v3823_v7 = vpop.f32.mrb[91].mxu0  ;;  %v4625_v4 = vpop.permute.xlu1 %4624 }
 0x395   : > { %v4776_v9 = vmul.f32 %v5636_v3, %v4590_v2  ;;  %v5638_v10 = vadd.f32 %v3823_v7, %v3117_v61  ;;  %v3121_v11 = vpop.f32.mrb[92].mxu1 }
 0x396   : > { %v4777_v12 = vmul.f32 %v5637_v6, %v4595_v8  ;;  %v3123_v13 = vpop.f32.mrb[93].mxu1 }
 0x397   : > { %v5527_v14 = vpack.c.bf16 %v4776_v9, %v4775_v5  ;;  %v4778_v15 = vmul.f32 %v5638_v10, %v4595_v8  ;;  %v3125_v16 = vpop.f32.mrb[94].mxu1 }
 0x398   : > { %v3127_v17 = vpop.f32.mrb[95].mxu1 }
 0x399   : > { %5243 = vst [vmem:[%s7143_s23 + $0x160] sm:$0xff] %v5527_v14  ;;  %v5528_v18 = vpack.c.bf16 %v4778_v15, %v4777_v12  ;;  %v3827_v19 = vpop.f32.mrb[92].mxu0 }
 0x39a   : > { %v5639_v20 = vadd.f32 %v3827_v19, %v3121_v11  ;;  %v3829_v21 = vpop.f32.mrb[93].mxu0 }
 0x39b   : > { %5244 = vst [vmem:[%s7143_s23 + $0x168] sm:$0xff] %v5528_v18  ;;  %v5640_v23 = vadd.f32 %v3829_v21, %v3123_v13  ;;  %v3831_v24 = vpop.f32.mrb[94].mxu0  ;;  %v4630_v18 = vpop.permute.xlu0 %4629 }
 0x39c   : > { %v4779_v25 = vmul.f32 %v5639_v20, %v4600_v22  ;;  %v5641_v26 = vadd.f32 %v3831_v24, %v3125_v16  ;;  %v3833_v27 = vpop.f32.mrb[95].mxu0  ;;  %v4635_v24 = vpop.permute.xlu1 %4634 }
 0x39d   : > { %v4780_v29 = vmul.f32 %v5640_v23, %v4600_v22  ;;  %v5642_v30 = vadd.f32 %v3833_v27, %v3127_v17  ;;  %v3131_v31 = vpop.f32.mrb[96].mxu1 }
 0x39e   : > { %v4781_v32 = vmul.f32 %v5641_v26, %v4605_v28  ;;  %v3133_v33 = vpop.f32.mrb[97].mxu1 }
 0x39f   : > { %v5529_v34 = vpack.c.bf16 %v4780_v29, %v4779_v25  ;;  %v4782_v35 = vmul.f32 %v5642_v30, %v4605_v28  ;;  %v3135_v36 = vpop.f32.mrb[98].mxu1 }
 0x3a0   : > { %v3137_v37 = vpop.f32.mrb[99].mxu1 }
 0x3a1   : > { %5245 = vst [vmem:[%s7143_s23 + $0x170] sm:$0xff] %v5529_v34  ;;  %v5530_v38 = vpack.c.bf16 %v4782_v35, %v4781_v32  ;;  %v3837_v39 = vpop.f32.mrb[96].mxu0 }
 0x3a2   : > { %v5643_v40 = vadd.f32 %v3837_v39, %v3131_v31  ;;  %v3839_v41 = vpop.f32.mrb[97].mxu0 }
 0x3a3   : > { %5246 = vst [vmem:[%s7143_s23 + $0x178] sm:$0xff] %v5530_v38  ;;  %v5644_v43 = vadd.f32 %v3839_v41, %v3133_v33  ;;  %v3841_v44 = vpop.f32.mrb[98].mxu0  ;;  %v4640_v38 = vpop.permute.xlu0 %4639 }
 0x3a4   : > { %v4783_v45 = vmul.f32 %v5643_v40, %v4610_v42  ;;  %v5645_v46 = vadd.f32 %v3841_v44, %v3135_v36  ;;  %v3843_v47 = vpop.f32.mrb[99].mxu0  ;;  %v4645_v44 = vpop.permute.xlu1 %4644 }
 0x3a5   : > { %v4784_v49 = vmul.f32 %v5644_v43, %v4610_v42  ;;  %v5646_v50 = vadd.f32 %v3843_v47, %v3137_v37  ;;  %v3141_v51 = vpop.f32.mrb[100].mxu1 }
 0x3a6   : > { %v4785_v52 = vmul.f32 %v5645_v46, %v4615_v48  ;;  %v3143_v53 = vpop.f32.mrb[101].mxu1 }
 0x3a7   : > { %v5531_v54 = vpack.c.bf16 %v4784_v49, %v4783_v45  ;;  %v4786_v55 = vmul.f32 %v5646_v50, %v4615_v48  ;;  %v3145_v56 = vpop.f32.mrb[102].mxu1 }
 0x3a8   : > { %v3147_v57 = vpop.f32.mrb[103].mxu1 }
 0x3a9   : > { %5247 = vst [vmem:[%s7143_s23 + $0x180] sm:$0xff] %v5531_v54  ;;  %v5532_v58 = vpack.c.bf16 %v4786_v55, %v4785_v52  ;;  %v3847_v59 = vpop.f32.mrb[100].mxu0 }
 0x3aa   : > { %v5647_v60 = vadd.f32 %v3847_v59, %v3141_v51  ;;  %v3849_v61 = vpop.f32.mrb[101].mxu0 }
 0x3ab   : > { %5248 = vst [vmem:[%s7143_s23 + $0x188] sm:$0xff] %v5532_v58  ;;  %v5648_v63 = vadd.f32 %v3849_v61, %v3143_v53  ;;  %v3851_v0 = vpop.f32.mrb[102].mxu0  ;;  %v4650_v58 = vpop.permute.xlu0 %4649 }
 0x3ac   : > { %v4787_v1 = vmul.f32 %v5647_v60, %v4620_v62  ;;  %v5649_v2 = vadd.f32 %v3851_v0, %v3145_v56  ;;  %v3853_v3 = vpop.f32.mrb[103].mxu0  ;;  %v4655_v0 = vpop.permute.xlu1 %4654 }
 0x3ad   : > { %v4788_v5 = vmul.f32 %v5648_v63, %v4620_v62  ;;  %v5650_v6 = vadd.f32 %v3853_v3, %v3147_v57  ;;  %v3151_v7 = vpop.f32.mrb[104].mxu1 }
 0x3ae   : > { %v4789_v8 = vmul.f32 %v5649_v2, %v4625_v4  ;;  %v3153_v9 = vpop.f32.mrb[105].mxu1 }
 0x3af   : > { %v5533_v10 = vpack.c.bf16 %v4788_v5, %v4787_v1  ;;  %v4790_v11 = vmul.f32 %v5650_v6, %v4625_v4  ;;  %v3155_v12 = vpop.f32.mrb[106].mxu1 }
 0x3b0   : > { %v3157_v13 = vpop.f32.mrb[107].mxu1 }
 0x3b1   : > { %5249 = vst [vmem:[%s7143_s23 + $0x190] sm:$0xff] %v5533_v10  ;;  %v5534_v14 = vpack.c.bf16 %v4790_v11, %v4789_v8  ;;  %v3857_v15 = vpop.f32.mrb[104].mxu0 }
 0x3b2   : > { %v5651_v16 = vadd.f32 %v3857_v15, %v3151_v7  ;;  %v3859_v17 = vpop.f32.mrb[105].mxu0 }
 0x3b3   : > { %5250 = vst [vmem:[%s7143_s23 + $0x198] sm:$0xff] %v5534_v14  ;;  %v5652_v19 = vadd.f32 %v3859_v17, %v3153_v9  ;;  %v3861_v20 = vpop.f32.mrb[106].mxu0  ;;  %v4660_v14 = vpop.permute.xlu0 %4659 }
 0x3b4   : > { %v4791_v21 = vmul.f32 %v5651_v16, %v4630_v18  ;;  %v5653_v22 = vadd.f32 %v3861_v20, %v3155_v12  ;;  %v3863_v23 = vpop.f32.mrb[107].mxu0  ;;  %v4665_v20 = vpop.permute.xlu1 %4664 }
 0x3b5   : > { %v4792_v25 = vmul.f32 %v5652_v19, %v4630_v18  ;;  %v5654_v26 = vadd.f32 %v3863_v23, %v3157_v13  ;;  %v3161_v27 = vpop.f32.mrb[108].mxu1 }
 0x3b6   : > { %v4793_v28 = vmul.f32 %v5653_v22, %v4635_v24  ;;  %v3163_v29 = vpop.f32.mrb[109].mxu1 }
 0x3b7   : > { %v5535_v30 = vpack.c.bf16 %v4792_v25, %v4791_v21  ;;  %v4794_v31 = vmul.f32 %v5654_v26, %v4635_v24  ;;  %v3165_v32 = vpop.f32.mrb[110].mxu1 }
 0x3b8   : > { %v3167_v33 = vpop.f32.mrb[111].mxu1 }
 0x3b9   : > { %5251 = vst [vmem:[%s7143_s23 + $0x1a0] sm:$0xff] %v5535_v30  ;;  %v5536_v34 = vpack.c.bf16 %v4794_v31, %v4793_v28  ;;  %v3867_v35 = vpop.f32.mrb[108].mxu0 }
 0x3ba   : > { %v5655_v36 = vadd.f32 %v3867_v35, %v3161_v27  ;;  %v3869_v37 = vpop.f32.mrb[109].mxu0 }
 0x3bb   : > { %5252 = vst [vmem:[%s7143_s23 + $0x1a8] sm:$0xff] %v5536_v34  ;;  %v5656_v39 = vadd.f32 %v3869_v37, %v3163_v29  ;;  %v3871_v40 = vpop.f32.mrb[110].mxu0  ;;  %v4670_v34 = vpop.permute.xlu0 %4669 }
 0x3bc   : > { %v4795_v41 = vmul.f32 %v5655_v36, %v4640_v38  ;;  %v5657_v42 = vadd.f32 %v3871_v40, %v3165_v32  ;;  %v3873_v43 = vpop.f32.mrb[111].mxu0  ;;  %v4675_v40 = vpop.permute.xlu1 %4674 }
 0x3bd   : > { %v4796_v45 = vmul.f32 %v5656_v39, %v4640_v38  ;;  %v5658_v46 = vadd.f32 %v3873_v43, %v3167_v33  ;;  %v3171_v47 = vpop.f32.mrb[112].mxu1 }
 0x3be   : > { %v4797_v48 = vmul.f32 %v5657_v42, %v4645_v44  ;;  %v3173_v49 = vpop.f32.mrb[113].mxu1 }
 0x3bf   : > { %v5537_v50 = vpack.c.bf16 %v4796_v45, %v4795_v41  ;;  %v4798_v51 = vmul.f32 %v5658_v46, %v4645_v44  ;;  %v3175_v52 = vpop.f32.mrb[114].mxu1 }
 0x3c0   : > { %v3177_v53 = vpop.f32.mrb[115].mxu1 }
 0x3c1   : > { %5253 = vst [vmem:[%s7143_s23 + $0x1b0] sm:$0xff] %v5537_v50  ;;  %v5538_v54 = vpack.c.bf16 %v4798_v51, %v4797_v48  ;;  %v3877_v55 = vpop.f32.mrb[112].mxu0 }
 0x3c2   : > { %v5659_v56 = vadd.f32 %v3877_v55, %v3171_v47  ;;  %v3879_v57 = vpop.f32.mrb[113].mxu0 }
 0x3c3   : > { %5254 = vst [vmem:[%s7143_s23 + $0x1b8] sm:$0xff] %v5538_v54  ;;  %v5660_v59 = vadd.f32 %v3879_v57, %v3173_v49  ;;  %v3881_v60 = vpop.f32.mrb[114].mxu0  ;;  %v4680_v54 = vpop.permute.xlu0 %4679 }
 0x3c4   : > { %v4799_v61 = vmul.f32 %v5659_v56, %v4650_v58  ;;  %v5661_v62 = vadd.f32 %v3881_v60, %v3175_v52  ;;  %v3883_v63 = vpop.f32.mrb[115].mxu0  ;;  %v4685_v60 = vpop.permute.xlu1 %4684 }
 0x3c5   : > { %v4800_v1 = vmul.f32 %v5660_v59, %v4650_v58  ;;  %v5662_v2 = vadd.f32 %v3883_v63, %v3177_v53  ;;  %v3181_v3 = vpop.f32.mrb[116].mxu1 }
 0x3c6   : > { %v4801_v4 = vmul.f32 %v5661_v62, %v4655_v0  ;;  %v3183_v5 = vpop.f32.mrb[117].mxu1 }
 0x3c7   : > { %v5539_v6 = vpack.c.bf16 %v4800_v1, %v4799_v61  ;;  %v4802_v7 = vmul.f32 %v5662_v2, %v4655_v0  ;;  %v3185_v8 = vpop.f32.mrb[118].mxu1 }
 0x3c8   : > { %v3187_v9 = vpop.f32.mrb[119].mxu1 }
 0x3c9   : > { %5255 = vst [vmem:[%s7143_s23 + $0x1c0] sm:$0xff] %v5539_v6  ;;  %v5540_v10 = vpack.c.bf16 %v4802_v7, %v4801_v4  ;;  %v3887_v11 = vpop.f32.mrb[116].mxu0 }
 0x3ca   : > { %v5663_v12 = vadd.f32 %v3887_v11, %v3181_v3  ;;  %v3889_v13 = vpop.f32.mrb[117].mxu0 }
 0x3cb   : > { %5256 = vst [vmem:[%s7143_s23 + $0x1c8] sm:$0xff] %v5540_v10  ;;  %v5664_v15 = vadd.f32 %v3889_v13, %v3183_v5  ;;  %v3891_v16 = vpop.f32.mrb[118].mxu0 }
 0x3cc   : > { %v4803_v17 = vmul.f32 %v5663_v12, %v4660_v14  ;;  %v5665_v18 = vadd.f32 %v3891_v16, %v3185_v8  ;;  %v3893_v19 = vpop.f32.mrb[119].mxu0 }
 0x3cd   : > { %v4804_v21 = vmul.f32 %v5664_v15, %v4660_v14  ;;  %v5666_v22 = vadd.f32 %v3893_v19, %v3187_v9  ;;  %v3191_v23 = vpop.f32.mrb[120].mxu1 }
 0x3ce   : > { %v4805_v24 = vmul.f32 %v5665_v18, %v4665_v20  ;;  %v3193_v25 = vpop.f32.mrb[121].mxu1 }
 0x3cf   : > { %v5541_v26 = vpack.c.bf16 %v4804_v21, %v4803_v17  ;;  %v4806_v27 = vmul.f32 %v5666_v22, %v4665_v20  ;;  %v3195_v28 = vpop.f32.mrb[122].mxu1 }
 0x3d0   : > { %v3197_v29 = vpop.f32.mrb[123].mxu1 }
 0x3d1   : > { %5257 = vst [vmem:[%s7143_s23 + $0x1d0] sm:$0xff] %v5541_v26  ;;  %v5542_v30 = vpack.c.bf16 %v4806_v27, %v4805_v24  ;;  %v3897_v31 = vpop.f32.mrb[120].mxu0 }
 0x3d2   : > { %v5667_v32 = vadd.f32 %v3897_v31, %v3191_v23  ;;  %v3899_v33 = vpop.f32.mrb[121].mxu0 }
 0x3d3   : > { %5258 = vst [vmem:[%s7143_s23 + $0x1d8] sm:$0xff] %v5542_v30  ;;  %v5668_v35 = vadd.f32 %v3899_v33, %v3193_v25  ;;  %v3901_v36 = vpop.f32.mrb[122].mxu0 }
 0x3d4   : > { %v4807_v37 = vmul.f32 %v5667_v32, %v4670_v34  ;;  %v5669_v38 = vadd.f32 %v3901_v36, %v3195_v28  ;;  %v3903_v39 = vpop.f32.mrb[123].mxu0 }
 0x3d5   : > { %v4808_v41 = vmul.f32 %v5668_v35, %v4670_v34  ;;  %v5670_v42 = vadd.f32 %v3903_v39, %v3197_v29  ;;  %v3201_v43 = vpop.f32.mrb[124].mxu1 }
 0x3d6   : > { %v4809_v44 = vmul.f32 %v5669_v38, %v4675_v40  ;;  %v3203_v45 = vpop.f32.mrb[125].mxu1 }
 0x3d7   : > { %v5543_v46 = vpack.c.bf16 %v4808_v41, %v4807_v37  ;;  %v4810_v47 = vmul.f32 %v5670_v42, %v4675_v40  ;;  %v3205_v48 = vpop.f32.mrb[126].mxu1 }
 0x3d8   : > { %v3207_v49 = vpop.f32.mrb[127].mxu1 }
 0x3d9   : > { %5259 = vst [vmem:[%s7143_s23 + $0x1e0] sm:$0xff] %v5543_v46  ;;  %v5544_v50 = vpack.c.bf16 %v4810_v47, %v4809_v44  ;;  %v3907_v51 = vpop.f32.mrb[124].mxu0 }
 0x3da   : > { %v5671_v52 = vadd.f32 %v3907_v51, %v3201_v43  ;;  %v3909_v53 = vpop.f32.mrb[125].mxu0 }
 0x3db   : > { %5260 = vst [vmem:[%s7143_s23 + $0x1e8] sm:$0xff] %v5544_v50  ;;  %v5672_v55 = vadd.f32 %v3909_v53, %v3203_v45  ;;  %v3911_v56 = vpop.f32.mrb[126].mxu0 }
 0x3dc   : > { %v4811_v57 = vmul.f32 %v5671_v52, %v4680_v54  ;;  %v5673_v58 = vadd.f32 %v3911_v56, %v3205_v48  ;;  %v3913_v59 = vpop.f32.mrb[127].mxu0 }
 0x3dd   : > { %v4812_v61 = vmul.f32 %v5672_v55, %v4680_v54  ;;  %v5674_v62 = vadd.f32 %v3913_v59, %v3207_v49 }
 0x3de   : > { %v4813_v63 = vmul.f32 %v5673_v58, %v4685_v60 }
 0x3df   : > { %v5545_v0 = vpack.c.bf16 %v4812_v61, %v4811_v57  ;;  %v4814_v1 = vmul.f32 %v5674_v62, %v4685_v60 }
 0x3e1   : > { %5261 = vst [vmem:[%s7143_s23 + $0x1f0] sm:$0xff] %v5545_v0  ;;  %v5546_v2 = vpack.c.bf16 %v4814_v1, %v4813_v63 }
 0x3e3   : > { %5262 = vst [vmem:[%s7143_s23 + $0x1f8] sm:$0xff] %v5546_v2 }
 0x3e4 PF: > { %s14_s17 = sadd.s32 1, %s5982_s17   ;;  %s7229_s15 = smov %s5978_s16 }
 0x3e5   : > { %p11_p6 = scmp.ge.s32.totalorder %s14_s17, 4   ;;  %s7230_s16 = smov %s7232_s18 }
 0x3e7   :  { %13 = sbr.rel (!%p11_p6) target bundleno = 2 (0x2), region = 84 }

</bundles_post_ra>
